<compile_context>
chip_gen: v7x
topology: tpu7x:2x2x1
jax: 0.10.0
libtpu: 0.0.40
codegen_flags: <defaults>
</compile_context>

<pallas_src>
import functools

import numpy as np

import jax
import jax.numpy as jnp
from jax import lax
from jax.experimental import pallas as pl
from jax.experimental.pallas import tpu as pltpu


_LANE = 128              # TPU vreg lane width
_TILE_ROWS = 32          # 32 x 128 = 4096 points per grid step
_MAX_UNROLLED_ROWS = 64  # statically unroll the word-row select up to this many rows


def _scale_shift(mask_shape, xyz_min, xyz_max):
    """xyz -> ijk affine transform, computed once on host in float32."""
    xyz_min = np.asarray(xyz_min, np.float32)
    xyz_max = np.asarray(xyz_max, np.float32)
    sz = np.asarray(mask_shape, np.float32)
    scale = ((sz - np.float32(1.0)) / (xyz_max - xyz_min)).astype(np.float32)
    shift = (-xyz_min * scale).astype(np.float32)
    return scale, shift


# ----------------------------------------------------------------------------
# Fast kernel: bit-packed mask + real lane gather
# ----------------------------------------------------------------------------

def _maskgrid_gather_kernel(xyz_ref, mask_ref, out_ref, *,
                            szi, szj, szk, scale, shift, n_word_rows):
    # xyz_ref  : VMEM f32[3, TR, 128]   x / y / z planes for TR*128 points
    # mask_ref : VMEM i32[R_pad, 128]   bit-packed occupancy grid (32 voxels/word),
    #                                   resident across the whole grid
    # out_ref  : VMEM i8 [TR, 128]      1 = occupied & in bounds
    tr, lane = out_ref.shape

    x = xyz_ref[0]
    y = xyz_ref[1]
    z = xyz_ref[2]

    # CUDA maskcache_lookup uses roundf(); floor(v + 0.5) matches it for every
    # candidate in-bounds index (they only differ at exactly v == -0.5, where
    # roundf gives -1/invalid and this gives 0).
    i = jnp.floor(x * scale[0] + shift[0] + 0.5).astype(jnp.int32)
    j = jnp.floor(y * scale[1] + shift[1] + 0.5).astype(jnp.int32)
    k = jnp.floor(z * scale[2] + shift[2] + 0.5).astype(jnp.int32)

    valid = ((i >= 0) & (i < szi) &
             (j >= 0) & (j < szj) &
             (k >= 0) & (k < szk))

    flat = jnp.clip((i * szj + j) * szk + k, 0, szi * szj * szk - 1)

    word_idx = flat >> 5          # which packed int32 word
    bit_idx = flat & 31           # which bit inside that word
    row = word_idx >> 7           # row of the (R, 128) packed table
    col = word_idx & 127          # lane within that row

    # Two-level lookup: resolve the table row with a short select loop, then a
    # real in-register lane gather (tpu.dynamic_gather) picks the packed word.
    def pick_row(c, acc):
        row_words = jnp.broadcast_to(mask_ref[pl.ds(c, 1), :], (tr, lane))
        gathered = jnp.take_along_axis(row_words, col, axis=1,
                                       mode="promise_in_bounds")
        return jnp.where(row == c, gathered, acc)

    word = jnp.zeros((tr, lane), jnp.int32)
    if n_word_rows <= _MAX_UNROLLED_ROWS:
        for c in range(n_word_rows):
            word = pick_row(c, word)
    else:
        word = lax.fori_loop(0, n_word_rows, pick_row, word)

    hit = (lax.shift_right_logical(word, bit_idx) & 1) == 1
    out_ref[...] = (valid & hit).astype(out_ref.dtype)


def _pack_mask(mask, word_rows_pad):
    """Bit-pack a bool grid into a lane-dense (word_rows_pad, 128) int32 table."""
    g = mask.size
    n_bits = word_rows_pad * _LANE * 32
    bits = jnp.pad(mask.reshape(-1).astype(jnp.uint32), (0, n_bits - g))
    weights = jnp.left_shift(jnp.uint32(1), jnp.arange(32, dtype=jnp.uint32))
    words = jnp.sum(bits.reshape(-1, 32) * weights, axis=-1, dtype=jnp.uint32)
    return lax.bitcast_convert_type(words, jnp.int32).reshape(word_rows_pad, _LANE)


def _forward_gather(xyz, mask, xyz_min, xyz_max, *, tile_rows=_TILE_ROWS):
    mask = mask.astype(jnp.bool_)
    szi, szj, szk = mask.shape
    g = szi * szj * szk
    assert g < 2 ** 31, "flat voxel index would overflow int32"
    scale, shift = _scale_shift(mask.shape, xyz_min, xyz_max)

    out_shape = xyz.shape[:-1]
    pts = xyz.reshape(-1, 3).astype(jnp.float32)
    n = pts.shape[0]

    tile_pts = tile_rows * _LANE
    n_pad = pl.cdiv(max(n, 1), tile_pts) * tile_pts
    n_rows = n_pad // _LANE
    pts_pad = jnp.pad(pts, ((0, n_pad - n), (0, 0)))
    planes = pts_pad.reshape(n_rows, _LANE, 3).transpose(2, 0, 1)   # (3, rows, 128)

    n_words = -(-g // 32)                       # 32 voxels per int32 word
    word_rows = -(-n_words // _LANE)            # rows of 128 words (= 4096 voxels)
    word_rows_pad = max(-(-word_rows // 8) * 8, 8)
    words = _pack_mask(mask, word_rows_pad)

    kernel = functools.partial(
        _maskgrid_gather_kernel,
        szi=szi, szj=szj, szk=szk,
        scale=tuple(float(v) for v in scale),
        shift=tuple(float(v) for v in shift),
        n_word_rows=word_rows)

    mask_bytes = word_rows_pad * _LANE * 4
    vmem_limit = int(min(100 * 2 ** 20, max(32 * 2 ** 20, 2 * mask_bytes + 2 ** 20)))

    out = pl.pallas_call(
        kernel,
        out_shape=jax.ShapeDtypeStruct((n_rows, _LANE), jnp.int8),
        grid_spec=pltpu.PrefetchScalarGridSpec(
            num_scalar_prefetch=0,
            grid=(n_rows // tile_rows,),
            in_specs=[
                pl.BlockSpec((3, tile_rows, _LANE), lambda i: (0, i, 0)),  # point tile
                pl.BlockSpec((word_rows_pad, _LANE), lambda i: (0, 0)),    # resident packed mask
            ],
            out_specs=pl.BlockSpec((tile_rows, _LANE), lambda i: (i, 0)),
        ),
        compiler_params=pltpu.CompilerParams(
            dimension_semantics=("parallel",),
            vmem_limit_bytes=vmem_limit),
    )(planes, words)

    return out.reshape(-1)[:n].astype(jnp.bool_).reshape(out_shape)


# ----------------------------------------------------------------------------
# Fallback kernel (original one-hot compare) — only used if the dynamic lane
# gather cannot be lowered by the Mosaic build in use.
# ----------------------------------------------------------------------------

def _maskgrid_onehot_kernel(scale_ref, shift_ref, xyz_ref, mask_ref, out_ref,
                            *, szi, szj, szk):
    tn = out_ref.shape[1]
    g_pad = mask_ref.shape[0]

    si, sj, sk = scale_ref[0], scale_ref[1], scale_ref[2]
    hi, hj, hk = shift_ref[0], shift_ref[1], shift_ref[2]

    x = xyz_ref[0:1, :]
    y = xyz_ref[1:2, :]
    z = xyz_ref[2:3, :]

    i = jnp.floor(x * si + hi + 0.5).astype(jnp.int32)
    j = jnp.floor(y * sj + hj + 0.5).astype(jnp.int32)
    k = jnp.floor(z * sk + hk + 0.5).astype(jnp.int32)

    valid = ((i >= 0) & (i < szi) & (j >= 0) & (j < szj) & (k >= 0) & (k < szk))
    flat = jnp.clip(i * (szj * szk) + j * szk + k, 0, szi * szj * szk - 1)

    rows = lax.broadcasted_iota(jnp.int32, (g_pad, tn), 0)
    vals = jnp.where(rows == flat, mask_ref[...], jnp.float32(0.0))
    hit = jnp.sum(vals, axis=0, keepdims=True)

    out_ref[...] = (valid & (hit > 0.5)).astype(jnp.int32)


def _forward_onehot(xyz, mask, xyz_min, xyz_max, *, tile_n=128):
    mask = mask.astype(jnp.bool_)
    szi, szj, szk = mask.shape
    scale, shift = _scale_shift(mask.shape, xyz_min, xyz_max)

    out_shape = xyz.shape[:-1]
    pts = xyz.reshape(-1, 3).astype(jnp.float32)
    n = pts.shape[0]
    n_pad = pl.cdiv(max(n, 1), tile_n) * tile_n
    pts_t = jnp.pad(pts, ((0, n_pad - n), (0, 0))).T              # (3, N_pad)

    g = szi * szj * szk
    g_pad = pl.cdiv(g, 8) * 8
    mask_col = jnp.pad(mask.reshape(-1).astype(jnp.float32),
                       (0, g_pad - g)).reshape(g_pad, 1)

    kernel = functools.partial(_maskgrid_onehot_kernel, szi=szi, szj=szj, szk=szk)
    out = pl.pallas_call(
        kernel,
        out_shape=jax.ShapeDtypeStruct((1, n_pad), jnp.int32),
        grid_spec=pltpu.PrefetchScalarGridSpec(
            num_scalar_prefetch=0,
            grid=(n_pad // tile_n,),
            in_specs=[
                pl.BlockSpec(memory_space=pltpu.MemorySpace.SMEM),   # scale
                pl.BlockSpec(memory_space=pltpu.MemorySpace.SMEM),   # shift
                pl.BlockSpec((3, tile_n), lambda i: (0, i)),
                pl.BlockSpec((g_pad, 1), lambda i: (0, 0)),
            ],
            out_specs=pl.BlockSpec((1, tile_n), lambda i: (0, i)),
        ),
        compiler_params=pltpu.CompilerParams(
            dimension_semantics=("parallel",)),
    )(jnp.asarray(scale), jnp.asarray(shift), pts_t, mask_col)

    return out.reshape(-1)[:n].astype(jnp.bool_).reshape(out_shape)


# ----------------------------------------------------------------------------
# Public entry point
# ----------------------------------------------------------------------------

def maskgrid_forward(xyz, mask, xyz_min, xyz_max):
    """JAX/Pallas equivalent of MaskGrid(mask=..., xyz_min=..., xyz_max=...).forward(xyz)."""
    # TODO(synk): the `path=...` constructor branch (torch.load + F.max_pool3d +
    # softplus thresholding) is checkpoint preprocessing, not part of forward(),
    # and is not reproduced here.
    try:
        return _forward_gather(xyz, mask, xyz_min, xyz_max)
    except Exception:   # older Mosaic without dynamic lane gather -> slow but safe path
        return _forward_onehot(xyz, mask, xyz_min, xyz_max)


def _reference_forward(xyz, mask, xyz_min, xyz_max):
    """Pure-JAX reference of the CUDA maskcache_lookup semantics."""
    szi, szj, szk = mask.shape
    scale, shift = _scale_shift(mask.shape, xyz_min, xyz_max)
    pts = xyz.reshape(-1, 3).astype(jnp.float32)
    ijk = jnp.floor(pts * scale + shift + 0.5).astype(jnp.int32)
    valid = jnp.all((ijk >= 0) & (ijk < jnp.array([szi, szj, szk])), axis=-1)
    ijk_c = jnp.clip(ijk, 0, jnp.array([szi - 1, szj - 1, szk - 1]))
    looked = mask.astype(jnp.bool_)[ijk_c[:, 0], ijk_c[:, 1], ijk_c[:, 2]]
    return (valid & looked).reshape(xyz.shape[:-1])


if __name__ == "__main__":
    key = jax.random.PRNGKey(0)
    k_mask, k_xyz = jax.random.split(key)

    # small synthetic MaskGrid: 16^3 occupancy grid over [-1, 1]^3
    I = J = K = 16
    mask = jax.random.uniform(k_mask, (I, J, K)) > 0.5
    xyz_min = jnp.array([-1.0, -1.0, -1.0], jnp.float32)
    xyz_max = jnp.array([1.0, 1.0, 1.0], jnp.float32)

    # query points, some intentionally out of bounds; N = 2*5*16 = 160
    xyz = jax.random.uniform(k_xyz, (2, 5, 16, 3), jnp.float32,
                             minval=-1.3, maxval=1.3)

    out = maskgrid_forward(xyz, mask, xyz_min, xyz_max)
    out = jax.block_until_ready(out)

    ref = _reference_forward(xyz, mask, xyz_min, xyz_max)
    assert out.shape == xyz.shape[:-1] and out.dtype == jnp.bool_
    assert bool(jnp.array_equal(out, ref)), "Pallas MaskGrid lookup mismatch vs reference"

    print("KERNEL_OK")
</pallas_src>

<mosaic_0001>
module attributes {stable_mosaic.version = 11 : i64} {
  func.func @_maskgrid_gather_kernel(%arg0: i32, %arg1: memref<3x32x128xf32, #tpu.memory_space<vmem>>, %arg2: memref<8x128xi32, #tpu.memory_space<vmem>>, %arg3: memref<32x128xi8, #tpu.memory_space<vmem>>) attributes {dimension_semantics = [#tpu.dimension_semantics<parallel>], iteration_bounds = array<i64: 1>, scalar_prefetch = 0 : i64, scratch_operands = 0 : i64, tpu.core_type = #tpu.core_type<tc>, window_params = [{transform_indices = @transform_0, window_bounds = array<i64: 3, 32, 128>}, {pipeline_mode = #tpu.pipeline_mode<synchronous>, transform_indices = @transform_1, window_bounds = array<i64: 8, 128>}, {transform_indices = @transform_2, window_bounds = array<i64: 32, 128>}]} {
    %c0 = arith.constant 0 : index
    %c0_0 = arith.constant 0 : index
    %c0_1 = arith.constant 0 : index
    %0 = vector.load %arg1[%c0, %c0_0, %c0_1] : memref<3x32x128xf32, #tpu.memory_space<vmem>>, vector<1x32x128xf32>
    %1 = vector.shape_cast %0 : vector<1x32x128xf32> to vector<32x128xf32>
    %c1 = arith.constant 1 : index
    %c0_2 = arith.constant 0 : index
    %c0_3 = arith.constant 0 : index
    %2 = vector.load %arg1[%c1, %c0_2, %c0_3] : memref<3x32x128xf32, #tpu.memory_space<vmem>>, vector<1x32x128xf32>
    %3 = vector.shape_cast %2 : vector<1x32x128xf32> to vector<32x128xf32>
    %c2 = arith.constant 2 : index
    %c0_4 = arith.constant 0 : index
    %c0_5 = arith.constant 0 : index
    %4 = vector.load %arg1[%c2, %c0_4, %c0_5] : memref<3x32x128xf32, #tpu.memory_space<vmem>>, vector<1x32x128xf32>
    %5 = vector.shape_cast %4 : vector<1x32x128xf32> to vector<32x128xf32>
    %cst = arith.constant 7.500000e+00 : f32
    %6 = vector.broadcast %cst : f32 to vector<32x128xf32>
    %7 = arith.mulf %1, %6 : vector<32x128xf32>
    %cst_6 = arith.constant 7.500000e+00 : f32
    %8 = vector.broadcast %cst_6 : f32 to vector<32x128xf32>
    %9 = arith.addf %7, %8 : vector<32x128xf32>
    %cst_7 = arith.constant 5.000000e-01 : f32
    %10 = vector.broadcast %cst_7 : f32 to vector<32x128xf32>
    %11 = arith.addf %9, %10 : vector<32x128xf32>
    %12 = math.floor %11 : vector<32x128xf32>
    %13 = arith.fptosi %12 : vector<32x128xf32> to vector<32x128xi32>
    %cst_8 = arith.constant 7.500000e+00 : f32
    %14 = vector.broadcast %cst_8 : f32 to vector<32x128xf32>
    %15 = arith.mulf %3, %14 : vector<32x128xf32>
    %cst_9 = arith.constant 7.500000e+00 : f32
    %16 = vector.broadcast %cst_9 : f32 to vector<32x128xf32>
    %17 = arith.addf %15, %16 : vector<32x128xf32>
    %cst_10 = arith.constant 5.000000e-01 : f32
    %18 = vector.broadcast %cst_10 : f32 to vector<32x128xf32>
    %19 = arith.addf %17, %18 : vector<32x128xf32>
    %20 = math.floor %19 : vector<32x128xf32>
    %21 = arith.fptosi %20 : vector<32x128xf32> to vector<32x128xi32>
    %cst_11 = arith.constant 7.500000e+00 : f32
    %22 = vector.broadcast %cst_11 : f32 to vector<32x128xf32>
    %23 = arith.mulf %5, %22 : vector<32x128xf32>
    %cst_12 = arith.constant 7.500000e+00 : f32
    %24 = vector.broadcast %cst_12 : f32 to vector<32x128xf32>
    %25 = arith.addf %23, %24 : vector<32x128xf32>
    %cst_13 = arith.constant 5.000000e-01 : f32
    %26 = vector.broadcast %cst_13 : f32 to vector<32x128xf32>
    %27 = arith.addf %25, %26 : vector<32x128xf32>
    %28 = math.floor %27 : vector<32x128xf32>
    %29 = arith.fptosi %28 : vector<32x128xf32> to vector<32x128xi32>
    %c0_i32 = arith.constant 0 : i32
    %30 = vector.broadcast %c0_i32 : i32 to vector<32x128xi32>
    %31 = arith.cmpi sge, %13, %30 : vector<32x128xi32>
    %c16_i32 = arith.constant 16 : i32
    %32 = vector.broadcast %c16_i32 : i32 to vector<32x128xi32>
    %33 = arith.cmpi slt, %13, %32 : vector<32x128xi32>
    %34 = arith.andi %31, %33 : vector<32x128xi1>
    %c0_i32_14 = arith.constant 0 : i32
    %35 = vector.broadcast %c0_i32_14 : i32 to vector<32x128xi32>
    %36 = arith.cmpi sge, %21, %35 : vector<32x128xi32>
    %37 = arith.andi %34, %36 : vector<32x128xi1>
    %c16_i32_15 = arith.constant 16 : i32
    %38 = vector.broadcast %c16_i32_15 : i32 to vector<32x128xi32>
    %39 = arith.cmpi slt, %21, %38 : vector<32x128xi32>
    %40 = arith.andi %37, %39 : vector<32x128xi1>
    %c0_i32_16 = arith.constant 0 : i32
    %41 = vector.broadcast %c0_i32_16 : i32 to vector<32x128xi32>
    %42 = arith.cmpi sge, %29, %41 : vector<32x128xi32>
    %43 = arith.andi %40, %42 : vector<32x128xi1>
    %c16_i32_17 = arith.constant 16 : i32
    %44 = vector.broadcast %c16_i32_17 : i32 to vector<32x128xi32>
    %45 = arith.cmpi slt, %29, %44 : vector<32x128xi32>
    %46 = arith.andi %43, %45 : vector<32x128xi1>
    %c16_i32_18 = arith.constant 16 : i32
    %47 = vector.broadcast %c16_i32_18 : i32 to vector<32x128xi32>
    %48 = arith.muli %13, %47 : vector<32x128xi32>
    %49 = arith.addi %48, %21 : vector<32x128xi32>
    %c16_i32_19 = arith.constant 16 : i32
    %50 = vector.broadcast %c16_i32_19 : i32 to vector<32x128xi32>
    %51 = arith.muli %49, %50 : vector<32x128xi32>
    %52 = arith.addi %51, %29 : vector<32x128xi32>
    %c0_i32_20 = arith.constant 0 : i32
    %c4095_i32 = arith.constant 4095 : i32
    %53 = vector.broadcast %c0_i32_20 : i32 to vector<32x128xi32>
    %54 = arith.maxsi %53, %52 : vector<32x128xi32>
    %55 = vector.broadcast %c4095_i32 : i32 to vector<32x128xi32>
    %56 = arith.minsi %55, %54 : vector<32x128xi32>
    %c5_i32 = arith.constant 5 : i32
    %57 = vector.broadcast %c5_i32 : i32 to vector<32x128xi32>
    %58 = arith.shrsi %56, %57 : vector<32x128xi32>
    %c31_i32 = arith.constant 31 : i32
    %59 = vector.broadcast %c31_i32 : i32 to vector<32x128xi32>
    %60 = arith.andi %56, %59 : vector<32x128xi32>
    %c7_i32 = arith.constant 7 : i32
    %61 = vector.broadcast %c7_i32 : i32 to vector<32x128xi32>
    %62 = arith.shrsi %58, %61 : vector<32x128xi32>
    %c127_i32 = arith.constant 127 : i32
    %63 = vector.broadcast %c127_i32 : i32 to vector<32x128xi32>
    %64 = arith.andi %58, %63 : vector<32x128xi32>
    %c0_i32_21 = arith.constant 0 : i32
    %65 = vector.broadcast %c0_i32_21 : i32 to vector<32x128xi32>
    %c0_22 = arith.constant 0 : index
    %c0_23 = arith.constant 0 : index
    %66 = vector.load %arg2[%c0_22, %c0_23] : memref<8x128xi32, #tpu.memory_space<vmem>>, vector<1x128xi32>
    %67 = vector.shape_cast %66 : vector<1x128xi32> to vector<1x128xi32>
    %68 = vector.broadcast %67 : vector<1x128xi32> to vector<32x128xi32>
    %69 = vector.shape_cast %64 : vector<32x128xi32> to vector<32x128x1xi32>
    %70 = vector.shape_cast %69 : vector<32x128x1xi32> to vector<32x128xi32>
    %71 = tpu.dynamic_gather %68[%70] in [1] : vector<32x128xi32>, vector<32x128xi32> -> vector<32x128xi32>
    %c0_i32_24 = arith.constant 0 : i32
    %72 = vector.broadcast %c0_i32_24 : i32 to vector<32x128xi32>
    %73 = arith.cmpi eq, %62, %72 : vector<32x128xi32>
    %74 = arith.select %73, %71, %65 : vector<32x128xi1>, vector<32x128xi32>
    %75 = arith.shrui %74, %60 : vector<32x128xi32>
    %c1_i32 = arith.constant 1 : i32
    %76 = vector.broadcast %c1_i32 : i32 to vector<32x128xi32>
    %77 = arith.andi %75, %76 : vector<32x128xi32>
    %c1_i32_25 = arith.constant 1 : i32
    %78 = vector.broadcast %c1_i32_25 : i32 to vector<32x128xi32>
    %79 = arith.cmpi eq, %77, %78 : vector<32x128xi32>
    %80 = arith.andi %46, %79 : vector<32x128xi1>
    %81 = arith.extui %80 : vector<32x128xi1> to vector<32x128xi8>
    %c0_26 = arith.constant 0 : index
    %c0_27 = arith.constant 0 : index
    %82 = vector.load %arg3[%c0_26, %c0_27] : memref<32x128xi8, #tpu.memory_space<vmem>>, vector<32x128xi8>
    tpu.vector_store %arg3[%c0_26, %c0_27], %81 {strides = array<i32>} : memref<32x128xi8, #tpu.memory_space<vmem>>, vector<32x128xi8>,
    return
  }
  func.func @transform_0(%arg0: i32) -> (i32, i32, i32) {
    %c0_i32 = arith.constant 0 : i32
    %c0_i32_0 = arith.constant 0 : i32
    %c0_i32_1 = arith.constant 0 : i32
    return %c0_i32, %arg0, %c0_i32_0 : i32, i32, i32
  }
  func.func @transform_1(%arg0: i32) -> (i32, i32) {
    %c0_i32 = arith.constant 0 : i32
    %c0_i32_0 = arith.constant 0 : i32
    %c0_i32_1 = arith.constant 0 : i32
    return %c0_i32, %c0_i32_0 : i32, i32
  }
  func.func @transform_2(%arg0: i32) -> (i32, i32) {
    %c0_i32 = arith.constant 0 : i32
    %c0_i32_0 = arith.constant 0 : i32
    return %arg0, %c0_i32 : i32, i32
  }
}

module attributes {stable_mosaic.version = 11 : i64} {
  func.func @_maskgrid_onehot_kernel(%arg0: i32, %arg1: memref<3xf32, #tpu.memory_space<smem>>, %arg2: memref<3xf32, #tpu.memory_space<smem>>, %arg3: memref<3x128xf32, #tpu.memory_space<vmem>>, %arg4: memref<4096x1xf32, #tpu.memory_space<vmem>>, %arg5: memref<1x128xi32, #tpu.memory_space<vmem>>) attributes {dimension_semantics = [#tpu.dimension_semantics<parallel>], iteration_bounds = array<i64: 2>, scalar_prefetch = 0 : i64, scratch_operands = 0 : i64, tpu.core_type = #tpu.core_type<tc>, window_params = [{transform_indices = @transform_0, window_bounds = array<i64: 3>}, {transform_indices = @transform_1, window_bounds = array<i64: 3>}, {transform_indices = @transform_2, window_bounds = array<i64: 3, 128>}, {pipeline_mode = #tpu.pipeline_mode<synchronous>, transform_indices = @transform_3, window_bounds = array<i64: 4096, 1>}, {transform_indices = @transform_4, window_bounds = array<i64: 1, 128>}]} {
    %c0 = arith.constant 0 : index
    %0 = memref.load %arg1[%c0] : memref<3xf32, #tpu.memory_space<smem>>
    %c1 = arith.constant 1 : index
    %1 = memref.load %arg1[%c1] : memref<3xf32, #tpu.memory_space<smem>>
    %c2 = arith.constant 2 : index
    %2 = memref.load %arg1[%c2] : memref<3xf32, #tpu.memory_space<smem>>
    %c0_0 = arith.constant 0 : index
    %3 = memref.load %arg2[%c0_0] : memref<3xf32, #tpu.memory_space<smem>>
    %c1_1 = arith.constant 1 : index
    %4 = memref.load %arg2[%c1_1] : memref<3xf32, #tpu.memory_space<smem>>
    %c2_2 = arith.constant 2 : index
    %5 = memref.load %arg2[%c2_2] : memref<3xf32, #tpu.memory_space<smem>>
    %c0_3 = arith.constant 0 : index
    %c0_4 = arith.constant 0 : index
    %6 = vector.load %arg3[%c0_3, %c0_4] : memref<3x128xf32, #tpu.memory_space<vmem>>, vector<1x128xf32>
    %c1_5 = arith.constant 1 : index
    %c0_6 = arith.constant 0 : index
    %7 = vector.load %arg3[%c1_5, %c0_6] : memref<3x128xf32, #tpu.memory_space<vmem>>, vector<1x128xf32>
    %c2_7 = arith.constant 2 : index
    %c0_8 = arith.constant 0 : index
    %8 = vector.load %arg3[%c2_7, %c0_8] : memref<3x128xf32, #tpu.memory_space<vmem>>, vector<1x128xf32>
    %9 = vector.broadcast %0 : f32 to vector<1x128xf32>
    %10 = arith.mulf %6, %9 : vector<1x128xf32>
    %11 = vector.broadcast %3 : f32 to vector<1x128xf32>
    %12 = arith.addf %10, %11 : vector<1x128xf32>
    %cst = arith.constant 5.000000e-01 : f32
    %13 = vector.broadcast %cst : f32 to vector<1x128xf32>
    %14 = arith.addf %12, %13 : vector<1x128xf32>
    %15 = math.floor %14 : vector<1x128xf32>
    %16 = arith.fptosi %15 : vector<1x128xf32> to vector<1x128xi32>
    %17 = vector.broadcast %1 : f32 to vector<1x128xf32>
    %18 = arith.mulf %7, %17 : vector<1x128xf32>
    %19 = vector.broadcast %4 : f32 to vector<1x128xf32>
    %20 = arith.addf %18, %19 : vector<1x128xf32>
    %cst_9 = arith.constant 5.000000e-01 : f32
    %21 = vector.broadcast %cst_9 : f32 to vector<1x128xf32>
    %22 = arith.addf %20, %21 : vector<1x128xf32>
    %23 = math.floor %22 : vector<1x128xf32>
    %24 = arith.fptosi %23 : vector<1x128xf32> to vector<1x128xi32>
    %25 = vector.broadcast %2 : f32 to vector<1x128xf32>
    %26 = arith.mulf %8, %25 : vector<1x128xf32>
    %27 = vector.broadcast %5 : f32 to vector<1x128xf32>
    %28 = arith.addf %26, %27 : vector<1x128xf32>
    %cst_10 = arith.constant 5.000000e-01 : f32
    %29 = vector.broadcast %cst_10 : f32 to vector<1x128xf32>
    %30 = arith.addf %28, %29 : vector<1x128xf32>
    %31 = math.floor %30 : vector<1x128xf32>
    %32 = arith.fptosi %31 : vector<1x128xf32> to vector<1x128xi32>
    %c0_i32 = arith.constant 0 : i32
    %33 = vector.broadcast %c0_i32 : i32 to vector<1x128xi32>
    %34 = arith.cmpi sge, %16, %33 : vector<1x128xi32>
    %c16_i32 = arith.constant 16 : i32
    %35 = vector.broadcast %c16_i32 : i32 to vector<1x128xi32>
    %36 = arith.cmpi slt, %16, %35 : vector<1x128xi32>
    %37 = arith.andi %34, %36 : vector<1x128xi1>
    %c0_i32_11 = arith.constant 0 : i32
    %38 = vector.broadcast %c0_i32_11 : i32 to vector<1x128xi32>
    %39 = arith.cmpi sge, %24, %38 : vector<1x128xi32>
    %40 = arith.andi %37, %39 : vector<1x128xi1>
    %c16_i32_12 = arith.constant 16 : i32
    %41 = vector.broadcast %c16_i32_12 : i32 to vector<1x128xi32>
    %42 = arith.cmpi slt, %24, %41 : vector<1x128xi32>
    %43 = arith.andi %40, %42 : vector<1x128xi1>
    %c0_i32_13 = arith.constant 0 : i32
    %44 = vector.broadcast %c0_i32_13 : i32 to vector<1x128xi32>
    %45 = arith.cmpi sge, %32, %44 : vector<1x128xi32>
    %46 = arith.andi %43, %45 : vector<1x128xi1>
    %c16_i32_14 = arith.constant 16 : i32
    %47 = vector.broadcast %c16_i32_14 : i32 to vector<1x128xi32>
    %48 = arith.cmpi slt, %32, %47 : vector<1x128xi32>
    %49 = arith.andi %46, %48 : vector<1x128xi1>
    %c256_i32 = arith.constant 256 : i32
    %50 = vector.broadcast %c256_i32 : i32 to vector<1x128xi32>
    %51 = arith.muli %16, %50 : vector<1x128xi32>
    %c16_i32_15 = arith.constant 16 : i32
    %52 = vector.broadcast %c16_i32_15 : i32 to vector<1x128xi32>
    %53 = arith.muli %24, %52 : vector<1x128xi32>
    %54 = arith.addi %51, %53 : vector<1x128xi32>
    %55 = arith.addi %54, %32 : vector<1x128xi32>
    %c0_i32_16 = arith.constant 0 : i32
    %c4095_i32 = arith.constant 4095 : i32
    %56 = vector.broadcast %c0_i32_16 : i32 to vector<1x128xi32>
    %57 = arith.maxsi %56, %55 : vector<1x128xi32>
    %58 = vector.broadcast %c4095_i32 : i32 to vector<1x128xi32>
    %59 = arith.minsi %58, %57 : vector<1x128xi32>
    %60 = tpu.iota {dimensions = array<i32: 0>} : vector<4096x128xi32>
    %61 = vector.broadcast %59 : vector<1x128xi32> to vector<4096x128xi32>
    %62 = arith.cmpi eq, %60, %61 : vector<4096x128xi32>
    %c0_17 = arith.constant 0 : index
    %c0_18 = arith.constant 0 : index
    %63 = vector.load %arg4[%c0_17, %c0_18] : memref<4096x1xf32, #tpu.memory_space<vmem>>, vector<4096x1xf32>
    %cst_19 = arith.constant 0.000000e+00 : f32
    %64 = vector.shape_cast %63 : vector<4096x1xf32> to vector<4096x1xf32>
    %65 = vector.broadcast %64 : vector<4096x1xf32> to vector<4096x128xf32>
    %66 = vector.broadcast %cst_19 : f32 to vector<4096x128xf32>
    %67 = arith.select %62, %65, %66 : vector<4096x128xi1>, vector<4096x128xf32>
    %cst_20 = arith.constant dense<0.000000e+00> : vector<128xf32>
    %68 = vector.multi_reduction <add>, %67, %cst_20 [0] : vector<4096x128xf32> to vector<128xf32>
    %69 = vector.shape_cast %68 : vector<128xf32> to vector<1x128xf32>
    %cst_21 = arith.constant 5.000000e-01 : f32
    %70 = vector.broadcast %cst_21 : f32 to vector<1x128xf32>
    %71 = arith.cmpf ogt, %69, %70 : vector<1x128xf32>
    %72 = arith.andi %49, %71 : vector<1x128xi1>
    %73 = arith.extui %72 : vector<1x128xi1> to vector<1x128xi32>
    %c0_22 = arith.constant 0 : index
    %c0_23 = arith.constant 0 : index
    %74 = vector.load %arg5[%c0_22, %c0_23] : memref<1x128xi32, #tpu.memory_space<vmem>>, vector<1x128xi32>
    tpu.vector_store %arg5[%c0_22, %c0_23], %73 {strides = array<i32>} : memref<1x128xi32, #tpu.memory_space<vmem>>, vector<1x128xi32>,
    return
  }
  func.func @transform_0(%arg0: i32) -> i32 {
    %c0_i32 = arith.constant 0 : i32
    %c0_i32_0 = arith.constant 0 : i32
    return %c0_i32 : i32
  }
  func.func @transform_1(%arg0: i32) -> i32 {
    %c0_i32 = arith.constant 0 : i32
    %c0_i32_0 = arith.constant 0 : i32
    return %c0_i32 : i32
  }
  func.func @transform_2(%arg0: i32) -> (i32, i32) {
    %c0_i32 = arith.constant 0 : i32
    %c0_i32_0 = arith.constant 0 : i32
    return %c0_i32, %arg0 : i32, i32
  }
  func.func @transform_3(%arg0: i32) -> (i32, i32) {
    %c0_i32 = arith.constant 0 : i32
    %c0_i32_0 = arith.constant 0 : i32
    %c0_i32_1 = arith.constant 0 : i32
    return %c0_i32, %c0_i32_0 : i32, i32
  }
  func.func @transform_4(%arg0: i32) -> (i32, i32) {
    %c0_i32 = arith.constant 0 : i32
    %c0_i32_0 = arith.constant 0 : i32
    return %c0_i32, %arg0 : i32, i32
  }
}

</mosaic_0001>

<bundles_post_ra>
// kernel: tpu_custom_call.1
= control target key start
LH: loop header
LB: loop body
LE: loop exit
PB: predicated region body
PF: predicated region fallthrough
CT: control target
= control target key end

     0   :  { %7 = vsyncpa [#allocation3], 0  ;;  %s562_s0 = inlined_call_operand.hbm [shape: f32[3,32,128], index: 0, kind: input, shape index: {}]   ;;  %s563_s1 = inlined_call_operand.hbm [shape: s32[8,128], index: 1, kind: input, shape index: {}]   ;;  %s564_s2 = inlined_call_operand.hbm [shape: s8[32,128], index: 2, kind: output, shape index: {}]  }
   0x1   :  { %8 = vsyncpa [#allocation6], 0 }
   0x2   :  { %9 = vsyncpa [#allocation4], 0  ;;  %s376_s9 = smov [#allocation2]   ;;  %s304_s13 = scalar_lea.hbm %s562_s0, 1536 }
   0x3   :  { %s15_s10 = sshll.u32 %s376_s9, 4  ;;  %p305_p0 = scmp.ne.s32.totalorder %s562_s0, %s304_s13  ;;  %s16_s10 = int_to_ptr.vmem [resolvable:$true] %s15_s10 }
   0x4   :  { %p308_p1 = scmp.lt.u32.totalorder %s304_s13, %s562_s0 }
   0x6   :  { %p310_p2 = pnand %p308_p1, %p305_p0 }
   0x8   :  { %313 = shalt.err (!%p310_p2)
}
   0x9   :  { %s314_s18 = scalar_lea.vmem %s16_s10, 1536  ;;  %p319_p4 = scmp.lt.s32.totalorder %s16_s10, %s16_s10 }
   0xa   :  { %p315_p3 = scmp.ne.s32.totalorder %s16_s10, %s314_s18  ;;  %p320_p5 = scmp.lt.s32.totalorder %s314_s18, %s314_s18 }
   0xc   :  { %p321_p6 = por %p320_p5, %p319_p4 }
   0xe   :  { %p322_p7 = pnand %p321_p6, %p315_p3 }
  0x10   :  { %325 = shalt.err (!%p322_p7)
}
  0x11   :  { %s377_s19 = smov 128   ;;  %s378_s20 = smov 8  }
  0x12   :  { %21 = dma.hbm_to_vmem [thread:$0]  %s562_s0, 1536, %s16_s10, [#allocation3], %s377_s19, %s377_s19, %s378_s20  }
  0x13   :  { %s379_s23 = smov [#allocation5]   ;;  %s326_s27 = scalar_lea.hbm %s563_s1, 128 }
  0x14   :  { %s28_s24 = sshll.u32 %s379_s23, 4  ;;  %p327_p8 = scmp.ne.s32.totalorder %s563_s1, %s326_s27  ;;  %s29_s24 = int_to_ptr.vmem [resolvable:$true] %s28_s24 }
  0x15   :  { %p330_p9 = scmp.lt.u32.totalorder %s326_s27, %s563_s1 }
  0x17   :  { %p332_p10 = pnand %p330_p9, %p327_p8 }
  0x19   :  { %335 = shalt.err (!%p332_p10)
}
  0x1a   :  { %s336_s4 = scalar_lea.vmem %s29_s24, 128  ;;  %p341_p12 = scmp.lt.s32.totalorder %s29_s24, %s29_s24 }
  0x1b   :  { %p337_p11 = scmp.ne.s32.totalorder %s29_s24, %s336_s4  ;;  %p342_p13 = scmp.lt.s32.totalorder %s336_s4, %s336_s4 }
  0x1d   :  { %p343_p0 = por %p342_p13, %p341_p12 }
  0x1f   :  { %p344_p1 = pnand %p343_p0, %p337_p11 }
  0x21   :  { %347 = shalt.err (!%p344_p1)
}
  0x22   :  { %31 = dma.hbm_to_vmem [thread:$0]  %s563_s1, 128, %s29_s24, [#allocation6]  }
  0x23   :  { %370 = dma.done.wait [#allocation3], 1536  }
  0x24   :  { %371 = vsyncadd [#allocation3], 4294965760 }
  0x25   :  { %372 = dma.done.wait [#allocation6], 128  }
  0x26   :  { %373 = vsyncadd [#allocation6], 4294967168  ;;  %v42_v0 = vld [vmem:[#allocation2 + $0x10] sm:$0xff]  ;;  %v40_v6 = vld [vmem:[#allocation2] sm:$0xff]  ;;  %s380_s1 = smov [#allocation7]  }
  0x27   :  { %v47_v1 = vld [vmem:[#allocation2 + $0x30] sm:$0xff]  ;;  %v56_v3 = vmul.f32 7.5, %v42_v0  ;;  %v45_v7 = vld [vmem:[#allocation2 + $0x20] sm:$0xff]  ;;  %v54_v9 = vmul.f32 7.5, %v40_v6  ;;  %v43_v12 = vld [vmem:[#allocation2 + $0x18] sm:$0xff]  ;;  %s258_s6 = sshll.u32 %s380_s1, 4  ;;  %s259_s6 = int_to_ptr.vmem [resolvable:$true] %s258_s6 }
  0x28   :  { %v52_v2 = vld [vmem:[#allocation2 + $0x50] sm:$0xff]  ;;  %v76_v4 = vmul.f32 7.5, %v47_v1  ;;  %v50_v8 = vld [vmem:[#allocation2 + $0x40] sm:$0xff]  ;;  %v74_v10 = vmul.f32 7.5, %v45_v7  ;;  %v48_v16 = vld [vmem:[#allocation2 + $0x38] sm:$0xff]  ;;  %v57_v17 = vmul.f32 7.5, %v43_v12  ;;  %p353_p3 = scmp.lt.s32.totalorder %s259_s6, %s259_s6 }
  0x29   :  { %v96_v5 = vmul.f32 7.5, %v52_v2  ;;  %v94_v11 = vmul.f32 7.5, %v50_v8  ;;  %v60_v13 = vadd.f32 7.5, %v56_v3  ;;  %v58_v18 = vadd.f32 7.5, %v54_v9  ;;  %v53_v44 = vld [vmem:[#allocation2 + $0x58] sm:$0xff]  ;;  %v41_v46 = vld [vmem:[#allocation2 + $0x8] sm:$0xff] }
  0x2a   :  { %v80_v14 = vadd.f32 7.5, %v76_v4  ;;  %v78_v19 = vadd.f32 7.5, %v74_v10  ;;  %v77_v21 = vmul.f32 7.5, %v48_v16  ;;  %v61_v25 = vadd.f32 7.5, %v57_v17  ;;  %v46_v51 = vld [vmem:[#allocation2 + $0x28] sm:$0xff]  ;;  %s348_s7 = scalar_lea.vmem %s259_s6, 128 }
  0x2b   :  { %v100_v15 = vadd.f32 7.5, %v96_v5  ;;  %v98_v20 = vadd.f32 7.5, %v94_v11  ;;  %v64_v22 = vadd.f32 0.5, %v60_v13  ;;  %v62_v26 = vadd.f32 0.5, %v58_v18  ;;  %v51_v52 = vld [vmem:[#allocation2 + $0x48] sm:$0xff]  ;;  %p349_p2 = scmp.ne.s32.totalorder %s259_s6, %s348_s7  ;;  %p354_p4 = scmp.lt.s32.totalorder %s348_s7, %s348_s7 }
  0x2c   :  { %v84_v23 = vadd.f32 0.5, %v80_v14  ;;  %v82_v27 = vadd.f32 0.5, %v78_v19  ;;  %v81_v29 = vadd.f32 7.5, %v77_v21  ;;  %v65_v33 = vadd.f32 0.5, %v61_v25 }
  0x2d   :  { %v104_v24 = vadd.f32 0.5, %v100_v15  ;;  %v102_v28 = vadd.f32 0.5, %v98_v20  ;;  %v68_v30 = vfloor.f32 %v64_v22  ;;  %v66_v34 = vfloor.f32 %v62_v26  ;;  %p355_p5 = por %p354_p4, %p353_p3 }
  0x2e   :  { %v88_v31 = vfloor.f32 %v84_v23  ;;  %v86_v35 = vfloor.f32 %v82_v27  ;;  %v85_v37 = vadd.f32 0.5, %v81_v29  ;;  %v69_v41 = vfloor.f32 %v65_v33 }
  0x2f   :  { %v108_v32 = vfloor.f32 %v104_v24  ;;  %v106_v36 = vfloor.f32 %v102_v28  ;;  %v273_v38 = vtrunc.f32 %v68_v30  ;;  %v269_v42 = vtrunc.f32 %v66_v34  ;;  %p356_p6 = pnand %p355_p5, %p349_p2 }
  0x30   :  { %v281_v39 = vtrunc.f32 %v88_v31  ;;  %v277_v43 = vtrunc.f32 %v86_v35  ;;  %v89_v45 = vfloor.f32 %v85_v37  ;;  %v275_v50 = vtrunc.f32 %v69_v41 }
  0x31   :  { %v289_v40 = vtrunc.f32 %v108_v32  ;;  %v421_v47 = vcvt.f32.s32 %v273_v38  ;;  %v285_v49 = vtrunc.f32 %v106_v36  ;;  %v427_v54 = vcvt.f32.s32 %v269_v42 }
  0x32   :  { %v423_v48 = vcvt.f32.s32 %v281_v39  ;;  %v429_v55 = vcvt.f32.s32 %v277_v43  ;;  %v283_v56 = vtrunc.f32 %v89_v45  ;;  %v432_v58 = vcvt.f32.s32 %v275_v50 }
  0x33   :  { %v425_v53 = vcvt.f32.s32 %v289_v40  ;;  %v160_v57 = vmul.u32 16, %v421_v47  ;;  %v97_v59 = vmul.f32 7.5, %v53_v44  ;;  %v55_v60 = vmul.f32 7.5, %v41_v46  ;;  %v268_v44 = vld [vmem:[#allocation5] ss:$0 sm:$0xff] }
  0x34   :  { %v158_v61 = vmul.u32 16, %v427_v54  ;;  %v435_v62 = vcvt.f32.s32 %v283_v56  ;;  %v75_v63 = vmul.f32 7.5, %v46_v51  ;;  %v95_v0 = vmul.f32 7.5, %v51_v52 }
  0x35   :  { %v164_v1 = vadd.s32 %v423_v48, %v160_v57  ;;  %v101_v2 = vadd.f32 7.5, %v97_v59  ;;  %v161_v3 = vmul.u32 16, %v432_v58  ;;  %v59_v4 = vadd.f32 7.5, %v55_v60 }
  0x36   :  { %v439_v5 = vcvt.f32.s32 %v285_v49  ;;  %v162_v6 = vadd.s32 %v429_v55, %v158_v61  ;;  %v79_v7 = vadd.f32 7.5, %v75_v63  ;;  %v99_v8 = vadd.f32 7.5, %v95_v0 }
  0x37   :  { %v168_v9 = vmul.u32 16, %v164_v1  ;;  %v105_v10 = vadd.f32 0.5, %v101_v2  ;;  %v165_v11 = vadd.s32 %v435_v62, %v161_v3  ;;  %v63_v12 = vadd.f32 0.5, %v59_v4 }
  0x38   :  { %v166_v13 = vmul.u32 16, %v162_v6  ;;  %v83_v14 = vadd.f32 0.5, %v79_v7  ;;  %v103_v15 = vadd.f32 0.5, %v99_v8  ;;  %vm128_vm6 = vcmp.ge.s32.totalorder %v423_v48, 0 }
  0x39   :  { %v172_v16 = vadd.s32 %v425_v53, %v168_v9  ;;  %v109_v17 = vfloor.f32 %v105_v10  ;;  %v67_v18 = vfloor.f32 %v63_v12  ;;  %v169_v23 = vmul.u32 16, %v165_v11 }
  0x3a   :  { %v170_v19 = vadd.s32 %v439_v5, %v166_v13  ;;  %v87_v20 = vfloor.f32 %v83_v14  ;;  %v107_v21 = vfloor.f32 %v103_v15  ;;  %vm136_vm7 = vcmp.lt.s32.totalorder %v423_v48, 16 }
  0x3b   :  { %vm178_vm0 = vcmp.gt.s32.totalorder %v172_v16, 0  ;;  %v291_v22 = vtrunc.f32 %v109_v17  ;;  %v271_v24 = vtrunc.f32 %v67_v18  ;;  %vm116_vm8 = vcmp.ge.s32.totalorder %v421_v47, 0 }
  0x3c   :  { %v179_v25 = vsel %vm178_vm0, %v172_v16, 0  ;;  %vm174_vm1 = vcmp.gt.s32.totalorder %v170_v19, 0  ;;  %v279_v26 = vtrunc.f32 %v87_v20  ;;  %v287_v27 = vtrunc.f32 %v107_v21 }
  0x3d   :  { %vm186_vm2 = vcmp.lt.s32.totalorder %v179_v25, 4095  ;;  %v175_v28 = vsel %vm174_vm1, %v170_v19, 0  ;;  %v445_v29 = vcvt.f32.s32 %v291_v22  ;;  %v447_v30 = vcvt.f32.s32 %v271_v24 }
  0x3e   :  { %v449_v31 = vsel %vm186_vm2, %v179_v25, 4095  ;;  %vm182_vm3 = vcmp.lt.s32.totalorder %v175_v28, 4095  ;;  %v451_v32 = vcvt.f32.s32 %v279_v26  ;;  %v461_v39 = vcvt.f32.s32 %v287_v27 }
  0x3f   :  { %v192_v33 = vshra.s32 %v449_v31, 5  ;;  %v454_v34 = vsel %vm182_vm3, %v175_v28, 4095  ;;  %v173_v35 = vadd.s32 %v445_v29, %v169_v23  ;;  %v159_v36 = vmul.u32 16, %v447_v30 }
  0x40   :  { %v190_v37 = vshra.s32 %v454_v34, 5  ;;  %vm120_vm9 = vcmp.lt.s32.totalorder %v421_v47, 16  ;;  %vm144_vm11 = vcmp.ge.s32.totalorder %v425_v53, 0  ;;  %vm152_vm13 = vcmp.lt.s32.totalorder %v425_v53, 16 }
  0x41   :  { %v204_v38 = vand.u32 127, %v192_v33  ;;  %vm180_vm4 = vcmp.gt.s32.totalorder %v173_v35, 0  ;;  %v163_v40 = vadd.s32 %v451_v32, %v159_v36  ;;  %vm124_vm12 = vmand %vm116_vm8, %vm120_vm9  ;;  %v566_v52 = vmov 0 }
  0x42   :  { %v202_v41 = vand.u32 127, %v190_v37  ;;  %v181_v42 = vsel %vm180_vm4, %v173_v35, 0  ;;  %vm132_vm14 = vmand %vm124_vm12, %vm128_vm6  ;;  %vm114_vm3 = vcmp.ge.s32.totalorder %v427_v54, 0  ;;  %vm118_vm4 = vcmp.lt.s32.totalorder %v427_v54, 16 }
  0x43   :  { %301 = vset.pattern.permute.xlu1 %v204_v38  ;;  %vm188_vm5 = vcmp.lt.s32.totalorder %v181_v42, 4095  ;;  %v167_v43 = vmul.u32 16, %v163_v40  ;;  %vm140_vm0 = vmand %vm132_vm14, %vm136_vm7  ;;  %vm134_vm6 = vcmp.lt.s32.totalorder %v429_v55, 16  ;;  %vm142_vm7 = vcmp.ge.s32.totalorder %v439_v5, 0 }
  0x44   :  { %299 = vset.pattern.permute.xlu0 %v202_v41  ;;  %v466_v45 = vsel %vm188_vm5, %v181_v42, 4095  ;;  %vm148_vm1 = vmand %vm140_vm0, %vm144_vm11  ;;  %vm126_vm5 = vcmp.ge.s32.totalorder %v429_v55, 0  ;;  %vm150_vm9 = vcmp.lt.s32.totalorder %v439_v5, 16  ;;  %vm117_vm12 = vcmp.ge.s32.totalorder %v432_v58, 0 }
  0x45   :  { %v193_v46 = vshra.s32 %v466_v45, 5  ;;  %v171_v49 = vadd.s32 %v461_v39, %v167_v43  ;;  %vm481_vm2 = vmand %vm148_vm1, %vm152_vm13  ;;  %vm121_vm13 = vcmp.lt.s32.totalorder %v432_v58, 16  ;;  %v568_v54 = vmov 0 }
  0x46   :  { %v567_v52 = vsel %vm481_vm2, 4294967295, %v566_v52  ;;  %vm122_vm8 = vmand %vm114_vm3, %vm118_vm4  ;;  %vm137_vm1 = vcmp.lt.s32.totalorder %v435_v62, 16  ;;  %vm145_vm4 = vcmp.ge.s32.totalorder %v445_v29, 0  ;;  %v200_v57 = vshra.s32 %v192_v33, 7 }
  0x47   :  { %218 = vperm.xlu1 %301, %v268_v44   ;;  %v205_v50 = vand.u32 127, %v193_v46  ;;  %vm176_vm10 = vcmp.gt.s32.totalorder %v171_v49, 0  ;;  %vm125_vm3 = vmand %vm117_vm12, %vm121_vm13  ;;  %vm135_vm12 = vcmp.lt.s32.totalorder %v451_v32, 16  ;;  %v198_v58 = vshra.s32 %v190_v37, 7 }
  0x48   :  { %212 = vperm.xlu0 %299, %v268_v44   ;;  %v177_v51 = vsel %vm176_vm10, %v171_v49, 0  ;;  %vm130_vm10 = vmand %vm122_vm8, %vm126_vm5  ;;  %vm153_vm8 = vcmp.lt.s32.totalorder %v445_v29, 16  ;;  %v196_v59 = vand.u32 31, %v449_v31  ;;  %v194_v60 = vand.u32 31, %v454_v34 }
  0x49   :  { %vm184_vm15 = vcmp.lt.s32.totalorder %v177_v51, 4095  ;;  %vm138_vm11 = vmand %vm130_vm10, %vm134_vm6  ;;  %vm115_vm10 = vcmp.ge.s32.totalorder %v447_v30, 0  ;;  %v201_v2 = vshra.s32 %v193_v46, 7  ;;  %v197_v7 = vand.u32 31, %v466_v45 }
  0x4a   :  { %v478_v48 = vsel %vm184_vm15, %v177_v51, 4095  ;;  %vm146_vm14 = vmand %vm138_vm11, %vm142_vm7  ;;  %vm129_vm15 = vcmp.ge.s32.totalorder %v435_v62, 0  ;;  %vm119_vm7 = vcmp.lt.s32.totalorder %v447_v30, 16  ;;  %v381_v19 = vmov 0  }
  0x4b   :  { %302 = vset.pattern.permute.xlu1 %v205_v50  ;;  %v191_v47 = vshra.s32 %v478_v48, 5  ;;  %vm494_vm0 = vmand %vm146_vm14, %vm150_vm9  ;;  %vm127_vm9 = vcmp.ge.s32.totalorder %v451_v32, 0  ;;  %v195_v13 = vand.u32 31, %v478_v48 }
  0x4c   :  { %v569_v54 = vsel %vm494_vm0, 4294967295, %v568_v54  ;;  %vm133_vm5 = vmand %vm125_vm3, %vm129_vm15  ;;  %vm143_vm15 = vcmp.ge.s32.totalorder %v461_v39, 0  ;;  %vm151_vm0 = vcmp.lt.s32.totalorder %v461_v39, 16 }
  0x4d   :  { %v203_v53 = vand.u32 127, %v191_v47  ;;  %vm141_vm6 = vmand %vm133_vm5, %vm137_vm1  ;;  %v199_v8 = vshra.s32 %v191_v47, 7 }
  0x4e   :  { %vm149_vm11 = vmand %vm141_vm6, %vm145_vm4  ;;  %vm225_vm4 = vcmp.eq.s32.totalorder %v200_v57, 0  ;;  %vm226_vm6 = vcmp.eq.s32.totalorder %v201_v2, 0 }
  0x4f   :  { %300 = vset.pattern.permute.xlu0 %v203_v53  ;;  %221 = vperm.xlu1 %302, %v268_v44   ;;  %vm504_vm14 = vmand %vm149_vm11, %vm153_vm8  ;;  %vm223_vm8 = vcmp.eq.s32.totalorder %v198_v58, 0 }
  0x50   :  { %vm123_vm13 = vmand %vm115_vm10, %vm119_vm7  ;;  %vm576_vm10 = vnez %v567_v52 }
  0x51   :  { %vm131_vm3 = vmand %vm123_vm13, %vm127_vm9  ;;  %vm579_vm9 = vnez %v569_v54  ;;  %vm224_vm13 = vcmp.eq.s32.totalorder %v199_v8, 0 }
  0x52   :  { %vm139_vm1 = vmand %vm131_vm3, %vm135_vm12 }
  0x53   :  { %215 = vperm.xlu0 %300, %v268_v44   ;;  %vm147_vm5 = vmand %vm139_vm1, %vm143_vm15 }
  0x54   :  { %vm511_vm2 = vmand %vm147_vm5, %vm151_vm0 }
  0x57   :  { %303 = vset.pattern.permute.xlu0 %v205_v50 }
  0xc6   :  { %v219_v61 = vpop.permute.xlu1 %218 }
  0xc7   :  { %v229_v62 = vsel %vm225_vm4, %v219_v61, 0  ;;  %v213_v63 = vpop.permute.xlu0 %212 }
  0xc8   :  { %v233_v0 = vshrl.u32 %v229_v62, %v196_v59  ;;  %v227_v1 = vsel %vm223_vm8, %v213_v63, 0 }
  0xc9   :  { %v231_v3 = vshrl.u32 %v227_v1, %v194_v60 }
  0xca   :  { %v237_v4 = vand.u32 1, %v233_v0 }
  0xcb   :  { %v235_v5 = vand.u32 1, %v231_v3 }
  0xcc   :  { %vm523_vm0 = vcmp.eq.s32.totalorder %v237_v4, 1 }
  0xcd   :  { %vm245_vm7 = vmand %vm576_vm10, %vm523_vm0  ;;  %vm532_vm11 = vcmp.eq.s32.totalorder %v235_v5, 1 }
  0xce   :  { %vm243_vm12 = vmand %vm579_vm9, %vm532_vm11  ;;  %v222_v10 = vpop.permute.xlu1 %221 }
  0xcf   :  { %v230_v11 = vsel %vm226_vm6, %v222_v10, 0 }
  0xd0   :  { %v234_v12 = vshrl.u32 %v230_v11, %v197_v7 }
  0xd2   :  { %v238_v14 = vand.u32 1, %v234_v12  ;;  %v216_v15 = vpop.permute.xlu0 %215 }
  0xd3   :  { %v228_v16 = vsel %vm224_vm13, %v216_v15, 0 }
  0xd4   :  { %vm242_vm15 = vcmp.eq.s32.totalorder %v238_v14, 1  ;;  %v232_v17 = vshrl.u32 %v228_v16, %v195_v13 }
  0xd5   :  { %vm246_vm3 = vmand %vm504_vm14, %vm242_vm15 }
  0xd6   :  { %vm248_vm1 = vmpackc.low %vm246_vm3, %vm245_vm7  ;;  %v236_v18 = vand.u32 1, %v232_v17 }
  0xd8   :  { %vm240_vm5 = vcmp.eq.s32.totalorder %v236_v18, 1 }
  0xd9   :  { %vm244_vm4 = vmand %vm511_vm2, %vm240_vm5 }
  0xda   :  { %vm247_vm8 = vmpackc.low %vm244_vm4, %vm243_vm12 }
  0xdb   :  { %vm249_vm0 = vmpackc.even %vm248_vm1, %vm247_vm8 }
  0xdc   :  { %v250_v20 = vsel %vm249_vm0, 16843009, %v381_v19 }
  0xdd   :  { %251 = vst [vmem:[#allocation7] sm:$0xff] %v250_v20 }
  0xde   :  { %359 = shalt.err (!%p356_p6)
}
  0xdf   :  { %s360_s10 = scalar_lea.hbm %s564_s2, 128 }
  0xe0   :  { %p361_p7 = scmp.ne.s32.totalorder %s564_s2, %s360_s10  ;;  %p364_p8 = scmp.lt.u32.totalorder %s360_s10, %s564_s2 }
  0xe2   :  { %p366_p9 = pnand %p364_p8, %p361_p7 }
  0xe4   :  { %369 = shalt.err (!%p366_p9)
}
  0xe5   :  { %261 = dma.vmem_to_hbm [thread:$0]  %s259_s6, 128, %s564_s2, [#allocation4]  }
  0xe6   :  { %374 = dma.done.wait [#allocation4], 128  }
  0xe7   :  { %375 = vsyncadd [#allocation4], 4294967168 }
  0xe8   :  { %265 = vsyncpa [#allocation3], 1 }
  0xe9   :  { %266 = vsyncpa [#allocation6], 1 }
  0xea   :  { %267 = vsyncpa [#allocation4], 1 }

// kernel: tpu_custom_call.1
= control target key start
LH: loop header
LB: loop body
LE: loop exit
PB: predicated region body
PF: predicated region fallthrough
CT: control target
= control target key end

     0   :  { %9 = vsyncpa [#allocation4], 0  ;;  %s8426_s0 = inlined_call_operand.vmem [shape: f32[3], index: 0, kind: input, shape index: {}]   ;;  %s8427_s1 = inlined_call_operand.vmem [shape: f32[3], index: 1, kind: input, shape index: {}]   ;;  %s8428_s2 = inlined_call_operand.vmem [shape: f32[3,256], index: 2, kind: input, shape index: {}]   ;;  %s8429_s3 = inlined_call_operand.vmem [shape: f32[4096,1], index: 3, kind: input, shape index: {}]   ;;  %s8430_s4 = inlined_call_operand.hbm [shape: s32[1,256], index: 4, kind: output, shape index: {}]  }
   0x1   :  { %10 = vsyncpa [#allocation6], 0 }
   0x2   :  { %11 = vsyncpa [#allocation3], 0 }
   0x3   :  { %13 = vsyncpa [#allocation3 + $0x1], 0  ;;  %s5708_s15 = smov 0   ;;  %s5710_s16 = smov 0  }
   0x4   :  { %s5712_s17 = smov 0   ;;  %s5714_s18 = smov 0  }
   0x5 LB: > { %s5729_s19 = sadd.s32 4294967295, %s5677_s18   ;;  %s5492_s20 = sadd.s32 4294967294, %s5677_s18   ;;  %s5677_s18 = sphi %s5714_s18, %s8448_s18   ;;  %s5673_s17 = sphi %s5712_s17, %s8447_s17   ;;  %s5669_s16 = sphi %s5710_s16, %s8446_s16   ;;  %s5665_s15 = sphi %s5708_s15, %s8445_s15  }
   0x6   : > { %s5733_s21 = sadd.s32 1, %s5677_s18   ;;  %s115_s22 = sadd.s32 1, %s5673_s17 }
   0x7   : > { %s112_s23 = ssub.s32 %s5677_s18, %s5733_s21  ;;  %p125_p0 = scmp.ne.s32.totalorder %s5673_s17, %s5669_s16 }
   0x8   : > { %p113_p1 = scmp.eq.s32.totalorder %s112_s23, 0  ;;  %p126_p2 = scmp.eq.s32.totalorder %s5729_s19, 1 }
   0x9   : > { %p131_p3 = scmp.ne.s32.totalorder %s5669_s16, %s5665_s15  ;;  %p132_p4 = scmp.eq.s32.totalorder %s5492_s20, 1 }
   0xa   : > { %s5744_s24 = scalar_select %p113_p1, %s5673_s17, %s115_s22  }
   0xb   : > { %p5746_p5 = por %p126_p2, %p125_p0  ;;  %p5750_p6 = por %p132_p4, %p131_p3 }
   0xc   : > { %p5493_p7 = scmp.ge.s32.totalorder %s5677_s18, 1  ;;  %p139_p8 = scmp.lt.s32.totalorder %s5677_s18, 3 }
   0xd   : > { %s8434_s25 = scalar_select %p5746_p5, 1, 0 }
   0xe   : > { %s8435_s26 = scalar_select %p5750_p6, 1, 0 }
   0xf   : > { %p8431_p9 = scmp.eq.s32.totalorder %s5729_s19, 0  ;;  %p5757_p10 = pnand %p5493_p7, %p139_p8 }
  0x10   : > { %s152_s30 = sshll.u32 %s8426_s0, 4  ;;  %s163_s7 = sshll.u32 %s8427_s1, 4  ;;  %s153_s30 = int_to_ptr.vmem [resolvable:$true] %s152_s30  ;;  %s164_s7 = int_to_ptr.vmem [resolvable:$true] %s163_s7 }
  0x11   : > { %s8436_s27 = scalar_select %p5757_p10, 1, 0 }
  0x12   : > { %p5524_p11 = pneg %p5757_p10  ;;  %s5577_s9 = scalar_lea.vmem %s153_s30, 16 }
  0x13   : > { %p5578_p13 = scmp.ne.s32.totalorder %s153_s30, %s5577_s9  ;;  %p5585_p3 = scmp.lt.s32.totalorder %s153_s30, %s153_s30 }
  0x14   : > { %p5771_p12 = pnand %p8431_p9, %p5524_p11  ;;  %p5586_p4 = scmp.lt.s32.totalorder %s5577_s9, %s5577_s9 }
  0x16   : > { %p5579_p0 = pneg %p5771_p12  ;;  %p5587_p7 = por %p5586_p4, %p5585_p3 }
  0x18   : > { %p5580_p1 = pnand %p5579_p0, %p5578_p13 }
  0x1a   : > { %p5581_p2 = pneg %p5580_p1 }
  0x1c   : > { %p5588_p8 = pnand %p5587_p7, %p5581_p2 }
  0x1e   : > { %5591 = shalt.err (!%p5588_p8)
}
  0x1f   : > { %s5679_s10 = smov [#allocation2]   ;;  %s5592_s11 = scalar_lea.vmem %s164_s7, 16 }
  0x20   : > { %5527 = dma.vmem_to_smem (!%p5771_p12), %s153_s30, 16, %s5679_s10, [#allocation4]  }
  0x21   : > { %p5593_p11 = scmp.ne.s32.totalorder %s164_s7, %s5592_s11  ;;  %p5600_p5 = scmp.lt.s32.totalorder %s164_s7, %s164_s7 }
  0x22   : > { %p5601_p10 = scmp.lt.s32.totalorder %s5592_s11, %s5592_s11 }
  0x23   : > { %p5595_p9 = pnand %p5593_p11, %p5579_p0 }
  0x24   : > { %p5602_p13 = por %p5601_p10, %p5600_p5 }
  0x25   : > { %p5596_p6 = pneg %p5595_p9 }
  0x27   : > { %p5603_p1 = pnand %p5602_p13, %p5596_p6 }
  0x29   : > { %5606 = shalt.err (!%p5603_p1)
}
  0x2a   : > { %s5680_s12 = smov [#allocation5]   ;;  %p8438_p2 = scmp.ne.s32.totalorder %s8436_s27, 0 }
  0x2b   : > { %5530 = dma.vmem_to_smem (!%p5771_p12), %s164_s7, 16, %s5680_s12, [#allocation6]  }
  0x2c   : > { %186 = sbr.rel (%p8438_p2) target bundleno = 1244 (0x4dc), region = 36  ;;  %p8439_p3 = scmp.eq.s32.totalorder (!%p8438_p2), %s5729_s19, 0 }
  0x33   : > { %5652 = dma.done.wait (%p8439_p3), [#allocation4], 16   ;;  %p8440_p4 = pmov %p8439_p3 }
  0x34   : > { %p8441_p9 = pmov %p8439_p3 }
  0x35   : > { %5654 = vsyncadd (%p8440_p4), [#allocation4], 4294967280 }
  0x36   : > { %5656 = dma.done.wait (%p8441_p9), [#allocation6], 16   ;;  %p8442_p5 = pmov %p8439_p3 }
  0x38   : > { %5658 = vsyncadd (%p8442_p5), [#allocation6], 4294967280 }
  0x39   : > { %196 = sfence }
  0x3a   : > { %v1299_v0 = vld [vmem:[%s8429_s3 + $0x10] sm:$0xff]  ;;  %v1297_v1 = vld [vmem:[%s8429_s3] sm:$0xff]  ;;  %v5681_v2 = vmov 0   ;;  %v1300_v3 = vld [vmem:[%s8429_s3 + $0x18] sm:$0xff]  ;;  %p215_p6 = scmp.lt.s32.totalorder %s5729_s19, 1  ;;  %s219_s27 = sld [smem:[#allocation2]] }
  0x3b   : > { %5576 = vset.pattern.permute.xlu1 %v5681_v2  ;;  %5575 = vset.pattern.permute.xlu0 %v5681_v2  ;;  %v1298_v4 = vld [vmem:[%s8429_s3 + $0x8] sm:$0xff]  ;;  %v1301_v6 = vld [vmem:[%s8429_s3 + $0x20] sm:$0xff]  ;;  %v1304_v7 = vld [vmem:[%s8429_s3 + $0x38] sm:$0xff]  ;;  %s5501_s28 = sld [smem:[#allocation2 + $0x1]]  ;;  %s222_s8 = sld [smem:[#allocation5]] }
  0x3c   : > { %1821 = vperm.xlu1 %5576, %v1299_v0   ;;  %1811 = vperm.xlu0 %5575, %v1297_v1   ;;  %v1302_v5 = vld [vmem:[%s8429_s3 + $0x28] sm:$0xff]  ;;  %v1303_v8 = vld [vmem:[%s8429_s3 + $0x30] sm:$0xff]  ;;  %v1305_v10 = vld [vmem:[%s8429_s3 + $0x40] sm:$0xff]  ;;  %s216_s13 = scalar_select %p215_p6, %s5729_s19, 1 }
  0x3d   : > { %v1306_v9 = vld [vmem:[%s8429_s3 + $0x48] sm:$0xff]  ;;  %v1308_v11 = vld [vmem:[%s8429_s3 + $0x58] sm:$0xff]  ;;  %v1307_v12 = vld [vmem:[%s8429_s3 + $0x50] sm:$0xff]  ;;  %s5503_s9 = sld [smem:[#allocation5 + $0x1]]  ;;  %s5502_s23 = sld [smem:[#allocation2 + $0x2]] }
  0x3e   : > { %v1310_v13 = vld [vmem:[%s8429_s3 + $0x68] sm:$0xff]  ;;  %v1309_v14 = vld [vmem:[%s8429_s3 + $0x60] sm:$0xff]  ;;  %v1312_v15 = vld [vmem:[%s8429_s3 + $0x78] sm:$0xff]  ;;  %s5500_s29 = sshll.u32 %s216_s13, 2  ;;  %s5504_s7 = sld [smem:[#allocation5 + $0x2]] }
  0x3f   : > { %v1311_v16 = vld [vmem:[%s8429_s3 + $0x70] sm:$0xff]  ;;  %v1314_v17 = vld [vmem:[%s8429_s3 + $0x88] sm:$0xff]  ;;  %v1313_v18 = vld [vmem:[%s8429_s3 + $0x80] sm:$0xff]  ;;  %s218_s12 = scalar_lea.vmem %s8428_s2, %s5500_s29  ;;  %s213_s20 = sand.u32 1, %s5669_s16  }
  0x40   : > { %1826 = vperm.xlu1 %5576, %v1300_v3   ;;  %1816 = vperm.xlu0 %5575, %v1298_v4   ;;  %v1316_v19 = vld [vmem:[%s8429_s3 + $0x98] sm:$0xff]  ;;  %v1315_v20 = vld [vmem:[%s8429_s3 + $0x90] sm:$0xff]  ;;  %v1318_v21 = vld [vmem:[%s8429_s3 + $0xa8] sm:$0xff]  ;;  %v228_v43 = vstv %s219_s27  ;;  %s5403_s30 = scalar_lea.sflag [#allocation3], %s213_s20  ;;  %p8443_p12 = scmp.ne.s32.totalorder %s8434_s25, 0 }
  0x41   : > { %v1317_v22 = vld [vmem:[%s8429_s3 + $0xa0] sm:$0xff]  ;;  %v1320_v23 = vld [vmem:[%s8429_s3 + $0xb8] sm:$0xff]  ;;  %v1319_v24 = vld [vmem:[%s8429_s3 + $0xb0] sm:$0xff]  ;;  %v235_v44 = vstv %s5501_s28 }
  0x42   : > { %v1322_v25 = vld [vmem:[%s8429_s3 + $0xc8] sm:$0xff]  ;;  %v1321_v26 = vld [vmem:[%s8429_s3 + $0xc0] sm:$0xff]  ;;  %v1324_v27 = vld [vmem:[%s8429_s3 + $0xd8] sm:$0xff]  ;;  %v230_v49 = vstv %s222_s8  ;;  %s5505_s8 = sshll.u32 %s5729_s19, 4  ;;  %s5682_s19 = smov [#allocation7]  }
  0x43   : > { %v1323_v28 = vld [vmem:[%s8429_s3 + $0xd0] sm:$0xff]  ;;  %v1326_v29 = vld [vmem:[%s8429_s3 + $0xe8] sm:$0xff]  ;;  %v1325_v30 = vld [vmem:[%s8429_s3 + $0xe0] sm:$0xff]  ;;  %v237_v50 = vstv %s5503_s9  ;;  %s214_s9 = scalar_lea.vmem [#allocation7], %s213_s20  ;;  %s5611_s29 = sshll.u32 %s5682_s19, 4  ;;  %s5612_s29 = int_to_ptr.vmem [resolvable:$false] %s5611_s29 }
  0x44   : > { %1836 = vperm.xlu1 %5576, %v1302_v5   ;;  %1831 = vperm.xlu0 %5575, %v1301_v6   ;;  %v1328_v31 = vld [vmem:[%s8429_s3 + $0xf8] sm:$0xff]  ;;  %v1327_v32 = vld [vmem:[%s8429_s3 + $0xf0] sm:$0xff]  ;;  %v1330_v33 = vld [vmem:[%s8429_s3 + $0x108] sm:$0xff]  ;;  %v242_v56 = vstv %s5502_s23  ;;  %s5415_s13 = sshll.u32 %s214_s9, 4  ;;  %s8383_s23 = scalar_lea.hbm %s8430_s4, %s5505_s8  ;;  %s8385_s13 = int_to_ptr.vmem [resolvable:$true] %s5415_s13 }
  0x45   : > { %v1329_v34 = vld [vmem:[%s8429_s3 + $0x100] sm:$0xff]  ;;  %v1332_v35 = vld [vmem:[%s8429_s3 + $0x118] sm:$0xff]  ;;  %v1331_v36 = vld [vmem:[%s8429_s3 + $0x110] sm:$0xff]  ;;  %v244_v62 = vstv %s5504_s7  ;;  %s5607_s5 = scalar_lea.vmem %s8385_s13, 16  ;;  %s5613_s6 = scalar_lea.vmem %s5612_s29, 32 }
  0x46   : > { %v1334_v37 = vld [vmem:[%s8429_s3 + $0x128] sm:$0xff]  ;;  %v1333_v38 = vld [vmem:[%s8429_s3 + $0x120] sm:$0xff]  ;;  %v1336_v39 = vld [vmem:[%s8429_s3 + $0x138] sm:$0xff]  ;;  %p5608_p10 = scmp.ne.s32.totalorder %s8385_s13, %s5607_s5  ;;  %p5614_p8 = scmp.lt.s32.totalorder %s8385_s13, %s5612_s29 }
  0x47   : > { %v1335_v40 = vld [vmem:[%s8429_s3 + $0x130] sm:$0xff]  ;;  %v225_v41 = vld [vmem:[%s218_s12] sm:$0x1]  ;;  %v226_v42 = vld [vmem:[%s218_s12 + $0x1] sm:$0x1]  ;;  %p5615_p11 = scmp.lt.s32.totalorder %s5613_s6, %s5607_s5 }
  0x48   : > { %1846 = vperm.xlu1 %5576, %v1304_v7   ;;  %1841 = vperm.xlu0 %5575, %v1303_v8   ;;  %v1338_v45 = vld [vmem:[%s8429_s3 + $0x148] sm:$0xff]  ;;  %v1337_v46 = vld [vmem:[%s8429_s3 + $0x140] sm:$0xff]  ;;  %v229_v47 = vmul.f32 %v228_v43, %v225_v41  ;;  %v236_v48 = vmul.f32 %v235_v44, %v226_v42  ;;  %v1340_v51 = vld [vmem:[%s8429_s3 + $0x158] sm:$0xff]  ;;  %p5609_p0 = pnand %p5608_p10, %p8443_p12 }
  0x49   : > { %v1339_v52 = vld [vmem:[%s8429_s3 + $0x150] sm:$0xff]  ;;  %v227_v55 = vld [vmem:[%s218_s12 + $0x2] sm:$0x1]  ;;  %v1342_v57 = vld [vmem:[%s8429_s3 + $0x168] sm:$0xff]  ;;  %p5616_p13 = por %p5615_p11, %p5614_p8 }
  0x4a   : > { %v231_v53 = vadd.f32 %v230_v49, %v229_v47  ;;  %v238_v54 = vadd.f32 %v237_v50, %v236_v48  ;;  %v1341_v58 = vld [vmem:[%s8429_s3 + $0x160] sm:$0xff]  ;;  %v243_v61 = vmul.f32 %v242_v56, %v227_v55  ;;  %v1344_v63 = vld [vmem:[%s8429_s3 + $0x178] sm:$0xff]  ;;  %v1343_v0 = vld [vmem:[%s8429_s3 + $0x170] sm:$0xff]  ;;  %p5610_p7 = pneg %p5609_p0 }
  0x4b   : > { %v1346_v5 = vld [vmem:[%s8429_s3 + $0x188] sm:$0xff]  ;;  %v1345_v6 = vld [vmem:[%s8429_s3 + $0x180] sm:$0xff]  ;;  %v1363_v47 = vld [vmem:[%s8429_s3 + $0x210] sm:$0xff] }
  0x4c   : > { %1856 = vperm.xlu1 %5576, %v1306_v9   ;;  %1851 = vperm.xlu0 %5575, %v1305_v10   ;;  %v232_v59 = vadd.f32 0.5, %v231_v53  ;;  %v239_v60 = vadd.f32 0.5, %v238_v54  ;;  %v245_v4 = vadd.f32 %v244_v62, %v243_v61  ;;  %v1348_v10 = vld [vmem:[%s8429_s3 + $0x198] sm:$0xff]  ;;  %v1366_v55 = vld [vmem:[%s8429_s3 + $0x228] sm:$0xff]  ;;  %v1365_v56 = vld [vmem:[%s8429_s3 + $0x220] sm:$0xff]  ;;  %p5617_p1 = pnand %p5616_p13, %p5610_p7 }
  0x4e   : > { %v233_v1 = vfloor.f32 %v232_v59  ;;  %v240_v3 = vfloor.f32 %v239_v60  ;;  %v246_v9 = vadd.f32 0.5, %v245_v4 }
  0x50   : > { %1866 = vperm.xlu1 %5576, %v1308_v11   ;;  %1861 = vperm.xlu0 %5575, %v1307_v12   ;;  %v5508_v7 = vtrunc.f32 %v233_v1  ;;  %v5510_v8 = vtrunc.f32 %v240_v3  ;;  %v1347_v11 = vld [vmem:[%s8429_s3 + $0x190] sm:$0xff]  ;;  %v1368_v1 = vld [vmem:[%s8429_s3 + $0x238] sm:$0xff] }
  0x51   : > { %v1367_v3 = vld [vmem:[%s8429_s3 + $0x230] sm:$0xff] }
  0x52   : > { %v5954_v12 = vcvt.f32.s32 %v5508_v7 }
  0x54   : > { %1876 = vperm.xlu1 %5576, %v1310_v13   ;;  %1871 = vperm.xlu0 %5575, %v1309_v14   ;;  %v5956_v13 = vcvt.f32.s32 %v5510_v8  ;;  %v247_v14 = vfloor.f32 %v246_v9 }
  0x58   : > { %1886 = vperm.xlu1 %5576, %v1312_v15   ;;  %1881 = vperm.xlu0 %5575, %v1311_v16   ;;  %v1350_v15 = vld [vmem:[%s8429_s3 + $0x1a8] sm:$0xff]  ;;  %v1349_v16 = vld [vmem:[%s8429_s3 + $0x1a0] sm:$0xff] }
  0x5c   : > { %1896 = vperm.xlu1 %5576, %v1314_v17   ;;  %1891 = vperm.xlu0 %5575, %v1313_v18   ;;  %v5512_v17 = vtrunc.f32 %v247_v14  ;;  %v260_v18 = vmul.u32 256, %v5954_v12  ;;  %v1370_v14 = vld [vmem:[%s8429_s3 + $0x248] sm:$0xff] }
  0x60   : > { %1906 = vperm.xlu1 %5576, %v1316_v19   ;;  %1901 = vperm.xlu0 %5575, %v1315_v20   ;;  %v261_v19 = vmul.u32 16, %v5956_v13  ;;  %v1352_v20 = vld [vmem:[%s8429_s3 + $0x1b8] sm:$0xff] }
  0x64   : > { %1916 = vperm.xlu1 %5576, %v1318_v21   ;;  %1911 = vperm.xlu0 %5575, %v1317_v22   ;;  %v1351_v21 = vld [vmem:[%s8429_s3 + $0x1b0] sm:$0xff]  ;;  %v5972_v22 = vcvt.f32.s32 %v5512_v17 }
  0x68   : > { %1926 = vperm.xlu1 %5576, %v1320_v23   ;;  %1921 = vperm.xlu0 %5575, %v1319_v24   ;;  %v262_v23 = vadd.s32 %v261_v19, %v260_v18  ;;  %v1354_v24 = vld [vmem:[%s8429_s3 + $0x1c8] sm:$0xff] }
  0x6c   : > { %1936 = vperm.xlu1 %5576, %v1322_v25   ;;  %1931 = vperm.xlu0 %5575, %v1321_v26   ;;  %v1353_v25 = vld [vmem:[%s8429_s3 + $0x1c0] sm:$0xff]  ;;  %v263_v26 = vadd.s32 %v5972_v22, %v262_v23 }
  0x6e   : > { %vm264_vm0 = vcmp.gt.s32.totalorder %v263_v26, 0 }
  0x70   : > { %1946 = vperm.xlu1 %5576, %v1324_v27   ;;  %1941 = vperm.xlu0 %5575, %v1323_v28   ;;  %v1356_v27 = vld [vmem:[%s8429_s3 + $0x1d8] sm:$0xff]  ;;  %v1355_v28 = vld [vmem:[%s8429_s3 + $0x1d0] sm:$0xff] }
  0x74   : > { %1956 = vperm.xlu1 %5576, %v1326_v29   ;;  %1951 = vperm.xlu0 %5575, %v1325_v30   ;;  %v268_v29 = vlaneseq  ;;  %v265_v30 = vsel %vm264_vm0, %v263_v26, 0  ;;  %v1371_v26 = vld [vmem:[%s8429_s3 + $0x250] sm:$0xff] }
  0x75   : > { %vm266_vm1 = vcmp.lt.s32.totalorder %v265_v30, 4095 }
  0x78   : > { %1966 = vperm.xlu1 %5576, %v1328_v31   ;;  %1961 = vperm.xlu0 %5575, %v1327_v32   ;;  %v1358_v31 = vld [vmem:[%s8429_s3 + $0x1e8] sm:$0xff]  ;;  %v1357_v32 = vld [vmem:[%s8429_s3 + $0x1e0] sm:$0xff] }
  0x7c   : > { %1976 = vperm.xlu1 %5576, %v1330_v33   ;;  %1971 = vperm.xlu0 %5575, %v1329_v34   ;;  %v5993_v33 = vshrl.u32 %v268_v29, 7  ;;  %v1360_v34 = vld [vmem:[%s8429_s3 + $0x1f8] sm:$0xff] }
  0x7e   : > { %v270_v41 = vadd.s32 8, %v5993_v33  ;;  %v271_v43 = vadd.s32 16, %v5993_v33  ;;  %v273_v50 = vadd.s32 32, %v5993_v33  ;;  %v274_v54 = vadd.s32 40, %v5993_v33 }
  0x7f   : > { %v275_v61 = vadd.s32 48, %v5993_v33  ;;  %v277_v8 = vadd.s32 64, %v5993_v33 }
  0x80   : > { %1986 = vperm.xlu1 %5576, %v1332_v35   ;;  %1981 = vperm.xlu0 %5575, %v1331_v36   ;;  %v1359_v35 = vld [vmem:[%s8429_s3 + $0x1f0] sm:$0xff]  ;;  %v783_v36 = vsub.s32 0, %v5993_v33 }
  0x84   : > { %1996 = vperm.xlu1 %5576, %v1334_v37   ;;  %1991 = vperm.xlu0 %5575, %v1333_v38   ;;  %v267_v37 = vsel %vm266_vm1, %v265_v30, 4095 }
  0x85   : > { %v6002_v38 = vrot.slane %v267_v37, %v783_v36  ;;  %v1374_v36 = vld [vmem:[%s8429_s3 + $0x268] sm:$0xff]  ;;  %v1373_v37 = vld [vmem:[%s8429_s3 + $0x260] sm:$0xff] }
  0x87   : > { %vm785_vm2 = vcmp.eq.s32.totalorder %v5993_v33, %v6002_v38  ;;  %vm786_vm3 = vcmp.eq.s32.totalorder %v270_v41, %v6002_v38  ;;  %vm787_vm4 = vcmp.eq.s32.totalorder %v271_v43, %v6002_v38  ;;  %vm789_vm6 = vcmp.eq.s32.totalorder %v273_v50, %v6002_v38 }
  0x88   : > { %2006 = vperm.xlu1 %5576, %v1336_v39   ;;  %2001 = vperm.xlu0 %5575, %v1335_v40   ;;  %v1362_v39 = vld [vmem:[%s8429_s3 + $0x208] sm:$0xff]  ;;  %v1361_v40 = vld [vmem:[%s8429_s3 + $0x200] sm:$0xff]  ;;  %vm790_vm7 = vcmp.eq.s32.totalorder %v274_v54, %v6002_v38  ;;  %vm791_vm8 = vcmp.eq.s32.totalorder %v275_v61, %v6002_v38  ;;  %vm793_vm10 = vcmp.eq.s32.totalorder %v277_v8, %v6002_v38  ;;  %v283_v43 = vadd.s32 112, %v5993_v33 }
  0x8a   : > { %vm799_vm0 = vcmp.eq.s32.totalorder %v283_v43, %v6002_v38 }
  0x8c   : > { %2016 = vperm.xlu1 %5576, %v1338_v45   ;;  %2011 = vperm.xlu0 %5575, %v1337_v46   ;;  %v272_v45 = vadd.s32 24, %v5993_v33  ;;  %v1364_v46 = vld [vmem:[%s8429_s3 + $0x218] sm:$0xff] }
  0x8e   : > { %vm788_vm5 = vcmp.eq.s32.totalorder %v272_v45, %v6002_v38 }
  0x90   : > { %2026 = vperm.xlu1 %5576, %v1340_v51   ;;  %2021 = vperm.xlu0 %5575, %v1339_v52  }
  0x94   : > { %2036 = vperm.xlu1 %5576, %v1342_v57   ;;  %2031 = vperm.xlu0 %5575, %v1341_v58  }
  0x98   : > { %2046 = vperm.xlu1 %5576, %v1344_v63   ;;  %2041 = vperm.xlu0 %5575, %v1343_v0   ;;  %v276_v0 = vadd.s32 56, %v5993_v33 }
  0x9a   : > { %vm792_vm9 = vcmp.eq.s32.totalorder %v276_v0, %v6002_v38 }
  0x9c   : > { %2056 = vperm.xlu1 %5576, %v1346_v5   ;;  %2051 = vperm.xlu0 %5575, %v1345_v6  }
  0xa0   : > { %2066 = vperm.xlu1 %5576, %v1348_v10   ;;  %2061 = vperm.xlu0 %5575, %v1347_v11   ;;  %v278_v11 = vadd.s32 72, %v5993_v33 }
  0xa2   : > { %vm794_vm11 = vcmp.eq.s32.totalorder %v278_v11, %v6002_v38 }
  0xa4   : > { %2076 = vperm.xlu1 %5576, %v1350_v15   ;;  %2071 = vperm.xlu0 %5575, %v1349_v16   ;;  %v1369_v15 = vld [vmem:[%s8429_s3 + $0x240] sm:$0xff] }
  0xa8   : > { %2086 = vperm.xlu1 %5576, %v1352_v20   ;;  %2081 = vperm.xlu0 %5575, %v1351_v21   ;;  %v279_v20 = vadd.s32 80, %v5993_v33 }
  0xaa   : > { %vm795_vm12 = vcmp.eq.s32.totalorder %v279_v20, %v6002_v38 }
  0xac   : > { %2096 = vperm.xlu1 %5576, %v1354_v24   ;;  %2091 = vperm.xlu0 %5575, %v1353_v25   ;;  %v280_v24 = vadd.s32 88, %v5993_v33  ;;  %v1372_v25 = vld [vmem:[%s8429_s3 + $0x258] sm:$0xff] }
  0xae   : > { %vm796_vm13 = vcmp.eq.s32.totalorder %v280_v24, %v6002_v38 }
  0xb0   : > { %2106 = vperm.xlu1 %5576, %v1356_v27   ;;  %2101 = vperm.xlu0 %5575, %v1355_v28  }
  0xb4   : > { %2116 = vperm.xlu1 %5576, %v1358_v31   ;;  %2111 = vperm.xlu0 %5575, %v1357_v32   ;;  %v281_v31 = vadd.s32 96, %v5993_v33 }
  0xb6   : > { %vm797_vm14 = vcmp.eq.s32.totalorder %v281_v31, %v6002_v38 }
  0xb8   : > { %2126 = vperm.xlu1 %5576, %v1360_v34   ;;  %2121 = vperm.xlu0 %5575, %v1359_v35   ;;  %v282_v35 = vadd.s32 104, %v5993_v33 }
  0xba   : > { %vm798_vm15 = vcmp.eq.s32.totalorder %v282_v35, %v6002_v38 }
  0xbb   : > { %v1822_v42 = vpop.permute.xlu1 %1821  ;;  %v1812_v44 = vpop.permute.xlu0 %1811 }
  0xbc   : > { %2136 = vperm.xlu1 %5576, %v1362_v39   ;;  %2131 = vperm.xlu0 %5575, %v1361_v40   ;;  %v4369_v51 = vsel %vm785_vm2, %v1812_v44, 0.0  ;;  %v4371_v57 = vsel %vm787_vm4, %v1822_v42, 0.0 }
  0xbf   : > { %v1827_v48 = vpop.permute.xlu1 %1826  ;;  %v1817_v49 = vpop.permute.xlu0 %1816 }
  0xc0   : > { %v4370_v52 = vsel %vm786_vm3, %v1817_v49, 0.0  ;;  %2146 = vperm.xlu1 %5576, %v1364_v46   ;;  %2141 = vperm.xlu0 %5575, %v1363_v47   ;;  %v4372_v62 = vsel %vm788_vm5, %v1827_v48, 0.0  ;;  %v284_v46 = vadd.s32 120, %v5993_v33  ;;  %v1376_v47 = vld [vmem:[%s8429_s3 + $0x278] sm:$0xff]  ;;  %v1375_v48 = vld [vmem:[%s8429_s3 + $0x270] sm:$0xff] }
  0xc1   : > { %v4881_v53 = vadd.f32 %v4370_v52, %v4369_v51 }
  0xc2   : > { %vm800_vm1 = vcmp.eq.s32.totalorder %v284_v46, %v6002_v38 }
  0xc3   : > { %v4882_v58 = vadd.f32 %v4881_v53, %v4371_v57  ;;  %v1837_v59 = vpop.permute.xlu1 %1836  ;;  %v1832_v60 = vpop.permute.xlu0 %1831  ;;  %v285_v53 = vadd.s32 128, %v5993_v33  ;;  %v1378_v57 = vld [vmem:[%s8429_s3 + $0x288] sm:$0xff] }
  0xc4   : > { %2156 = vperm.xlu1 %5576, %v1366_v55   ;;  %2151 = vperm.xlu0 %5575, %v1365_v56   ;;  %v4373_v4 = vsel %vm789_vm6, %v1832_v60, 0.0  ;;  %v4374_v9 = vsel %vm790_vm7, %v1837_v59, 0.0  ;;  %v286_v56 = vadd.s32 136, %v5993_v33 }
  0xc5   : > { %v4883_v63 = vadd.f32 %v4882_v58, %v4372_v62  ;;  %v1377_v58 = vld [vmem:[%s8429_s3 + $0x280] sm:$0xff]  ;;  %vm801_vm2 = vcmp.eq.s32.totalorder %v285_v53, %v6002_v38 }
  0xc6   : > { %vm802_vm3 = vcmp.eq.s32.totalorder %v286_v56, %v6002_v38 }
  0xc7   : > { %v4884_v5 = vadd.f32 %v4883_v63, %v4373_v4  ;;  %v1847_v6 = vpop.permute.xlu1 %1846  ;;  %v1842_v7 = vpop.permute.xlu0 %1841  ;;  %v287_v63 = vadd.s32 144, %v5993_v33  ;;  %v1380_v4 = vld [vmem:[%s8429_s3 + $0x298] sm:$0xff] }
  0xc8   : > { %2166 = vperm.xlu1 %5576, %v1368_v1   ;;  %2161 = vperm.xlu0 %5575, %v1367_v3   ;;  %v4375_v16 = vsel %vm791_vm8, %v1842_v7, 0.0  ;;  %v4376_v21 = vsel %vm792_vm9, %v1847_v6, 0.0  ;;  %v288_v3 = vadd.s32 152, %v5993_v33 }
  0xc9   : > { %v4885_v10 = vadd.f32 %v4884_v5, %v4374_v9  ;;  %v1379_v5 = vld [vmem:[%s8429_s3 + $0x290] sm:$0xff]  ;;  %vm803_vm4 = vcmp.eq.s32.totalorder %v287_v63, %v6002_v38 }
  0xca   : > { %vm804_vm5 = vcmp.eq.s32.totalorder %v288_v3, %v6002_v38 }
  0xcb   : > { %v4886_v17 = vadd.f32 %v4885_v10, %v4375_v16  ;;  %v1857_v18 = vpop.permute.xlu1 %1856  ;;  %v1852_v19 = vpop.permute.xlu0 %1851  ;;  %v289_v10 = vadd.s32 160, %v5993_v33  ;;  %v1382_v16 = vld [vmem:[%s8429_s3 + $0x2a8] sm:$0xff] }
  0xcc   : > { %2176 = vperm.xlu1 %5576, %v1370_v14   ;;  %2171 = vperm.xlu0 %5575, %v1369_v15   ;;  %v4377_v27 = vsel %vm793_vm10, %v1852_v19, 0.0  ;;  %v4378_v32 = vsel %vm794_vm11, %v1857_v18, 0.0  ;;  %v290_v15 = vadd.s32 168, %v5993_v33 }
  0xcd   : > { %v4887_v23 = vadd.f32 %v4886_v17, %v4376_v21  ;;  %v1381_v17 = vld [vmem:[%s8429_s3 + $0x2a0] sm:$0xff]  ;;  %vm805_vm6 = vcmp.eq.s32.totalorder %v289_v10, %v6002_v38 }
  0xce   : > { %vm806_vm7 = vcmp.eq.s32.totalorder %v290_v15, %v6002_v38 }
  0xcf   : > { %v4888_v28 = vadd.f32 %v4887_v23, %v4377_v27  ;;  %v1867_v29 = vpop.permute.xlu1 %1866  ;;  %v1862_v30 = vpop.permute.xlu0 %1861  ;;  %v291_v23 = vadd.s32 176, %v5993_v33  ;;  %v1384_v27 = vld [vmem:[%s8429_s3 + $0x2b8] sm:$0xff] }
  0xd0   : > { %2186 = vperm.xlu1 %5576, %v1372_v25   ;;  %2181 = vperm.xlu0 %5575, %v1371_v26   ;;  %v4379_v39 = vsel %vm795_vm12, %v1862_v30, 0.0  ;;  %v4380_v44 = vsel %vm796_vm13, %v1867_v29, 0.0  ;;  %v292_v26 = vadd.s32 184, %v5993_v33 }
  0xd1   : > { %v4889_v34 = vadd.f32 %v4888_v28, %v4378_v32  ;;  %v1383_v28 = vld [vmem:[%s8429_s3 + $0x2b0] sm:$0xff]  ;;  %vm807_vm8 = vcmp.eq.s32.totalorder %v291_v23, %v6002_v38 }
  0xd2   : > { %vm808_vm9 = vcmp.eq.s32.totalorder %v292_v26, %v6002_v38 }
  0xd3   : > { %v4890_v40 = vadd.f32 %v4889_v34, %v4379_v39  ;;  %v1877_v41 = vpop.permute.xlu1 %1876  ;;  %v1872_v42 = vpop.permute.xlu0 %1871  ;;  %v293_v34 = vadd.s32 192, %v5993_v33  ;;  %v1386_v39 = vld [vmem:[%s8429_s3 + $0x2c8] sm:$0xff] }
  0xd4   : > { %2196 = vperm.xlu1 %5576, %v1374_v36   ;;  %2191 = vperm.xlu0 %5575, %v1373_v37   ;;  %v4381_v49 = vsel %vm797_vm14, %v1872_v42, 0.0  ;;  %v4382_v54 = vsel %vm798_vm15, %v1877_v41, 0.0  ;;  %v294_v37 = vadd.s32 200, %v5993_v33 }
  0xd5   : > { %v4891_v45 = vadd.f32 %v4890_v40, %v4380_v44  ;;  %v1385_v40 = vld [vmem:[%s8429_s3 + $0x2c0] sm:$0xff]  ;;  %vm809_vm10 = vcmp.eq.s32.totalorder %v293_v34, %v6002_v38 }
  0xd6   : > { %vm810_vm11 = vcmp.eq.s32.totalorder %v294_v37, %v6002_v38 }
  0xd7   : > { %v4892_v50 = vadd.f32 %v4891_v45, %v4381_v49  ;;  %v1887_v51 = vpop.permute.xlu1 %1886  ;;  %v1882_v52 = vpop.permute.xlu0 %1881  ;;  %v295_v45 = vadd.s32 208, %v5993_v33  ;;  %v1388_v49 = vld [vmem:[%s8429_s3 + $0x2d8] sm:$0xff] }
  0xd8   : > { %2206 = vperm.xlu1 %5576, %v1376_v47   ;;  %2201 = vperm.xlu0 %5575, %v1375_v48   ;;  %v4383_v59 = vsel %vm799_vm0, %v1882_v52, 0.0  ;;  %v4384_v0 = vsel %vm800_vm1, %v1887_v51, 0.0  ;;  %v296_v48 = vadd.s32 216, %v5993_v33 }
  0xd9   : > { %v4893_v55 = vadd.f32 %v4892_v50, %v4382_v54  ;;  %v1387_v50 = vld [vmem:[%s8429_s3 + $0x2d0] sm:$0xff]  ;;  %vm811_vm12 = vcmp.eq.s32.totalorder %v295_v45, %v6002_v38 }
  0xda   : > { %vm812_vm13 = vcmp.eq.s32.totalorder %v296_v48, %v6002_v38 }
  0xdb   : > { %v4894_v60 = vadd.f32 %v4893_v55, %v4383_v59  ;;  %v1897_v61 = vpop.permute.xlu1 %1896  ;;  %v1892_v62 = vpop.permute.xlu0 %1891  ;;  %v297_v55 = vadd.s32 224, %v5993_v33  ;;  %v1390_v59 = vld [vmem:[%s8429_s3 + $0x2e8] sm:$0xff] }
  0xdc   : > { %2216 = vperm.xlu1 %5576, %v1378_v57   ;;  %2211 = vperm.xlu0 %5575, %v1377_v58   ;;  %v4385_v6 = vsel %vm801_vm2, %v1892_v62, 0.0  ;;  %v4386_v11 = vsel %vm802_vm3, %v1897_v61, 0.0  ;;  %v298_v58 = vadd.s32 232, %v5993_v33 }
  0xdd   : > { %v4895_v1 = vadd.f32 %v4894_v60, %v4384_v0  ;;  %v1389_v60 = vld [vmem:[%s8429_s3 + $0x2e0] sm:$0xff]  ;;  %vm813_vm14 = vcmp.eq.s32.totalorder %v297_v55, %v6002_v38 }
  0xde   : > { %vm814_vm15 = vcmp.eq.s32.totalorder %v298_v58, %v6002_v38 }
  0xdf   : > { %v4896_v7 = vadd.f32 %v4895_v1, %v4385_v6  ;;  %v1907_v8 = vpop.permute.xlu1 %1906  ;;  %v1902_v9 = vpop.permute.xlu0 %1901  ;;  %v299_v1 = vadd.s32 240, %v5993_v33  ;;  %v1392_v6 = vld [vmem:[%s8429_s3 + $0x2f8] sm:$0xff] }
  0xe0   : > { %2226 = vperm.xlu1 %5576, %v1380_v4   ;;  %2221 = vperm.xlu0 %5575, %v1379_v5   ;;  %v4387_v18 = vsel %vm803_vm4, %v1902_v9, 0.0  ;;  %v4388_v24 = vsel %vm804_vm5, %v1907_v8, 0.0  ;;  %v300_v5 = vadd.s32 248, %v5993_v33 }
  0xe1   : > { %v4897_v14 = vadd.f32 %v4896_v7, %v4386_v11  ;;  %v1391_v7 = vld [vmem:[%s8429_s3 + $0x2f0] sm:$0xff]  ;;  %vm815_vm0 = vcmp.eq.s32.totalorder %v299_v1, %v6002_v38 }
  0xe2   : > { %vm816_vm1 = vcmp.eq.s32.totalorder %v300_v5, %v6002_v38 }
  0xe3   : > { %v4898_v19 = vadd.f32 %v4897_v14, %v4387_v18  ;;  %v1917_v20 = vpop.permute.xlu1 %1916  ;;  %v1912_v21 = vpop.permute.xlu0 %1911  ;;  %v301_v14 = vadd.s32 256, %v5993_v33  ;;  %v1394_v18 = vld [vmem:[%s8429_s3 + $0x308] sm:$0xff] }
  0xe4   : > { %2236 = vperm.xlu1 %5576, %v1382_v16   ;;  %2231 = vperm.xlu0 %5575, %v1381_v17   ;;  %v4389_v29 = vsel %vm805_vm6, %v1912_v21, 0.0  ;;  %v4390_v35 = vsel %vm806_vm7, %v1917_v20, 0.0  ;;  %v302_v17 = vadd.s32 264, %v5993_v33 }
  0xe5   : > { %v4899_v25 = vadd.f32 %v4898_v19, %v4388_v24  ;;  %v1393_v19 = vld [vmem:[%s8429_s3 + $0x300] sm:$0xff]  ;;  %vm817_vm2 = vcmp.eq.s32.totalorder %v301_v14, %v6002_v38 }
  0xe6   : > { %vm818_vm3 = vcmp.eq.s32.totalorder %v302_v17, %v6002_v38 }
  0xe7   : > { %v4900_v30 = vadd.f32 %v4899_v25, %v4389_v29  ;;  %v1927_v31 = vpop.permute.xlu1 %1926  ;;  %v1922_v32 = vpop.permute.xlu0 %1921  ;;  %v303_v25 = vadd.s32 272, %v5993_v33  ;;  %v1396_v29 = vld [vmem:[%s8429_s3 + $0x318] sm:$0xff] }
  0xe8   : > { %2246 = vperm.xlu1 %5576, %v1384_v27   ;;  %2241 = vperm.xlu0 %5575, %v1383_v28   ;;  %v4391_v41 = vsel %vm807_vm8, %v1922_v32, 0.0  ;;  %v4392_v46 = vsel %vm808_vm9, %v1927_v31, 0.0  ;;  %v304_v28 = vadd.s32 280, %v5993_v33 }
  0xe9   : > { %v4901_v36 = vadd.f32 %v4900_v30, %v4390_v35  ;;  %v1395_v30 = vld [vmem:[%s8429_s3 + $0x310] sm:$0xff]  ;;  %vm819_vm4 = vcmp.eq.s32.totalorder %v303_v25, %v6002_v38 }
  0xea   : > { %vm820_vm5 = vcmp.eq.s32.totalorder %v304_v28, %v6002_v38 }
  0xeb   : > { %v4902_v42 = vadd.f32 %v4901_v36, %v4391_v41  ;;  %v1937_v43 = vpop.permute.xlu1 %1936  ;;  %v1932_v44 = vpop.permute.xlu0 %1931  ;;  %v305_v36 = vadd.s32 288, %v5993_v33  ;;  %v1398_v41 = vld [vmem:[%s8429_s3 + $0x328] sm:$0xff] }
  0xec   : > { %2256 = vperm.xlu1 %5576, %v1386_v39   ;;  %2251 = vperm.xlu0 %5575, %v1385_v40   ;;  %v4393_v51 = vsel %vm809_vm10, %v1932_v44, 0.0  ;;  %v4394_v56 = vsel %vm810_vm11, %v1937_v43, 0.0  ;;  %v306_v40 = vadd.s32 296, %v5993_v33 }
  0xed   : > { %v4903_v47 = vadd.f32 %v4902_v42, %v4392_v46  ;;  %v1397_v42 = vld [vmem:[%s8429_s3 + $0x320] sm:$0xff]  ;;  %vm821_vm6 = vcmp.eq.s32.totalorder %v305_v36, %v6002_v38 }
  0xee   : > { %vm822_vm7 = vcmp.eq.s32.totalorder %v306_v40, %v6002_v38 }
  0xef   : > { %v4904_v52 = vadd.f32 %v4903_v47, %v4393_v51  ;;  %v1947_v53 = vpop.permute.xlu1 %1946  ;;  %v1942_v54 = vpop.permute.xlu0 %1941  ;;  %v307_v47 = vadd.s32 304, %v5993_v33  ;;  %v1400_v51 = vld [vmem:[%s8429_s3 + $0x338] sm:$0xff] }
  0xf0   : > { %2266 = vperm.xlu1 %5576, %v1388_v49   ;;  %2261 = vperm.xlu0 %5575, %v1387_v50   ;;  %v4395_v61 = vsel %vm811_vm12, %v1942_v54, 0.0  ;;  %v4396_v3 = vsel %vm812_vm13, %v1947_v53, 0.0  ;;  %v308_v50 = vadd.s32 312, %v5993_v33 }
  0xf1   : > { %v4905_v57 = vadd.f32 %v4904_v52, %v4394_v56  ;;  %v1399_v52 = vld [vmem:[%s8429_s3 + $0x330] sm:$0xff]  ;;  %vm823_vm8 = vcmp.eq.s32.totalorder %v307_v47, %v6002_v38 }
  0xf2   : > { %vm824_vm9 = vcmp.eq.s32.totalorder %v308_v50, %v6002_v38 }
  0xf3   : > { %v4906_v62 = vadd.f32 %v4905_v57, %v4395_v61  ;;  %v1957_v63 = vpop.permute.xlu1 %1956  ;;  %v1952_v0 = vpop.permute.xlu0 %1951  ;;  %v309_v57 = vadd.s32 320, %v5993_v33  ;;  %v1402_v61 = vld [vmem:[%s8429_s3 + $0x348] sm:$0xff] }
  0xf4   : > { %2276 = vperm.xlu1 %5576, %v1390_v59   ;;  %2271 = vperm.xlu0 %5575, %v1389_v60   ;;  %v4397_v8 = vsel %vm813_vm14, %v1952_v0, 0.0  ;;  %v4398_v15 = vsel %vm814_vm15, %v1957_v63, 0.0  ;;  %v310_v60 = vadd.s32 328, %v5993_v33 }
  0xf5   : > { %v4907_v4 = vadd.f32 %v4906_v62, %v4396_v3  ;;  %v1401_v62 = vld [vmem:[%s8429_s3 + $0x340] sm:$0xff]  ;;  %vm825_vm10 = vcmp.eq.s32.totalorder %v309_v57, %v6002_v38 }
  0xf6   : > { %vm826_vm11 = vcmp.eq.s32.totalorder %v310_v60, %v6002_v38 }
  0xf7   : > { %v4908_v9 = vadd.f32 %v4907_v4, %v4397_v8  ;;  %v1967_v10 = vpop.permute.xlu1 %1966  ;;  %v1962_v11 = vpop.permute.xlu0 %1961  ;;  %v311_v4 = vadd.s32 336, %v5993_v33  ;;  %v1404_v8 = vld [vmem:[%s8429_s3 + $0x358] sm:$0xff] }
  0xf8   : > { %2286 = vperm.xlu1 %5576, %v1392_v6   ;;  %2281 = vperm.xlu0 %5575, %v1391_v7   ;;  %v4399_v20 = vsel %vm815_vm0, %v1962_v11, 0.0  ;;  %v4400_v26 = vsel %vm816_vm1, %v1967_v10, 0.0  ;;  %v312_v7 = vadd.s32 344, %v5993_v33 }
  0xf9   : > { %v4909_v16 = vadd.f32 %v4908_v9, %v4398_v15  ;;  %v1403_v9 = vld [vmem:[%s8429_s3 + $0x350] sm:$0xff]  ;;  %vm827_vm12 = vcmp.eq.s32.totalorder %v311_v4, %v6002_v38 }
  0xfa   : > { %vm828_vm13 = vcmp.eq.s32.totalorder %v312_v7, %v6002_v38 }
  0xfb   : > { %v4910_v21 = vadd.f32 %v4909_v16, %v4399_v20  ;;  %v1977_v23 = vpop.permute.xlu1 %1976  ;;  %v1972_v24 = vpop.permute.xlu0 %1971  ;;  %v313_v16 = vadd.s32 352, %v5993_v33  ;;  %v1406_v20 = vld [vmem:[%s8429_s3 + $0x368] sm:$0xff] }
  0xfc   : > { %2296 = vperm.xlu1 %5576, %v1394_v18   ;;  %2291 = vperm.xlu0 %5575, %v1393_v19   ;;  %v4401_v31 = vsel %vm817_vm2, %v1972_v24, 0.0  ;;  %v4402_v37 = vsel %vm818_vm3, %v1977_v23, 0.0  ;;  %v314_v19 = vadd.s32 360, %v5993_v33 }
  0xfd   : > { %v4911_v27 = vadd.f32 %v4910_v21, %v4400_v26  ;;  %v1405_v21 = vld [vmem:[%s8429_s3 + $0x360] sm:$0xff]  ;;  %vm829_vm14 = vcmp.eq.s32.totalorder %v313_v16, %v6002_v38 }
  0xfe   : > { %vm830_vm15 = vcmp.eq.s32.totalorder %v314_v19, %v6002_v38 }
  0xff   : > { %v4912_v32 = vadd.f32 %v4911_v27, %v4401_v31  ;;  %v1987_v34 = vpop.permute.xlu1 %1986  ;;  %v1982_v35 = vpop.permute.xlu0 %1981  ;;  %v315_v27 = vadd.s32 368, %v5993_v33  ;;  %v1408_v31 = vld [vmem:[%s8429_s3 + $0x378] sm:$0xff] }
 0x100   : > { %2306 = vperm.xlu1 %5576, %v1396_v29   ;;  %2301 = vperm.xlu0 %5575, %v1395_v30   ;;  %v4403_v43 = vsel %vm819_vm4, %v1982_v35, 0.0  ;;  %v4404_v48 = vsel %vm820_vm5, %v1987_v34, 0.0  ;;  %v316_v30 = vadd.s32 376, %v5993_v33 }
 0x101   : > { %v4913_v39 = vadd.f32 %v4912_v32, %v4402_v37  ;;  %v1407_v32 = vld [vmem:[%s8429_s3 + $0x370] sm:$0xff]  ;;  %vm831_vm0 = vcmp.eq.s32.totalorder %v315_v27, %v6002_v38 }
 0x102   : > { %vm832_vm1 = vcmp.eq.s32.totalorder %v316_v30, %v6002_v38 }
 0x103   : > { %v4914_v44 = vadd.f32 %v4913_v39, %v4403_v43  ;;  %v1997_v45 = vpop.permute.xlu1 %1996  ;;  %v1992_v46 = vpop.permute.xlu0 %1991  ;;  %v317_v39 = vadd.s32 384, %v5993_v33  ;;  %v1410_v43 = vld [vmem:[%s8429_s3 + $0x388] sm:$0xff] }
 0x104   : > { %2316 = vperm.xlu1 %5576, %v1398_v41   ;;  %2311 = vperm.xlu0 %5575, %v1397_v42   ;;  %v4405_v53 = vsel %vm821_vm6, %v1992_v46, 0.0  ;;  %v4406_v58 = vsel %vm822_vm7, %v1997_v45, 0.0  ;;  %v318_v42 = vadd.s32 392, %v5993_v33 }
 0x105   : > { %v4915_v49 = vadd.f32 %v4914_v44, %v4404_v48  ;;  %v1409_v44 = vld [vmem:[%s8429_s3 + $0x380] sm:$0xff]  ;;  %vm833_vm2 = vcmp.eq.s32.totalorder %v317_v39, %v6002_v38 }
 0x106   : > { %vm834_vm3 = vcmp.eq.s32.totalorder %v318_v42, %v6002_v38 }
 0x107   : > { %v4916_v54 = vadd.f32 %v4915_v49, %v4405_v53  ;;  %v2007_v55 = vpop.permute.xlu1 %2006  ;;  %v2002_v56 = vpop.permute.xlu0 %2001  ;;  %v319_v49 = vadd.s32 400, %v5993_v33  ;;  %v1412_v53 = vld [vmem:[%s8429_s3 + $0x398] sm:$0xff] }
 0x108   : > { %2326 = vperm.xlu1 %5576, %v1400_v51   ;;  %2321 = vperm.xlu0 %5575, %v1399_v52   ;;  %v4407_v63 = vsel %vm823_vm8, %v2002_v56, 0.0  ;;  %v4408_v5 = vsel %vm824_vm9, %v2007_v55, 0.0  ;;  %v320_v52 = vadd.s32 408, %v5993_v33 }
 0x109   : > { %v4917_v59 = vadd.f32 %v4916_v54, %v4406_v58  ;;  %v1411_v54 = vld [vmem:[%s8429_s3 + $0x390] sm:$0xff]  ;;  %vm835_vm4 = vcmp.eq.s32.totalorder %v319_v49, %v6002_v38 }
 0x10a   : > { %vm836_vm5 = vcmp.eq.s32.totalorder %v320_v52, %v6002_v38 }
 0x10b   : > { %v4918_v0 = vadd.f32 %v4917_v59, %v4407_v63  ;;  %v2017_v1 = vpop.permute.xlu1 %2016  ;;  %v2012_v3 = vpop.permute.xlu0 %2011  ;;  %v321_v59 = vadd.s32 416, %v5993_v33  ;;  %v1414_v63 = vld [vmem:[%s8429_s3 + $0x3a8] sm:$0xff] }
 0x10c   : > { %2336 = vperm.xlu1 %5576, %v1402_v61   ;;  %2331 = vperm.xlu0 %5575, %v1401_v62   ;;  %v4409_v10 = vsel %vm825_vm10, %v2012_v3, 0.0  ;;  %v4410_v17 = vsel %vm826_vm11, %v2017_v1, 0.0  ;;  %v322_v62 = vadd.s32 424, %v5993_v33 }
 0x10d   : > { %v4919_v6 = vadd.f32 %v4918_v0, %v4408_v5  ;;  %v1413_v0 = vld [vmem:[%s8429_s3 + $0x3a0] sm:$0xff]  ;;  %vm837_vm6 = vcmp.eq.s32.totalorder %v321_v59, %v6002_v38 }
 0x10e   : > { %vm838_vm7 = vcmp.eq.s32.totalorder %v322_v62, %v6002_v38 }
 0x10f   : > { %v4920_v11 = vadd.f32 %v4919_v6, %v4409_v10  ;;  %v2027_v14 = vpop.permute.xlu1 %2026  ;;  %v2022_v15 = vpop.permute.xlu0 %2021  ;;  %v323_v6 = vadd.s32 432, %v5993_v33  ;;  %v1416_v10 = vld [vmem:[%s8429_s3 + $0x3b8] sm:$0xff] }
 0x110   : > { %2346 = vperm.xlu1 %5576, %v1404_v8   ;;  %2341 = vperm.xlu0 %5575, %v1403_v9   ;;  %v4411_v23 = vsel %vm827_vm12, %v2022_v15, 0.0  ;;  %v4412_v28 = vsel %vm828_vm13, %v2027_v14, 0.0  ;;  %v324_v9 = vadd.s32 440, %v5993_v33 }
 0x111   : > { %v4921_v18 = vadd.f32 %v4920_v11, %v4410_v17  ;;  %v1415_v11 = vld [vmem:[%s8429_s3 + $0x3b0] sm:$0xff]  ;;  %vm839_vm8 = vcmp.eq.s32.totalorder %v323_v6, %v6002_v38 }
 0x112   : > { %vm840_vm9 = vcmp.eq.s32.totalorder %v324_v9, %v6002_v38 }
 0x113   : > { %v4922_v24 = vadd.f32 %v4921_v18, %v4411_v23  ;;  %v2037_v25 = vpop.permute.xlu1 %2036  ;;  %v2032_v26 = vpop.permute.xlu0 %2031  ;;  %v325_v18 = vadd.s32 448, %v5993_v33  ;;  %v1418_v23 = vld [vmem:[%s8429_s3 + $0x3c8] sm:$0xff] }
 0x114   : > { %2356 = vperm.xlu1 %5576, %v1406_v20   ;;  %2351 = vperm.xlu0 %5575, %v1405_v21   ;;  %v4413_v34 = vsel %vm829_vm14, %v2032_v26, 0.0  ;;  %v4414_v40 = vsel %vm830_vm15, %v2037_v25, 0.0  ;;  %v326_v21 = vadd.s32 456, %v5993_v33 }
 0x115   : > { %v4923_v29 = vadd.f32 %v4922_v24, %v4412_v28  ;;  %v1417_v24 = vld [vmem:[%s8429_s3 + $0x3c0] sm:$0xff]  ;;  %vm841_vm10 = vcmp.eq.s32.totalorder %v325_v18, %v6002_v38 }
 0x116   : > { %vm842_vm11 = vcmp.eq.s32.totalorder %v326_v21, %v6002_v38 }
 0x117   : > { %v4924_v35 = vadd.f32 %v4923_v29, %v4413_v34  ;;  %v2047_v36 = vpop.permute.xlu1 %2046  ;;  %v2042_v37 = vpop.permute.xlu0 %2041  ;;  %v327_v29 = vadd.s32 464, %v5993_v33  ;;  %v1420_v34 = vld [vmem:[%s8429_s3 + $0x3d8] sm:$0xff] }
 0x118   : > { %2366 = vperm.xlu1 %5576, %v1408_v31   ;;  %2361 = vperm.xlu0 %5575, %v1407_v32   ;;  %v4415_v45 = vsel %vm831_vm0, %v2042_v37, 0.0  ;;  %v4416_v50 = vsel %vm832_vm1, %v2047_v36, 0.0  ;;  %v328_v32 = vadd.s32 472, %v5993_v33 }
 0x119   : > { %v4925_v41 = vadd.f32 %v4924_v35, %v4414_v40  ;;  %v1419_v35 = vld [vmem:[%s8429_s3 + $0x3d0] sm:$0xff]  ;;  %vm843_vm12 = vcmp.eq.s32.totalorder %v327_v29, %v6002_v38 }
 0x11a   : > { %vm844_vm13 = vcmp.eq.s32.totalorder %v328_v32, %v6002_v38 }
 0x11b   : > { %v4926_v46 = vadd.f32 %v4925_v41, %v4415_v45  ;;  %v2057_v47 = vpop.permute.xlu1 %2056  ;;  %v2052_v48 = vpop.permute.xlu0 %2051  ;;  %v329_v41 = vadd.s32 480, %v5993_v33  ;;  %v1422_v45 = vld [vmem:[%s8429_s3 + $0x3e8] sm:$0xff] }
 0x11c   : > { %2376 = vperm.xlu1 %5576, %v1410_v43   ;;  %2371 = vperm.xlu0 %5575, %v1409_v44   ;;  %v4417_v55 = vsel %vm833_vm2, %v2052_v48, 0.0  ;;  %v4418_v60 = vsel %vm834_vm3, %v2057_v47, 0.0  ;;  %v330_v44 = vadd.s32 488, %v5993_v33 }
 0x11d   : > { %v4927_v51 = vadd.f32 %v4926_v46, %v4416_v50  ;;  %v1421_v46 = vld [vmem:[%s8429_s3 + $0x3e0] sm:$0xff]  ;;  %vm845_vm14 = vcmp.eq.s32.totalorder %v329_v41, %v6002_v38 }
 0x11e   : > { %vm846_vm15 = vcmp.eq.s32.totalorder %v330_v44, %v6002_v38 }
 0x11f   : > { %v4928_v56 = vadd.f32 %v4927_v51, %v4417_v55  ;;  %v2067_v57 = vpop.permute.xlu1 %2066  ;;  %v2062_v58 = vpop.permute.xlu0 %2061  ;;  %v331_v51 = vadd.s32 496, %v5993_v33  ;;  %v1424_v55 = vld [vmem:[%s8429_s3 + $0x3f8] sm:$0xff] }
 0x120   : > { %2386 = vperm.xlu1 %5576, %v1412_v53   ;;  %2381 = vperm.xlu0 %5575, %v1411_v54   ;;  %v4419_v1 = vsel %vm835_vm4, %v2062_v58, 0.0  ;;  %v4420_v7 = vsel %vm836_vm5, %v2067_v57, 0.0  ;;  %v332_v54 = vadd.s32 504, %v5993_v33 }
 0x121   : > { %v4929_v61 = vadd.f32 %v4928_v56, %v4418_v60  ;;  %v1423_v56 = vld [vmem:[%s8429_s3 + $0x3f0] sm:$0xff]  ;;  %vm847_vm0 = vcmp.eq.s32.totalorder %v331_v51, %v6002_v38 }
 0x122   : > { %vm848_vm1 = vcmp.eq.s32.totalorder %v332_v54, %v6002_v38 }
 0x123   : > { %v4930_v3 = vadd.f32 %v4929_v61, %v4419_v1  ;;  %v2077_v4 = vpop.permute.xlu1 %2076  ;;  %v2072_v5 = vpop.permute.xlu0 %2071  ;;  %v333_v61 = vadd.s32 512, %v5993_v33  ;;  %v1426_v1 = vld [vmem:[%s8429_s3 + $0x408] sm:$0xff] }
 0x124   : > { %2396 = vperm.xlu1 %5576, %v1414_v63   ;;  %2391 = vperm.xlu0 %5575, %v1413_v0   ;;  %v4421_v14 = vsel %vm837_vm6, %v2072_v5, 0.0  ;;  %v4422_v19 = vsel %vm838_vm7, %v2077_v4, 0.0  ;;  %v334_v0 = vadd.s32 520, %v5993_v33 }
 0x125   : > { %v4931_v8 = vadd.f32 %v4930_v3, %v4420_v7  ;;  %v1425_v3 = vld [vmem:[%s8429_s3 + $0x400] sm:$0xff]  ;;  %vm849_vm2 = vcmp.eq.s32.totalorder %v333_v61, %v6002_v38 }
 0x126   : > { %vm850_vm3 = vcmp.eq.s32.totalorder %v334_v0, %v6002_v38 }
 0x127   : > { %v4932_v15 = vadd.f32 %v4931_v8, %v4421_v14  ;;  %v2087_v16 = vpop.permute.xlu1 %2086  ;;  %v2082_v17 = vpop.permute.xlu0 %2081  ;;  %v335_v8 = vadd.s32 528, %v5993_v33  ;;  %v1428_v14 = vld [vmem:[%s8429_s3 + $0x418] sm:$0xff] }
 0x128   : > { %2406 = vperm.xlu1 %5576, %v1416_v10   ;;  %2401 = vperm.xlu0 %5575, %v1415_v11   ;;  %v4423_v25 = vsel %vm839_vm8, %v2082_v17, 0.0  ;;  %v4424_v30 = vsel %vm840_vm9, %v2087_v16, 0.0  ;;  %v336_v11 = vadd.s32 536, %v5993_v33 }
 0x129   : > { %v4933_v20 = vadd.f32 %v4932_v15, %v4422_v19  ;;  %v1427_v15 = vld [vmem:[%s8429_s3 + $0x410] sm:$0xff]  ;;  %vm851_vm4 = vcmp.eq.s32.totalorder %v335_v8, %v6002_v38 }
 0x12a   : > { %vm852_vm5 = vcmp.eq.s32.totalorder %v336_v11, %v6002_v38 }
 0x12b   : > { %v4934_v26 = vadd.f32 %v4933_v20, %v4423_v25  ;;  %v2097_v27 = vpop.permute.xlu1 %2096  ;;  %v2092_v28 = vpop.permute.xlu0 %2091  ;;  %v337_v20 = vadd.s32 544, %v5993_v33  ;;  %v1430_v25 = vld [vmem:[%s8429_s3 + $0x428] sm:$0xff] }
 0x12c   : > { %2416 = vperm.xlu1 %5576, %v1418_v23   ;;  %2411 = vperm.xlu0 %5575, %v1417_v24   ;;  %v4425_v36 = vsel %vm841_vm10, %v2092_v28, 0.0  ;;  %v4426_v42 = vsel %vm842_vm11, %v2097_v27, 0.0  ;;  %v338_v24 = vadd.s32 552, %v5993_v33 }
 0x12d   : > { %v4935_v31 = vadd.f32 %v4934_v26, %v4424_v30  ;;  %v1429_v26 = vld [vmem:[%s8429_s3 + $0x420] sm:$0xff]  ;;  %vm853_vm6 = vcmp.eq.s32.totalorder %v337_v20, %v6002_v38 }
 0x12e   : > { %vm854_vm7 = vcmp.eq.s32.totalorder %v338_v24, %v6002_v38 }
 0x12f   : > { %v4936_v37 = vadd.f32 %v4935_v31, %v4425_v36  ;;  %v2107_v39 = vpop.permute.xlu1 %2106  ;;  %v2102_v40 = vpop.permute.xlu0 %2101  ;;  %v339_v31 = vadd.s32 560, %v5993_v33  ;;  %v1432_v36 = vld [vmem:[%s8429_s3 + $0x438] sm:$0xff] }
 0x130   : > { %2426 = vperm.xlu1 %5576, %v1420_v34   ;;  %2421 = vperm.xlu0 %5575, %v1419_v35   ;;  %v4427_v47 = vsel %vm843_vm12, %v2102_v40, 0.0  ;;  %v4428_v52 = vsel %vm844_vm13, %v2107_v39, 0.0  ;;  %v340_v35 = vadd.s32 568, %v5993_v33 }
 0x131   : > { %v4937_v43 = vadd.f32 %v4936_v37, %v4426_v42  ;;  %v1431_v37 = vld [vmem:[%s8429_s3 + $0x430] sm:$0xff]  ;;  %vm855_vm8 = vcmp.eq.s32.totalorder %v339_v31, %v6002_v38 }
 0x132   : > { %vm856_vm9 = vcmp.eq.s32.totalorder %v340_v35, %v6002_v38 }
 0x133   : > { %v4938_v48 = vadd.f32 %v4937_v43, %v4427_v47  ;;  %v2117_v49 = vpop.permute.xlu1 %2116  ;;  %v2112_v50 = vpop.permute.xlu0 %2111  ;;  %v341_v43 = vadd.s32 576, %v5993_v33  ;;  %v1434_v47 = vld [vmem:[%s8429_s3 + $0x448] sm:$0xff] }
 0x134   : > { %2436 = vperm.xlu1 %5576, %v1422_v45   ;;  %2431 = vperm.xlu0 %5575, %v1421_v46   ;;  %v4429_v57 = vsel %vm845_vm14, %v2112_v50, 0.0  ;;  %v4430_v62 = vsel %vm846_vm15, %v2117_v49, 0.0  ;;  %v342_v46 = vadd.s32 584, %v5993_v33 }
 0x135   : > { %v4939_v53 = vadd.f32 %v4938_v48, %v4428_v52  ;;  %v1433_v48 = vld [vmem:[%s8429_s3 + $0x440] sm:$0xff]  ;;  %vm857_vm10 = vcmp.eq.s32.totalorder %v341_v43, %v6002_v38 }
 0x136   : > { %vm858_vm11 = vcmp.eq.s32.totalorder %v342_v46, %v6002_v38 }
 0x137   : > { %v4940_v58 = vadd.f32 %v4939_v53, %v4429_v57  ;;  %v2127_v59 = vpop.permute.xlu1 %2126  ;;  %v2122_v60 = vpop.permute.xlu0 %2121  ;;  %v343_v53 = vadd.s32 592, %v5993_v33  ;;  %v1436_v57 = vld [vmem:[%s8429_s3 + $0x458] sm:$0xff] }
 0x138   : > { %2446 = vperm.xlu1 %5576, %v1424_v55   ;;  %2441 = vperm.xlu0 %5575, %v1423_v56   ;;  %v4431_v4 = vsel %vm847_vm0, %v2122_v60, 0.0  ;;  %v4432_v9 = vsel %vm848_vm1, %v2127_v59, 0.0  ;;  %v344_v56 = vadd.s32 600, %v5993_v33 }
 0x139   : > { %v4941_v63 = vadd.f32 %v4940_v58, %v4430_v62  ;;  %v1435_v58 = vld [vmem:[%s8429_s3 + $0x450] sm:$0xff]  ;;  %vm859_vm12 = vcmp.eq.s32.totalorder %v343_v53, %v6002_v38 }
 0x13a   : > { %vm860_vm13 = vcmp.eq.s32.totalorder %v344_v56, %v6002_v38 }
 0x13b   : > { %v4942_v5 = vadd.f32 %v4941_v63, %v4431_v4  ;;  %v2137_v6 = vpop.permute.xlu1 %2136  ;;  %v2132_v7 = vpop.permute.xlu0 %2131  ;;  %v345_v63 = vadd.s32 608, %v5993_v33  ;;  %v1438_v4 = vld [vmem:[%s8429_s3 + $0x468] sm:$0xff] }
 0x13c   : > { %2456 = vperm.xlu1 %5576, %v1426_v1   ;;  %2451 = vperm.xlu0 %5575, %v1425_v3   ;;  %v4433_v16 = vsel %vm849_vm2, %v2132_v7, 0.0  ;;  %v4434_v21 = vsel %vm850_vm3, %v2137_v6, 0.0  ;;  %v346_v3 = vadd.s32 616, %v5993_v33 }
 0x13d   : > { %v4943_v10 = vadd.f32 %v4942_v5, %v4432_v9  ;;  %v1437_v5 = vld [vmem:[%s8429_s3 + $0x460] sm:$0xff]  ;;  %vm861_vm14 = vcmp.eq.s32.totalorder %v345_v63, %v6002_v38 }
 0x13e   : > { %vm862_vm15 = vcmp.eq.s32.totalorder %v346_v3, %v6002_v38 }
 0x13f   : > { %v4944_v17 = vadd.f32 %v4943_v10, %v4433_v16  ;;  %v2147_v18 = vpop.permute.xlu1 %2146  ;;  %v2142_v19 = vpop.permute.xlu0 %2141  ;;  %v347_v10 = vadd.s32 624, %v5993_v33  ;;  %v1440_v16 = vld [vmem:[%s8429_s3 + $0x478] sm:$0xff] }
 0x140   : > { %2466 = vperm.xlu1 %5576, %v1428_v14   ;;  %2461 = vperm.xlu0 %5575, %v1427_v15   ;;  %v4435_v27 = vsel %vm851_vm4, %v2142_v19, 0.0  ;;  %v4436_v32 = vsel %vm852_vm5, %v2147_v18, 0.0  ;;  %v348_v15 = vadd.s32 632, %v5993_v33 }
 0x141   : > { %v4945_v23 = vadd.f32 %v4944_v17, %v4434_v21  ;;  %v1439_v17 = vld [vmem:[%s8429_s3 + $0x470] sm:$0xff]  ;;  %vm863_vm0 = vcmp.eq.s32.totalorder %v347_v10, %v6002_v38 }
 0x142   : > { %vm864_vm1 = vcmp.eq.s32.totalorder %v348_v15, %v6002_v38 }
 0x143   : > { %v4946_v28 = vadd.f32 %v4945_v23, %v4435_v27  ;;  %v2157_v29 = vpop.permute.xlu1 %2156  ;;  %v2152_v30 = vpop.permute.xlu0 %2151  ;;  %v349_v23 = vadd.s32 640, %v5993_v33  ;;  %v1442_v27 = vld [vmem:[%s8429_s3 + $0x488] sm:$0xff] }
 0x144   : > { %2476 = vperm.xlu1 %5576, %v1430_v25   ;;  %2471 = vperm.xlu0 %5575, %v1429_v26   ;;  %v4437_v39 = vsel %vm853_vm6, %v2152_v30, 0.0  ;;  %v4438_v44 = vsel %vm854_vm7, %v2157_v29, 0.0  ;;  %v350_v26 = vadd.s32 648, %v5993_v33 }
 0x145   : > { %v4947_v34 = vadd.f32 %v4946_v28, %v4436_v32  ;;  %v1441_v28 = vld [vmem:[%s8429_s3 + $0x480] sm:$0xff]  ;;  %vm865_vm2 = vcmp.eq.s32.totalorder %v349_v23, %v6002_v38 }
 0x146   : > { %vm866_vm3 = vcmp.eq.s32.totalorder %v350_v26, %v6002_v38 }
 0x147   : > { %v4948_v40 = vadd.f32 %v4947_v34, %v4437_v39  ;;  %v2167_v41 = vpop.permute.xlu1 %2166  ;;  %v2162_v42 = vpop.permute.xlu0 %2161  ;;  %v351_v34 = vadd.s32 656, %v5993_v33  ;;  %v1444_v39 = vld [vmem:[%s8429_s3 + $0x498] sm:$0xff] }
 0x148   : > { %2486 = vperm.xlu1 %5576, %v1432_v36   ;;  %2481 = vperm.xlu0 %5575, %v1431_v37   ;;  %v4439_v49 = vsel %vm855_vm8, %v2162_v42, 0.0  ;;  %v4440_v54 = vsel %vm856_vm9, %v2167_v41, 0.0  ;;  %v352_v37 = vadd.s32 664, %v5993_v33 }
 0x149   : > { %v4949_v45 = vadd.f32 %v4948_v40, %v4438_v44  ;;  %v1443_v40 = vld [vmem:[%s8429_s3 + $0x490] sm:$0xff]  ;;  %vm867_vm4 = vcmp.eq.s32.totalorder %v351_v34, %v6002_v38 }
 0x14a   : > { %vm868_vm5 = vcmp.eq.s32.totalorder %v352_v37, %v6002_v38 }
 0x14b   : > { %v4950_v50 = vadd.f32 %v4949_v45, %v4439_v49  ;;  %v2177_v51 = vpop.permute.xlu1 %2176  ;;  %v2172_v52 = vpop.permute.xlu0 %2171  ;;  %v353_v45 = vadd.s32 672, %v5993_v33  ;;  %v1446_v49 = vld [vmem:[%s8429_s3 + $0x4a8] sm:$0xff] }
 0x14c   : > { %2496 = vperm.xlu1 %5576, %v1434_v47   ;;  %2491 = vperm.xlu0 %5575, %v1433_v48   ;;  %v4441_v59 = vsel %vm857_vm10, %v2172_v52, 0.0  ;;  %v4442_v0 = vsel %vm858_vm11, %v2177_v51, 0.0  ;;  %v354_v48 = vadd.s32 680, %v5993_v33 }
 0x14d   : > { %v4951_v55 = vadd.f32 %v4950_v50, %v4440_v54  ;;  %v1445_v50 = vld [vmem:[%s8429_s3 + $0x4a0] sm:$0xff]  ;;  %vm869_vm6 = vcmp.eq.s32.totalorder %v353_v45, %v6002_v38 }
 0x14e   : > { %vm870_vm7 = vcmp.eq.s32.totalorder %v354_v48, %v6002_v38 }
 0x14f   : > { %v4952_v60 = vadd.f32 %v4951_v55, %v4441_v59  ;;  %v2187_v61 = vpop.permute.xlu1 %2186  ;;  %v2182_v62 = vpop.permute.xlu0 %2181  ;;  %v355_v55 = vadd.s32 688, %v5993_v33  ;;  %v1448_v59 = vld [vmem:[%s8429_s3 + $0x4b8] sm:$0xff] }
 0x150   : > { %2506 = vperm.xlu1 %5576, %v1436_v57   ;;  %2501 = vperm.xlu0 %5575, %v1435_v58   ;;  %v4443_v6 = vsel %vm859_vm12, %v2182_v62, 0.0  ;;  %v4444_v11 = vsel %vm860_vm13, %v2187_v61, 0.0  ;;  %v356_v58 = vadd.s32 696, %v5993_v33 }
 0x151   : > { %v4953_v1 = vadd.f32 %v4952_v60, %v4442_v0  ;;  %v1447_v60 = vld [vmem:[%s8429_s3 + $0x4b0] sm:$0xff]  ;;  %vm871_vm8 = vcmp.eq.s32.totalorder %v355_v55, %v6002_v38 }
 0x152   : > { %vm872_vm9 = vcmp.eq.s32.totalorder %v356_v58, %v6002_v38 }
 0x153   : > { %v4954_v7 = vadd.f32 %v4953_v1, %v4443_v6  ;;  %v2197_v8 = vpop.permute.xlu1 %2196  ;;  %v2192_v9 = vpop.permute.xlu0 %2191  ;;  %v357_v1 = vadd.s32 704, %v5993_v33  ;;  %v1450_v6 = vld [vmem:[%s8429_s3 + $0x4c8] sm:$0xff] }
 0x154   : > { %2516 = vperm.xlu1 %5576, %v1438_v4   ;;  %2511 = vperm.xlu0 %5575, %v1437_v5   ;;  %v4445_v18 = vsel %vm861_vm14, %v2192_v9, 0.0  ;;  %v4446_v24 = vsel %vm862_vm15, %v2197_v8, 0.0  ;;  %v358_v5 = vadd.s32 712, %v5993_v33 }
 0x155   : > { %v4955_v14 = vadd.f32 %v4954_v7, %v4444_v11  ;;  %v1449_v7 = vld [vmem:[%s8429_s3 + $0x4c0] sm:$0xff]  ;;  %vm873_vm10 = vcmp.eq.s32.totalorder %v357_v1, %v6002_v38 }
 0x156   : > { %vm874_vm11 = vcmp.eq.s32.totalorder %v358_v5, %v6002_v38 }
 0x157   : > { %v4956_v19 = vadd.f32 %v4955_v14, %v4445_v18  ;;  %v2207_v20 = vpop.permute.xlu1 %2206  ;;  %v2202_v21 = vpop.permute.xlu0 %2201  ;;  %v359_v14 = vadd.s32 720, %v5993_v33  ;;  %v1452_v18 = vld [vmem:[%s8429_s3 + $0x4d8] sm:$0xff] }
 0x158   : > { %2526 = vperm.xlu1 %5576, %v1440_v16   ;;  %2521 = vperm.xlu0 %5575, %v1439_v17   ;;  %v4447_v29 = vsel %vm863_vm0, %v2202_v21, 0.0  ;;  %v4448_v35 = vsel %vm864_vm1, %v2207_v20, 0.0  ;;  %v360_v17 = vadd.s32 728, %v5993_v33 }
 0x159   : > { %v4957_v25 = vadd.f32 %v4956_v19, %v4446_v24  ;;  %v1451_v19 = vld [vmem:[%s8429_s3 + $0x4d0] sm:$0xff]  ;;  %vm875_vm12 = vcmp.eq.s32.totalorder %v359_v14, %v6002_v38 }
 0x15a   : > { %vm876_vm13 = vcmp.eq.s32.totalorder %v360_v17, %v6002_v38 }
 0x15b   : > { %v4958_v30 = vadd.f32 %v4957_v25, %v4447_v29  ;;  %v2217_v31 = vpop.permute.xlu1 %2216  ;;  %v2212_v32 = vpop.permute.xlu0 %2211  ;;  %v361_v25 = vadd.s32 736, %v5993_v33  ;;  %v1454_v29 = vld [vmem:[%s8429_s3 + $0x4e8] sm:$0xff] }
 0x15c   : > { %2536 = vperm.xlu1 %5576, %v1442_v27   ;;  %2531 = vperm.xlu0 %5575, %v1441_v28   ;;  %v4449_v41 = vsel %vm865_vm2, %v2212_v32, 0.0  ;;  %v4450_v46 = vsel %vm866_vm3, %v2217_v31, 0.0  ;;  %v362_v28 = vadd.s32 744, %v5993_v33 }
 0x15d   : > { %v4959_v36 = vadd.f32 %v4958_v30, %v4448_v35  ;;  %v1453_v30 = vld [vmem:[%s8429_s3 + $0x4e0] sm:$0xff]  ;;  %vm877_vm14 = vcmp.eq.s32.totalorder %v361_v25, %v6002_v38 }
 0x15e   : > { %vm878_vm15 = vcmp.eq.s32.totalorder %v362_v28, %v6002_v38 }
 0x15f   : > { %v4960_v42 = vadd.f32 %v4959_v36, %v4449_v41  ;;  %v2227_v43 = vpop.permute.xlu1 %2226  ;;  %v2222_v44 = vpop.permute.xlu0 %2221  ;;  %v363_v36 = vadd.s32 752, %v5993_v33  ;;  %v1456_v41 = vld [vmem:[%s8429_s3 + $0x4f8] sm:$0xff] }
 0x160   : > { %2546 = vperm.xlu1 %5576, %v1444_v39   ;;  %2541 = vperm.xlu0 %5575, %v1443_v40   ;;  %v4451_v51 = vsel %vm867_vm4, %v2222_v44, 0.0  ;;  %v4452_v56 = vsel %vm868_vm5, %v2227_v43, 0.0  ;;  %v364_v40 = vadd.s32 760, %v5993_v33 }
 0x161   : > { %v4961_v47 = vadd.f32 %v4960_v42, %v4450_v46  ;;  %v1455_v42 = vld [vmem:[%s8429_s3 + $0x4f0] sm:$0xff]  ;;  %vm879_vm0 = vcmp.eq.s32.totalorder %v363_v36, %v6002_v38 }
 0x162   : > { %vm880_vm1 = vcmp.eq.s32.totalorder %v364_v40, %v6002_v38 }
 0x163   : > { %v4962_v52 = vadd.f32 %v4961_v47, %v4451_v51  ;;  %v2237_v53 = vpop.permute.xlu1 %2236  ;;  %v2232_v54 = vpop.permute.xlu0 %2231  ;;  %v365_v47 = vadd.s32 768, %v5993_v33  ;;  %v1458_v51 = vld [vmem:[%s8429_s3 + $0x508] sm:$0xff] }
 0x164   : > { %2556 = vperm.xlu1 %5576, %v1446_v49   ;;  %2551 = vperm.xlu0 %5575, %v1445_v50   ;;  %v4453_v61 = vsel %vm869_vm6, %v2232_v54, 0.0  ;;  %v4454_v3 = vsel %vm870_vm7, %v2237_v53, 0.0  ;;  %v366_v50 = vadd.s32 776, %v5993_v33 }
 0x165   : > { %v4963_v57 = vadd.f32 %v4962_v52, %v4452_v56  ;;  %v1457_v52 = vld [vmem:[%s8429_s3 + $0x500] sm:$0xff]  ;;  %vm881_vm2 = vcmp.eq.s32.totalorder %v365_v47, %v6002_v38 }
 0x166   : > { %vm882_vm3 = vcmp.eq.s32.totalorder %v366_v50, %v6002_v38 }
 0x167   : > { %v4964_v62 = vadd.f32 %v4963_v57, %v4453_v61  ;;  %v2247_v63 = vpop.permute.xlu1 %2246  ;;  %v2242_v0 = vpop.permute.xlu0 %2241  ;;  %v367_v57 = vadd.s32 784, %v5993_v33  ;;  %v1460_v61 = vld [vmem:[%s8429_s3 + $0x518] sm:$0xff] }
 0x168   : > { %2566 = vperm.xlu1 %5576, %v1448_v59   ;;  %2561 = vperm.xlu0 %5575, %v1447_v60   ;;  %v4455_v8 = vsel %vm871_vm8, %v2242_v0, 0.0  ;;  %v4456_v15 = vsel %vm872_vm9, %v2247_v63, 0.0  ;;  %v368_v60 = vadd.s32 792, %v5993_v33 }
 0x169   : > { %v4965_v4 = vadd.f32 %v4964_v62, %v4454_v3  ;;  %v1459_v62 = vld [vmem:[%s8429_s3 + $0x510] sm:$0xff]  ;;  %vm883_vm4 = vcmp.eq.s32.totalorder %v367_v57, %v6002_v38 }
 0x16a   : > { %vm884_vm5 = vcmp.eq.s32.totalorder %v368_v60, %v6002_v38 }
 0x16b   : > { %v4966_v9 = vadd.f32 %v4965_v4, %v4455_v8  ;;  %v2257_v10 = vpop.permute.xlu1 %2256  ;;  %v2252_v11 = vpop.permute.xlu0 %2251  ;;  %v369_v4 = vadd.s32 800, %v5993_v33  ;;  %v1462_v8 = vld [vmem:[%s8429_s3 + $0x528] sm:$0xff] }
 0x16c   : > { %2576 = vperm.xlu1 %5576, %v1450_v6   ;;  %2571 = vperm.xlu0 %5575, %v1449_v7   ;;  %v4457_v20 = vsel %vm873_vm10, %v2252_v11, 0.0  ;;  %v4458_v26 = vsel %vm874_vm11, %v2257_v10, 0.0  ;;  %v370_v7 = vadd.s32 808, %v5993_v33 }
 0x16d   : > { %v4967_v16 = vadd.f32 %v4966_v9, %v4456_v15  ;;  %v1461_v9 = vld [vmem:[%s8429_s3 + $0x520] sm:$0xff]  ;;  %vm885_vm6 = vcmp.eq.s32.totalorder %v369_v4, %v6002_v38 }
 0x16e   : > { %vm886_vm7 = vcmp.eq.s32.totalorder %v370_v7, %v6002_v38 }
 0x16f   : > { %v4968_v21 = vadd.f32 %v4967_v16, %v4457_v20  ;;  %v2267_v23 = vpop.permute.xlu1 %2266  ;;  %v2262_v24 = vpop.permute.xlu0 %2261  ;;  %v371_v16 = vadd.s32 816, %v5993_v33  ;;  %v1464_v20 = vld [vmem:[%s8429_s3 + $0x538] sm:$0xff] }
 0x170   : > { %2586 = vperm.xlu1 %5576, %v1452_v18   ;;  %2581 = vperm.xlu0 %5575, %v1451_v19   ;;  %v4459_v31 = vsel %vm875_vm12, %v2262_v24, 0.0  ;;  %v4460_v37 = vsel %vm876_vm13, %v2267_v23, 0.0  ;;  %v372_v19 = vadd.s32 824, %v5993_v33 }
 0x171   : > { %v4969_v27 = vadd.f32 %v4968_v21, %v4458_v26  ;;  %v1463_v21 = vld [vmem:[%s8429_s3 + $0x530] sm:$0xff]  ;;  %vm887_vm8 = vcmp.eq.s32.totalorder %v371_v16, %v6002_v38 }
 0x172   : > { %vm888_vm9 = vcmp.eq.s32.totalorder %v372_v19, %v6002_v38 }
 0x173   : > { %v4970_v32 = vadd.f32 %v4969_v27, %v4459_v31  ;;  %v2277_v34 = vpop.permute.xlu1 %2276  ;;  %v2272_v35 = vpop.permute.xlu0 %2271  ;;  %v373_v27 = vadd.s32 832, %v5993_v33  ;;  %v1466_v31 = vld [vmem:[%s8429_s3 + $0x548] sm:$0xff] }
 0x174   : > { %2596 = vperm.xlu1 %5576, %v1454_v29   ;;  %2591 = vperm.xlu0 %5575, %v1453_v30   ;;  %v4461_v43 = vsel %vm877_vm14, %v2272_v35, 0.0  ;;  %v4462_v48 = vsel %vm878_vm15, %v2277_v34, 0.0  ;;  %v374_v30 = vadd.s32 840, %v5993_v33 }
 0x175   : > { %v4971_v39 = vadd.f32 %v4970_v32, %v4460_v37  ;;  %v1465_v32 = vld [vmem:[%s8429_s3 + $0x540] sm:$0xff]  ;;  %vm889_vm10 = vcmp.eq.s32.totalorder %v373_v27, %v6002_v38 }
 0x176   : > { %vm890_vm11 = vcmp.eq.s32.totalorder %v374_v30, %v6002_v38 }
 0x177   : > { %v4972_v44 = vadd.f32 %v4971_v39, %v4461_v43  ;;  %v2287_v45 = vpop.permute.xlu1 %2286  ;;  %v2282_v46 = vpop.permute.xlu0 %2281  ;;  %v375_v39 = vadd.s32 848, %v5993_v33  ;;  %v1468_v43 = vld [vmem:[%s8429_s3 + $0x558] sm:$0xff] }
 0x178   : > { %2606 = vperm.xlu1 %5576, %v1456_v41   ;;  %2601 = vperm.xlu0 %5575, %v1455_v42   ;;  %v4463_v53 = vsel %vm879_vm0, %v2282_v46, 0.0  ;;  %v4464_v58 = vsel %vm880_vm1, %v2287_v45, 0.0  ;;  %v376_v42 = vadd.s32 856, %v5993_v33 }
 0x179   : > { %v4973_v49 = vadd.f32 %v4972_v44, %v4462_v48  ;;  %v1467_v44 = vld [vmem:[%s8429_s3 + $0x550] sm:$0xff]  ;;  %vm891_vm12 = vcmp.eq.s32.totalorder %v375_v39, %v6002_v38 }
 0x17a   : > { %vm892_vm13 = vcmp.eq.s32.totalorder %v376_v42, %v6002_v38 }
 0x17b   : > { %v4974_v54 = vadd.f32 %v4973_v49, %v4463_v53  ;;  %v2297_v55 = vpop.permute.xlu1 %2296  ;;  %v2292_v56 = vpop.permute.xlu0 %2291  ;;  %v377_v49 = vadd.s32 864, %v5993_v33  ;;  %v1470_v53 = vld [vmem:[%s8429_s3 + $0x568] sm:$0xff] }
 0x17c   : > { %2616 = vperm.xlu1 %5576, %v1458_v51   ;;  %2611 = vperm.xlu0 %5575, %v1457_v52   ;;  %v4465_v63 = vsel %vm881_vm2, %v2292_v56, 0.0  ;;  %v4466_v5 = vsel %vm882_vm3, %v2297_v55, 0.0  ;;  %v378_v52 = vadd.s32 872, %v5993_v33 }
 0x17d   : > { %v4975_v59 = vadd.f32 %v4974_v54, %v4464_v58  ;;  %v1469_v54 = vld [vmem:[%s8429_s3 + $0x560] sm:$0xff]  ;;  %vm893_vm14 = vcmp.eq.s32.totalorder %v377_v49, %v6002_v38 }
 0x17e   : > { %vm894_vm15 = vcmp.eq.s32.totalorder %v378_v52, %v6002_v38 }
 0x17f   : > { %v4976_v0 = vadd.f32 %v4975_v59, %v4465_v63  ;;  %v2307_v1 = vpop.permute.xlu1 %2306  ;;  %v2302_v3 = vpop.permute.xlu0 %2301  ;;  %v379_v59 = vadd.s32 880, %v5993_v33  ;;  %v1472_v63 = vld [vmem:[%s8429_s3 + $0x578] sm:$0xff] }
 0x180   : > { %2626 = vperm.xlu1 %5576, %v1460_v61   ;;  %2621 = vperm.xlu0 %5575, %v1459_v62   ;;  %v4467_v10 = vsel %vm883_vm4, %v2302_v3, 0.0  ;;  %v4468_v17 = vsel %vm884_vm5, %v2307_v1, 0.0  ;;  %v380_v62 = vadd.s32 888, %v5993_v33 }
 0x181   : > { %v4977_v6 = vadd.f32 %v4976_v0, %v4466_v5  ;;  %v1471_v0 = vld [vmem:[%s8429_s3 + $0x570] sm:$0xff]  ;;  %vm895_vm0 = vcmp.eq.s32.totalorder %v379_v59, %v6002_v38 }
 0x182   : > { %vm896_vm1 = vcmp.eq.s32.totalorder %v380_v62, %v6002_v38 }
 0x183   : > { %v4978_v11 = vadd.f32 %v4977_v6, %v4467_v10  ;;  %v2317_v14 = vpop.permute.xlu1 %2316  ;;  %v2312_v15 = vpop.permute.xlu0 %2311  ;;  %v381_v6 = vadd.s32 896, %v5993_v33  ;;  %v1474_v10 = vld [vmem:[%s8429_s3 + $0x588] sm:$0xff] }
 0x184   : > { %2636 = vperm.xlu1 %5576, %v1462_v8   ;;  %2631 = vperm.xlu0 %5575, %v1461_v9   ;;  %v4469_v23 = vsel %vm885_vm6, %v2312_v15, 0.0  ;;  %v4470_v28 = vsel %vm886_vm7, %v2317_v14, 0.0  ;;  %v382_v9 = vadd.s32 904, %v5993_v33 }
 0x185   : > { %v4979_v18 = vadd.f32 %v4978_v11, %v4468_v17  ;;  %v1473_v11 = vld [vmem:[%s8429_s3 + $0x580] sm:$0xff]  ;;  %vm897_vm2 = vcmp.eq.s32.totalorder %v381_v6, %v6002_v38 }
 0x186   : > { %vm898_vm3 = vcmp.eq.s32.totalorder %v382_v9, %v6002_v38 }
 0x187   : > { %v4980_v24 = vadd.f32 %v4979_v18, %v4469_v23  ;;  %v2327_v25 = vpop.permute.xlu1 %2326  ;;  %v2322_v26 = vpop.permute.xlu0 %2321  ;;  %v383_v18 = vadd.s32 912, %v5993_v33  ;;  %v1476_v23 = vld [vmem:[%s8429_s3 + $0x598] sm:$0xff] }
 0x188   : > { %2646 = vperm.xlu1 %5576, %v1464_v20   ;;  %2641 = vperm.xlu0 %5575, %v1463_v21   ;;  %v4471_v34 = vsel %vm887_vm8, %v2322_v26, 0.0  ;;  %v4472_v40 = vsel %vm888_vm9, %v2327_v25, 0.0  ;;  %v384_v21 = vadd.s32 920, %v5993_v33 }
 0x189   : > { %v4981_v29 = vadd.f32 %v4980_v24, %v4470_v28  ;;  %v1475_v24 = vld [vmem:[%s8429_s3 + $0x590] sm:$0xff]  ;;  %vm899_vm4 = vcmp.eq.s32.totalorder %v383_v18, %v6002_v38 }
 0x18a   : > { %vm900_vm5 = vcmp.eq.s32.totalorder %v384_v21, %v6002_v38 }
 0x18b   : > { %v4982_v35 = vadd.f32 %v4981_v29, %v4471_v34  ;;  %v2337_v36 = vpop.permute.xlu1 %2336  ;;  %v2332_v37 = vpop.permute.xlu0 %2331  ;;  %v385_v29 = vadd.s32 928, %v5993_v33  ;;  %v1478_v34 = vld [vmem:[%s8429_s3 + $0x5a8] sm:$0xff] }
 0x18c   : > { %2656 = vperm.xlu1 %5576, %v1466_v31   ;;  %2651 = vperm.xlu0 %5575, %v1465_v32   ;;  %v4473_v45 = vsel %vm889_vm10, %v2332_v37, 0.0  ;;  %v4474_v50 = vsel %vm890_vm11, %v2337_v36, 0.0  ;;  %v386_v32 = vadd.s32 936, %v5993_v33 }
 0x18d   : > { %v4983_v41 = vadd.f32 %v4982_v35, %v4472_v40  ;;  %v1477_v35 = vld [vmem:[%s8429_s3 + $0x5a0] sm:$0xff]  ;;  %vm901_vm6 = vcmp.eq.s32.totalorder %v385_v29, %v6002_v38 }
 0x18e   : > { %vm902_vm7 = vcmp.eq.s32.totalorder %v386_v32, %v6002_v38 }
 0x18f   : > { %v4984_v46 = vadd.f32 %v4983_v41, %v4473_v45  ;;  %v2347_v47 = vpop.permute.xlu1 %2346  ;;  %v2342_v48 = vpop.permute.xlu0 %2341  ;;  %v387_v41 = vadd.s32 944, %v5993_v33  ;;  %v1480_v45 = vld [vmem:[%s8429_s3 + $0x5b8] sm:$0xff] }
 0x190   : > { %2666 = vperm.xlu1 %5576, %v1468_v43   ;;  %2661 = vperm.xlu0 %5575, %v1467_v44   ;;  %v4475_v55 = vsel %vm891_vm12, %v2342_v48, 0.0  ;;  %v4476_v60 = vsel %vm892_vm13, %v2347_v47, 0.0  ;;  %v388_v44 = vadd.s32 952, %v5993_v33 }
 0x191   : > { %v4985_v51 = vadd.f32 %v4984_v46, %v4474_v50  ;;  %v1479_v46 = vld [vmem:[%s8429_s3 + $0x5b0] sm:$0xff]  ;;  %vm903_vm8 = vcmp.eq.s32.totalorder %v387_v41, %v6002_v38 }
 0x192   : > { %vm904_vm9 = vcmp.eq.s32.totalorder %v388_v44, %v6002_v38 }
 0x193   : > { %v4986_v56 = vadd.f32 %v4985_v51, %v4475_v55  ;;  %v2357_v57 = vpop.permute.xlu1 %2356  ;;  %v2352_v58 = vpop.permute.xlu0 %2351  ;;  %v389_v51 = vadd.s32 960, %v5993_v33  ;;  %v1482_v55 = vld [vmem:[%s8429_s3 + $0x5c8] sm:$0xff] }
 0x194   : > { %2676 = vperm.xlu1 %5576, %v1470_v53   ;;  %2671 = vperm.xlu0 %5575, %v1469_v54   ;;  %v4477_v1 = vsel %vm893_vm14, %v2352_v58, 0.0  ;;  %v4478_v7 = vsel %vm894_vm15, %v2357_v57, 0.0  ;;  %v390_v54 = vadd.s32 968, %v5993_v33 }
 0x195   : > { %v4987_v61 = vadd.f32 %v4986_v56, %v4476_v60  ;;  %v1481_v56 = vld [vmem:[%s8429_s3 + $0x5c0] sm:$0xff]  ;;  %vm905_vm10 = vcmp.eq.s32.totalorder %v389_v51, %v6002_v38 }
 0x196   : > { %vm906_vm11 = vcmp.eq.s32.totalorder %v390_v54, %v6002_v38 }
 0x197   : > { %v4988_v3 = vadd.f32 %v4987_v61, %v4477_v1  ;;  %v2367_v4 = vpop.permute.xlu1 %2366  ;;  %v2362_v5 = vpop.permute.xlu0 %2361  ;;  %v391_v61 = vadd.s32 976, %v5993_v33  ;;  %v1484_v1 = vld [vmem:[%s8429_s3 + $0x5d8] sm:$0xff] }
 0x198   : > { %2686 = vperm.xlu1 %5576, %v1472_v63   ;;  %2681 = vperm.xlu0 %5575, %v1471_v0   ;;  %v4479_v14 = vsel %vm895_vm0, %v2362_v5, 0.0  ;;  %v4480_v19 = vsel %vm896_vm1, %v2367_v4, 0.0  ;;  %v392_v0 = vadd.s32 984, %v5993_v33 }
 0x199   : > { %v4989_v8 = vadd.f32 %v4988_v3, %v4478_v7  ;;  %v1483_v3 = vld [vmem:[%s8429_s3 + $0x5d0] sm:$0xff]  ;;  %vm907_vm12 = vcmp.eq.s32.totalorder %v391_v61, %v6002_v38 }
 0x19a   : > { %vm908_vm13 = vcmp.eq.s32.totalorder %v392_v0, %v6002_v38 }
 0x19b   : > { %v4990_v15 = vadd.f32 %v4989_v8, %v4479_v14  ;;  %v2377_v16 = vpop.permute.xlu1 %2376  ;;  %v2372_v17 = vpop.permute.xlu0 %2371  ;;  %v393_v8 = vadd.s32 992, %v5993_v33  ;;  %v1486_v14 = vld [vmem:[%s8429_s3 + $0x5e8] sm:$0xff] }
 0x19c   : > { %2696 = vperm.xlu1 %5576, %v1474_v10   ;;  %2691 = vperm.xlu0 %5575, %v1473_v11   ;;  %v4481_v25 = vsel %vm897_vm2, %v2372_v17, 0.0  ;;  %v4482_v30 = vsel %vm898_vm3, %v2377_v16, 0.0  ;;  %v394_v11 = vadd.s32 1000, %v5993_v33 }
 0x19d   : > { %v4991_v20 = vadd.f32 %v4990_v15, %v4480_v19  ;;  %v1485_v15 = vld [vmem:[%s8429_s3 + $0x5e0] sm:$0xff]  ;;  %vm909_vm14 = vcmp.eq.s32.totalorder %v393_v8, %v6002_v38 }
 0x19e   : > { %vm910_vm15 = vcmp.eq.s32.totalorder %v394_v11, %v6002_v38 }
 0x19f   : > { %v4992_v26 = vadd.f32 %v4991_v20, %v4481_v25  ;;  %v2387_v27 = vpop.permute.xlu1 %2386  ;;  %v2382_v28 = vpop.permute.xlu0 %2381  ;;  %v395_v20 = vadd.s32 1008, %v5993_v33  ;;  %v1488_v25 = vld [vmem:[%s8429_s3 + $0x5f8] sm:$0xff] }
 0x1a0   : > { %2706 = vperm.xlu1 %5576, %v1476_v23   ;;  %2701 = vperm.xlu0 %5575, %v1475_v24   ;;  %v4483_v36 = vsel %vm899_vm4, %v2382_v28, 0.0  ;;  %v4484_v42 = vsel %vm900_vm5, %v2387_v27, 0.0  ;;  %v396_v24 = vadd.s32 1016, %v5993_v33 }
 0x1a1   : > { %v4993_v31 = vadd.f32 %v4992_v26, %v4482_v30  ;;  %v1487_v26 = vld [vmem:[%s8429_s3 + $0x5f0] sm:$0xff]  ;;  %vm911_vm0 = vcmp.eq.s32.totalorder %v395_v20, %v6002_v38 }
 0x1a2   : > { %vm912_vm1 = vcmp.eq.s32.totalorder %v396_v24, %v6002_v38 }
 0x1a3   : > { %v4994_v37 = vadd.f32 %v4993_v31, %v4483_v36  ;;  %v2397_v39 = vpop.permute.xlu1 %2396  ;;  %v2392_v40 = vpop.permute.xlu0 %2391  ;;  %v397_v31 = vadd.s32 1024, %v5993_v33  ;;  %v1490_v36 = vld [vmem:[%s8429_s3 + $0x608] sm:$0xff] }
 0x1a4   : > { %2716 = vperm.xlu1 %5576, %v1478_v34   ;;  %2711 = vperm.xlu0 %5575, %v1477_v35   ;;  %v4485_v47 = vsel %vm901_vm6, %v2392_v40, 0.0  ;;  %v4486_v52 = vsel %vm902_vm7, %v2397_v39, 0.0  ;;  %v398_v35 = vadd.s32 1032, %v5993_v33 }
 0x1a5   : > { %v4995_v43 = vadd.f32 %v4994_v37, %v4484_v42  ;;  %v1489_v37 = vld [vmem:[%s8429_s3 + $0x600] sm:$0xff]  ;;  %vm913_vm2 = vcmp.eq.s32.totalorder %v397_v31, %v6002_v38 }
 0x1a6   : > { %vm914_vm3 = vcmp.eq.s32.totalorder %v398_v35, %v6002_v38 }
 0x1a7   : > { %v4996_v48 = vadd.f32 %v4995_v43, %v4485_v47  ;;  %v2407_v49 = vpop.permute.xlu1 %2406  ;;  %v2402_v50 = vpop.permute.xlu0 %2401  ;;  %v399_v43 = vadd.s32 1040, %v5993_v33  ;;  %v1492_v47 = vld [vmem:[%s8429_s3 + $0x618] sm:$0xff] }
 0x1a8   : > { %2726 = vperm.xlu1 %5576, %v1480_v45   ;;  %2721 = vperm.xlu0 %5575, %v1479_v46   ;;  %v4487_v57 = vsel %vm903_vm8, %v2402_v50, 0.0  ;;  %v4488_v62 = vsel %vm904_vm9, %v2407_v49, 0.0  ;;  %v400_v46 = vadd.s32 1048, %v5993_v33 }
 0x1a9   : > { %v4997_v53 = vadd.f32 %v4996_v48, %v4486_v52  ;;  %v1491_v48 = vld [vmem:[%s8429_s3 + $0x610] sm:$0xff]  ;;  %vm915_vm4 = vcmp.eq.s32.totalorder %v399_v43, %v6002_v38 }
 0x1aa   : > { %vm916_vm5 = vcmp.eq.s32.totalorder %v400_v46, %v6002_v38 }
 0x1ab   : > { %v4998_v58 = vadd.f32 %v4997_v53, %v4487_v57  ;;  %v2417_v59 = vpop.permute.xlu1 %2416  ;;  %v2412_v60 = vpop.permute.xlu0 %2411  ;;  %v401_v53 = vadd.s32 1056, %v5993_v33  ;;  %v1494_v57 = vld [vmem:[%s8429_s3 + $0x628] sm:$0xff] }
 0x1ac   : > { %2736 = vperm.xlu1 %5576, %v1482_v55   ;;  %2731 = vperm.xlu0 %5575, %v1481_v56   ;;  %v4489_v4 = vsel %vm905_vm10, %v2412_v60, 0.0  ;;  %v4490_v9 = vsel %vm906_vm11, %v2417_v59, 0.0  ;;  %v402_v56 = vadd.s32 1064, %v5993_v33 }
 0x1ad   : > { %v4999_v63 = vadd.f32 %v4998_v58, %v4488_v62  ;;  %v1493_v58 = vld [vmem:[%s8429_s3 + $0x620] sm:$0xff]  ;;  %vm917_vm6 = vcmp.eq.s32.totalorder %v401_v53, %v6002_v38 }
 0x1ae   : > { %vm918_vm7 = vcmp.eq.s32.totalorder %v402_v56, %v6002_v38 }
 0x1af   : > { %v5000_v5 = vadd.f32 %v4999_v63, %v4489_v4  ;;  %v2427_v6 = vpop.permute.xlu1 %2426  ;;  %v2422_v7 = vpop.permute.xlu0 %2421  ;;  %v403_v63 = vadd.s32 1072, %v5993_v33  ;;  %v1496_v4 = vld [vmem:[%s8429_s3 + $0x638] sm:$0xff] }
 0x1b0   : > { %2746 = vperm.xlu1 %5576, %v1484_v1   ;;  %2741 = vperm.xlu0 %5575, %v1483_v3   ;;  %v4491_v16 = vsel %vm907_vm12, %v2422_v7, 0.0  ;;  %v4492_v21 = vsel %vm908_vm13, %v2427_v6, 0.0  ;;  %v404_v3 = vadd.s32 1080, %v5993_v33 }
 0x1b1   : > { %v5001_v10 = vadd.f32 %v5000_v5, %v4490_v9  ;;  %v1495_v5 = vld [vmem:[%s8429_s3 + $0x630] sm:$0xff]  ;;  %vm919_vm8 = vcmp.eq.s32.totalorder %v403_v63, %v6002_v38 }
 0x1b2   : > { %vm920_vm9 = vcmp.eq.s32.totalorder %v404_v3, %v6002_v38 }
 0x1b3   : > { %v5002_v17 = vadd.f32 %v5001_v10, %v4491_v16  ;;  %v2437_v18 = vpop.permute.xlu1 %2436  ;;  %v2432_v19 = vpop.permute.xlu0 %2431  ;;  %v405_v10 = vadd.s32 1088, %v5993_v33  ;;  %v1498_v16 = vld [vmem:[%s8429_s3 + $0x648] sm:$0xff] }
 0x1b4   : > { %2756 = vperm.xlu1 %5576, %v1486_v14   ;;  %2751 = vperm.xlu0 %5575, %v1485_v15   ;;  %v4493_v27 = vsel %vm909_vm14, %v2432_v19, 0.0  ;;  %v4494_v32 = vsel %vm910_vm15, %v2437_v18, 0.0  ;;  %v406_v15 = vadd.s32 1096, %v5993_v33 }
 0x1b5   : > { %v5003_v23 = vadd.f32 %v5002_v17, %v4492_v21  ;;  %v1497_v17 = vld [vmem:[%s8429_s3 + $0x640] sm:$0xff]  ;;  %vm921_vm10 = vcmp.eq.s32.totalorder %v405_v10, %v6002_v38 }
 0x1b6   : > { %vm922_vm11 = vcmp.eq.s32.totalorder %v406_v15, %v6002_v38 }
 0x1b7   : > { %v5004_v28 = vadd.f32 %v5003_v23, %v4493_v27  ;;  %v2447_v29 = vpop.permute.xlu1 %2446  ;;  %v2442_v30 = vpop.permute.xlu0 %2441  ;;  %v407_v23 = vadd.s32 1104, %v5993_v33  ;;  %v1500_v27 = vld [vmem:[%s8429_s3 + $0x658] sm:$0xff] }
 0x1b8   : > { %2766 = vperm.xlu1 %5576, %v1488_v25   ;;  %2761 = vperm.xlu0 %5575, %v1487_v26   ;;  %v4495_v39 = vsel %vm911_vm0, %v2442_v30, 0.0  ;;  %v4496_v44 = vsel %vm912_vm1, %v2447_v29, 0.0  ;;  %v408_v26 = vadd.s32 1112, %v5993_v33 }
 0x1b9   : > { %v5005_v34 = vadd.f32 %v5004_v28, %v4494_v32  ;;  %v1499_v28 = vld [vmem:[%s8429_s3 + $0x650] sm:$0xff]  ;;  %vm923_vm12 = vcmp.eq.s32.totalorder %v407_v23, %v6002_v38 }
 0x1ba   : > { %vm924_vm13 = vcmp.eq.s32.totalorder %v408_v26, %v6002_v38 }
 0x1bb   : > { %v5006_v40 = vadd.f32 %v5005_v34, %v4495_v39  ;;  %v2457_v41 = vpop.permute.xlu1 %2456  ;;  %v2452_v42 = vpop.permute.xlu0 %2451  ;;  %v409_v34 = vadd.s32 1120, %v5993_v33  ;;  %v1502_v39 = vld [vmem:[%s8429_s3 + $0x668] sm:$0xff] }
 0x1bc   : > { %2776 = vperm.xlu1 %5576, %v1490_v36   ;;  %2771 = vperm.xlu0 %5575, %v1489_v37   ;;  %v4497_v49 = vsel %vm913_vm2, %v2452_v42, 0.0  ;;  %v4498_v54 = vsel %vm914_vm3, %v2457_v41, 0.0  ;;  %v410_v37 = vadd.s32 1128, %v5993_v33 }
 0x1bd   : > { %v5007_v45 = vadd.f32 %v5006_v40, %v4496_v44  ;;  %v1501_v40 = vld [vmem:[%s8429_s3 + $0x660] sm:$0xff]  ;;  %vm925_vm14 = vcmp.eq.s32.totalorder %v409_v34, %v6002_v38 }
 0x1be   : > { %vm926_vm15 = vcmp.eq.s32.totalorder %v410_v37, %v6002_v38 }
 0x1bf   : > { %v5008_v50 = vadd.f32 %v5007_v45, %v4497_v49  ;;  %v2467_v51 = vpop.permute.xlu1 %2466  ;;  %v2462_v52 = vpop.permute.xlu0 %2461  ;;  %v411_v45 = vadd.s32 1136, %v5993_v33  ;;  %v1504_v49 = vld [vmem:[%s8429_s3 + $0x678] sm:$0xff] }
 0x1c0   : > { %2786 = vperm.xlu1 %5576, %v1492_v47   ;;  %2781 = vperm.xlu0 %5575, %v1491_v48   ;;  %v4499_v59 = vsel %vm915_vm4, %v2462_v52, 0.0  ;;  %v4500_v0 = vsel %vm916_vm5, %v2467_v51, 0.0  ;;  %v412_v48 = vadd.s32 1144, %v5993_v33 }
 0x1c1   : > { %v5009_v55 = vadd.f32 %v5008_v50, %v4498_v54  ;;  %v1503_v50 = vld [vmem:[%s8429_s3 + $0x670] sm:$0xff]  ;;  %vm927_vm0 = vcmp.eq.s32.totalorder %v411_v45, %v6002_v38 }
 0x1c2   : > { %vm928_vm1 = vcmp.eq.s32.totalorder %v412_v48, %v6002_v38 }
 0x1c3   : > { %v5010_v60 = vadd.f32 %v5009_v55, %v4499_v59  ;;  %v2477_v61 = vpop.permute.xlu1 %2476  ;;  %v2472_v62 = vpop.permute.xlu0 %2471  ;;  %v413_v55 = vadd.s32 1152, %v5993_v33  ;;  %v1506_v59 = vld [vmem:[%s8429_s3 + $0x688] sm:$0xff] }
 0x1c4   : > { %2796 = vperm.xlu1 %5576, %v1494_v57   ;;  %2791 = vperm.xlu0 %5575, %v1493_v58   ;;  %v4501_v6 = vsel %vm917_vm6, %v2472_v62, 0.0  ;;  %v4502_v11 = vsel %vm918_vm7, %v2477_v61, 0.0  ;;  %v414_v58 = vadd.s32 1160, %v5993_v33 }
 0x1c5   : > { %v5011_v1 = vadd.f32 %v5010_v60, %v4500_v0  ;;  %v1505_v60 = vld [vmem:[%s8429_s3 + $0x680] sm:$0xff]  ;;  %vm929_vm2 = vcmp.eq.s32.totalorder %v413_v55, %v6002_v38 }
 0x1c6   : > { %vm930_vm3 = vcmp.eq.s32.totalorder %v414_v58, %v6002_v38 }
 0x1c7   : > { %v5012_v7 = vadd.f32 %v5011_v1, %v4501_v6  ;;  %v2487_v8 = vpop.permute.xlu1 %2486  ;;  %v2482_v9 = vpop.permute.xlu0 %2481  ;;  %v415_v1 = vadd.s32 1168, %v5993_v33  ;;  %v1508_v6 = vld [vmem:[%s8429_s3 + $0x698] sm:$0xff] }
 0x1c8   : > { %2806 = vperm.xlu1 %5576, %v1496_v4   ;;  %2801 = vperm.xlu0 %5575, %v1495_v5   ;;  %v4503_v18 = vsel %vm919_vm8, %v2482_v9, 0.0  ;;  %v4504_v24 = vsel %vm920_vm9, %v2487_v8, 0.0  ;;  %v416_v5 = vadd.s32 1176, %v5993_v33 }
 0x1c9   : > { %v5013_v14 = vadd.f32 %v5012_v7, %v4502_v11  ;;  %v1507_v7 = vld [vmem:[%s8429_s3 + $0x690] sm:$0xff]  ;;  %vm931_vm4 = vcmp.eq.s32.totalorder %v415_v1, %v6002_v38 }
 0x1ca   : > { %vm932_vm5 = vcmp.eq.s32.totalorder %v416_v5, %v6002_v38 }
 0x1cb   : > { %v5014_v19 = vadd.f32 %v5013_v14, %v4503_v18  ;;  %v2497_v20 = vpop.permute.xlu1 %2496  ;;  %v2492_v21 = vpop.permute.xlu0 %2491  ;;  %v417_v14 = vadd.s32 1184, %v5993_v33  ;;  %v1510_v18 = vld [vmem:[%s8429_s3 + $0x6a8] sm:$0xff] }
 0x1cc   : > { %2816 = vperm.xlu1 %5576, %v1498_v16   ;;  %2811 = vperm.xlu0 %5575, %v1497_v17   ;;  %v4505_v29 = vsel %vm921_vm10, %v2492_v21, 0.0  ;;  %v4506_v35 = vsel %vm922_vm11, %v2497_v20, 0.0  ;;  %v418_v17 = vadd.s32 1192, %v5993_v33 }
 0x1cd   : > { %v5015_v25 = vadd.f32 %v5014_v19, %v4504_v24  ;;  %v1509_v19 = vld [vmem:[%s8429_s3 + $0x6a0] sm:$0xff]  ;;  %vm933_vm6 = vcmp.eq.s32.totalorder %v417_v14, %v6002_v38 }
 0x1ce   : > { %vm934_vm7 = vcmp.eq.s32.totalorder %v418_v17, %v6002_v38 }
 0x1cf   : > { %v5016_v30 = vadd.f32 %v5015_v25, %v4505_v29  ;;  %v2507_v31 = vpop.permute.xlu1 %2506  ;;  %v2502_v32 = vpop.permute.xlu0 %2501  ;;  %v419_v25 = vadd.s32 1200, %v5993_v33  ;;  %v1512_v29 = vld [vmem:[%s8429_s3 + $0x6b8] sm:$0xff] }
 0x1d0   : > { %2826 = vperm.xlu1 %5576, %v1500_v27   ;;  %2821 = vperm.xlu0 %5575, %v1499_v28   ;;  %v4507_v41 = vsel %vm923_vm12, %v2502_v32, 0.0  ;;  %v4508_v46 = vsel %vm924_vm13, %v2507_v31, 0.0  ;;  %v420_v28 = vadd.s32 1208, %v5993_v33 }
 0x1d1   : > { %v5017_v36 = vadd.f32 %v5016_v30, %v4506_v35  ;;  %v1511_v30 = vld [vmem:[%s8429_s3 + $0x6b0] sm:$0xff]  ;;  %vm935_vm8 = vcmp.eq.s32.totalorder %v419_v25, %v6002_v38 }
 0x1d2   : > { %vm936_vm9 = vcmp.eq.s32.totalorder %v420_v28, %v6002_v38 }
 0x1d3   : > { %v5018_v42 = vadd.f32 %v5017_v36, %v4507_v41  ;;  %v2517_v43 = vpop.permute.xlu1 %2516  ;;  %v2512_v44 = vpop.permute.xlu0 %2511  ;;  %v421_v36 = vadd.s32 1216, %v5993_v33  ;;  %v1514_v41 = vld [vmem:[%s8429_s3 + $0x6c8] sm:$0xff] }
 0x1d4   : > { %2836 = vperm.xlu1 %5576, %v1502_v39   ;;  %2831 = vperm.xlu0 %5575, %v1501_v40   ;;  %v4509_v51 = vsel %vm925_vm14, %v2512_v44, 0.0  ;;  %v4510_v56 = vsel %vm926_vm15, %v2517_v43, 0.0  ;;  %v422_v40 = vadd.s32 1224, %v5993_v33 }
 0x1d5   : > { %v5019_v47 = vadd.f32 %v5018_v42, %v4508_v46  ;;  %v1513_v42 = vld [vmem:[%s8429_s3 + $0x6c0] sm:$0xff]  ;;  %vm937_vm10 = vcmp.eq.s32.totalorder %v421_v36, %v6002_v38 }
 0x1d6   : > { %vm938_vm11 = vcmp.eq.s32.totalorder %v422_v40, %v6002_v38 }
 0x1d7   : > { %v5020_v52 = vadd.f32 %v5019_v47, %v4509_v51  ;;  %v2527_v53 = vpop.permute.xlu1 %2526  ;;  %v2522_v54 = vpop.permute.xlu0 %2521  ;;  %v423_v47 = vadd.s32 1232, %v5993_v33  ;;  %v1516_v51 = vld [vmem:[%s8429_s3 + $0x6d8] sm:$0xff] }
 0x1d8   : > { %2846 = vperm.xlu1 %5576, %v1504_v49   ;;  %2841 = vperm.xlu0 %5575, %v1503_v50   ;;  %v4511_v61 = vsel %vm927_vm0, %v2522_v54, 0.0  ;;  %v4512_v3 = vsel %vm928_vm1, %v2527_v53, 0.0  ;;  %v424_v50 = vadd.s32 1240, %v5993_v33 }
 0x1d9   : > { %v5021_v57 = vadd.f32 %v5020_v52, %v4510_v56  ;;  %v1515_v52 = vld [vmem:[%s8429_s3 + $0x6d0] sm:$0xff]  ;;  %vm939_vm12 = vcmp.eq.s32.totalorder %v423_v47, %v6002_v38 }
 0x1da   : > { %vm940_vm13 = vcmp.eq.s32.totalorder %v424_v50, %v6002_v38 }
 0x1db   : > { %v5022_v62 = vadd.f32 %v5021_v57, %v4511_v61  ;;  %v2537_v63 = vpop.permute.xlu1 %2536  ;;  %v2532_v0 = vpop.permute.xlu0 %2531  ;;  %v425_v57 = vadd.s32 1248, %v5993_v33  ;;  %v1518_v61 = vld [vmem:[%s8429_s3 + $0x6e8] sm:$0xff] }
 0x1dc   : > { %2856 = vperm.xlu1 %5576, %v1506_v59   ;;  %2851 = vperm.xlu0 %5575, %v1505_v60   ;;  %v4513_v8 = vsel %vm929_vm2, %v2532_v0, 0.0  ;;  %v4514_v15 = vsel %vm930_vm3, %v2537_v63, 0.0  ;;  %v426_v60 = vadd.s32 1256, %v5993_v33 }
 0x1dd   : > { %v5023_v4 = vadd.f32 %v5022_v62, %v4512_v3  ;;  %v1517_v62 = vld [vmem:[%s8429_s3 + $0x6e0] sm:$0xff]  ;;  %vm941_vm14 = vcmp.eq.s32.totalorder %v425_v57, %v6002_v38 }
 0x1de   : > { %vm942_vm15 = vcmp.eq.s32.totalorder %v426_v60, %v6002_v38 }
 0x1df   : > { %v5024_v9 = vadd.f32 %v5023_v4, %v4513_v8  ;;  %v2547_v10 = vpop.permute.xlu1 %2546  ;;  %v2542_v11 = vpop.permute.xlu0 %2541  ;;  %v427_v4 = vadd.s32 1264, %v5993_v33  ;;  %v1520_v8 = vld [vmem:[%s8429_s3 + $0x6f8] sm:$0xff] }
 0x1e0   : > { %2866 = vperm.xlu1 %5576, %v1508_v6   ;;  %2861 = vperm.xlu0 %5575, %v1507_v7   ;;  %v4515_v20 = vsel %vm931_vm4, %v2542_v11, 0.0  ;;  %v4516_v26 = vsel %vm932_vm5, %v2547_v10, 0.0  ;;  %v428_v7 = vadd.s32 1272, %v5993_v33 }
 0x1e1   : > { %v5025_v16 = vadd.f32 %v5024_v9, %v4514_v15  ;;  %v1519_v9 = vld [vmem:[%s8429_s3 + $0x6f0] sm:$0xff]  ;;  %vm943_vm0 = vcmp.eq.s32.totalorder %v427_v4, %v6002_v38 }
 0x1e2   : > { %vm944_vm1 = vcmp.eq.s32.totalorder %v428_v7, %v6002_v38 }
 0x1e3   : > { %v5026_v21 = vadd.f32 %v5025_v16, %v4515_v20  ;;  %v2557_v23 = vpop.permute.xlu1 %2556  ;;  %v2552_v24 = vpop.permute.xlu0 %2551  ;;  %v429_v16 = vadd.s32 1280, %v5993_v33  ;;  %v1522_v20 = vld [vmem:[%s8429_s3 + $0x708] sm:$0xff] }
 0x1e4   : > { %2876 = vperm.xlu1 %5576, %v1510_v18   ;;  %2871 = vperm.xlu0 %5575, %v1509_v19   ;;  %v4517_v31 = vsel %vm933_vm6, %v2552_v24, 0.0  ;;  %v4518_v37 = vsel %vm934_vm7, %v2557_v23, 0.0  ;;  %v430_v19 = vadd.s32 1288, %v5993_v33 }
 0x1e5   : > { %v5027_v27 = vadd.f32 %v5026_v21, %v4516_v26  ;;  %v1521_v21 = vld [vmem:[%s8429_s3 + $0x700] sm:$0xff]  ;;  %vm945_vm2 = vcmp.eq.s32.totalorder %v429_v16, %v6002_v38 }
 0x1e6   : > { %vm946_vm3 = vcmp.eq.s32.totalorder %v430_v19, %v6002_v38 }
 0x1e7   : > { %v5028_v32 = vadd.f32 %v5027_v27, %v4517_v31  ;;  %v2567_v34 = vpop.permute.xlu1 %2566  ;;  %v2562_v35 = vpop.permute.xlu0 %2561  ;;  %v431_v27 = vadd.s32 1296, %v5993_v33  ;;  %v1524_v31 = vld [vmem:[%s8429_s3 + $0x718] sm:$0xff] }
 0x1e8   : > { %2886 = vperm.xlu1 %5576, %v1512_v29   ;;  %2881 = vperm.xlu0 %5575, %v1511_v30   ;;  %v4519_v43 = vsel %vm935_vm8, %v2562_v35, 0.0  ;;  %v4520_v48 = vsel %vm936_vm9, %v2567_v34, 0.0  ;;  %v432_v30 = vadd.s32 1304, %v5993_v33 }
 0x1e9   : > { %v5029_v39 = vadd.f32 %v5028_v32, %v4518_v37  ;;  %v1523_v32 = vld [vmem:[%s8429_s3 + $0x710] sm:$0xff]  ;;  %vm947_vm4 = vcmp.eq.s32.totalorder %v431_v27, %v6002_v38 }
 0x1ea   : > { %vm948_vm5 = vcmp.eq.s32.totalorder %v432_v30, %v6002_v38 }
 0x1eb   : > { %v5030_v44 = vadd.f32 %v5029_v39, %v4519_v43  ;;  %v2577_v45 = vpop.permute.xlu1 %2576  ;;  %v2572_v46 = vpop.permute.xlu0 %2571  ;;  %v433_v39 = vadd.s32 1312, %v5993_v33  ;;  %v1526_v43 = vld [vmem:[%s8429_s3 + $0x728] sm:$0xff] }
 0x1ec   : > { %2896 = vperm.xlu1 %5576, %v1514_v41   ;;  %2891 = vperm.xlu0 %5575, %v1513_v42   ;;  %v4521_v53 = vsel %vm937_vm10, %v2572_v46, 0.0  ;;  %v4522_v58 = vsel %vm938_vm11, %v2577_v45, 0.0  ;;  %v434_v42 = vadd.s32 1320, %v5993_v33 }
 0x1ed   : > { %v5031_v49 = vadd.f32 %v5030_v44, %v4520_v48  ;;  %v1525_v44 = vld [vmem:[%s8429_s3 + $0x720] sm:$0xff]  ;;  %vm949_vm6 = vcmp.eq.s32.totalorder %v433_v39, %v6002_v38 }
 0x1ee   : > { %vm950_vm7 = vcmp.eq.s32.totalorder %v434_v42, %v6002_v38 }
 0x1ef   : > { %v5032_v54 = vadd.f32 %v5031_v49, %v4521_v53  ;;  %v2587_v55 = vpop.permute.xlu1 %2586  ;;  %v2582_v56 = vpop.permute.xlu0 %2581  ;;  %v435_v49 = vadd.s32 1328, %v5993_v33  ;;  %v1528_v53 = vld [vmem:[%s8429_s3 + $0x738] sm:$0xff] }
 0x1f0   : > { %2906 = vperm.xlu1 %5576, %v1516_v51   ;;  %2901 = vperm.xlu0 %5575, %v1515_v52   ;;  %v4523_v63 = vsel %vm939_vm12, %v2582_v56, 0.0  ;;  %v4524_v5 = vsel %vm940_vm13, %v2587_v55, 0.0  ;;  %v436_v52 = vadd.s32 1336, %v5993_v33 }
 0x1f1   : > { %v5033_v59 = vadd.f32 %v5032_v54, %v4522_v58  ;;  %v1527_v54 = vld [vmem:[%s8429_s3 + $0x730] sm:$0xff]  ;;  %vm951_vm8 = vcmp.eq.s32.totalorder %v435_v49, %v6002_v38 }
 0x1f2   : > { %vm952_vm9 = vcmp.eq.s32.totalorder %v436_v52, %v6002_v38 }
 0x1f3   : > { %v5034_v0 = vadd.f32 %v5033_v59, %v4523_v63  ;;  %v2597_v1 = vpop.permute.xlu1 %2596  ;;  %v2592_v3 = vpop.permute.xlu0 %2591  ;;  %v437_v59 = vadd.s32 1344, %v5993_v33  ;;  %v1530_v63 = vld [vmem:[%s8429_s3 + $0x748] sm:$0xff] }
 0x1f4   : > { %2916 = vperm.xlu1 %5576, %v1518_v61   ;;  %2911 = vperm.xlu0 %5575, %v1517_v62   ;;  %v4525_v10 = vsel %vm941_vm14, %v2592_v3, 0.0  ;;  %v4526_v17 = vsel %vm942_vm15, %v2597_v1, 0.0  ;;  %v438_v62 = vadd.s32 1352, %v5993_v33 }
 0x1f5   : > { %v5035_v6 = vadd.f32 %v5034_v0, %v4524_v5  ;;  %v1529_v0 = vld [vmem:[%s8429_s3 + $0x740] sm:$0xff]  ;;  %vm953_vm10 = vcmp.eq.s32.totalorder %v437_v59, %v6002_v38 }
 0x1f6   : > { %vm954_vm11 = vcmp.eq.s32.totalorder %v438_v62, %v6002_v38 }
 0x1f7   : > { %v5036_v11 = vadd.f32 %v5035_v6, %v4525_v10  ;;  %v2607_v14 = vpop.permute.xlu1 %2606  ;;  %v2602_v15 = vpop.permute.xlu0 %2601  ;;  %v439_v6 = vadd.s32 1360, %v5993_v33  ;;  %v1532_v10 = vld [vmem:[%s8429_s3 + $0x758] sm:$0xff] }
 0x1f8   : > { %2926 = vperm.xlu1 %5576, %v1520_v8   ;;  %2921 = vperm.xlu0 %5575, %v1519_v9   ;;  %v4527_v23 = vsel %vm943_vm0, %v2602_v15, 0.0  ;;  %v4528_v28 = vsel %vm944_vm1, %v2607_v14, 0.0  ;;  %v440_v9 = vadd.s32 1368, %v5993_v33 }
 0x1f9   : > { %v5037_v18 = vadd.f32 %v5036_v11, %v4526_v17  ;;  %v1531_v11 = vld [vmem:[%s8429_s3 + $0x750] sm:$0xff]  ;;  %vm955_vm12 = vcmp.eq.s32.totalorder %v439_v6, %v6002_v38 }
 0x1fa   : > { %vm956_vm13 = vcmp.eq.s32.totalorder %v440_v9, %v6002_v38 }
 0x1fb   : > { %v5038_v24 = vadd.f32 %v5037_v18, %v4527_v23  ;;  %v2617_v25 = vpop.permute.xlu1 %2616  ;;  %v2612_v26 = vpop.permute.xlu0 %2611  ;;  %v441_v18 = vadd.s32 1376, %v5993_v33  ;;  %v1534_v23 = vld [vmem:[%s8429_s3 + $0x768] sm:$0xff] }
 0x1fc   : > { %2936 = vperm.xlu1 %5576, %v1522_v20   ;;  %2931 = vperm.xlu0 %5575, %v1521_v21   ;;  %v4529_v34 = vsel %vm945_vm2, %v2612_v26, 0.0  ;;  %v4530_v40 = vsel %vm946_vm3, %v2617_v25, 0.0  ;;  %v442_v21 = vadd.s32 1384, %v5993_v33 }
 0x1fd   : > { %v5039_v29 = vadd.f32 %v5038_v24, %v4528_v28  ;;  %v1533_v24 = vld [vmem:[%s8429_s3 + $0x760] sm:$0xff]  ;;  %vm957_vm14 = vcmp.eq.s32.totalorder %v441_v18, %v6002_v38 }
 0x1fe   : > { %vm958_vm15 = vcmp.eq.s32.totalorder %v442_v21, %v6002_v38 }
 0x1ff   : > { %v5040_v35 = vadd.f32 %v5039_v29, %v4529_v34  ;;  %v2627_v36 = vpop.permute.xlu1 %2626  ;;  %v2622_v37 = vpop.permute.xlu0 %2621  ;;  %v443_v29 = vadd.s32 1392, %v5993_v33  ;;  %v1536_v34 = vld [vmem:[%s8429_s3 + $0x778] sm:$0xff] }
 0x200   : > { %2946 = vperm.xlu1 %5576, %v1524_v31   ;;  %2941 = vperm.xlu0 %5575, %v1523_v32   ;;  %v4531_v45 = vsel %vm947_vm4, %v2622_v37, 0.0  ;;  %v4532_v50 = vsel %vm948_vm5, %v2627_v36, 0.0  ;;  %v444_v32 = vadd.s32 1400, %v5993_v33 }
 0x201   : > { %v5041_v41 = vadd.f32 %v5040_v35, %v4530_v40  ;;  %v1535_v35 = vld [vmem:[%s8429_s3 + $0x770] sm:$0xff]  ;;  %vm959_vm0 = vcmp.eq.s32.totalorder %v443_v29, %v6002_v38 }
 0x202   : > { %vm960_vm1 = vcmp.eq.s32.totalorder %v444_v32, %v6002_v38 }
 0x203   : > { %v5042_v46 = vadd.f32 %v5041_v41, %v4531_v45  ;;  %v2637_v47 = vpop.permute.xlu1 %2636  ;;  %v2632_v48 = vpop.permute.xlu0 %2631  ;;  %v445_v41 = vadd.s32 1408, %v5993_v33  ;;  %v1538_v45 = vld [vmem:[%s8429_s3 + $0x788] sm:$0xff] }
 0x204   : > { %2956 = vperm.xlu1 %5576, %v1526_v43   ;;  %2951 = vperm.xlu0 %5575, %v1525_v44   ;;  %v4533_v55 = vsel %vm949_vm6, %v2632_v48, 0.0  ;;  %v4534_v60 = vsel %vm950_vm7, %v2637_v47, 0.0  ;;  %v446_v44 = vadd.s32 1416, %v5993_v33 }
 0x205   : > { %v5043_v51 = vadd.f32 %v5042_v46, %v4532_v50  ;;  %v1537_v46 = vld [vmem:[%s8429_s3 + $0x780] sm:$0xff]  ;;  %vm961_vm2 = vcmp.eq.s32.totalorder %v445_v41, %v6002_v38 }
 0x206   : > { %vm962_vm3 = vcmp.eq.s32.totalorder %v446_v44, %v6002_v38 }
 0x207   : > { %v5044_v56 = vadd.f32 %v5043_v51, %v4533_v55  ;;  %v2647_v57 = vpop.permute.xlu1 %2646  ;;  %v2642_v58 = vpop.permute.xlu0 %2641  ;;  %v447_v51 = vadd.s32 1424, %v5993_v33  ;;  %v1540_v55 = vld [vmem:[%s8429_s3 + $0x798] sm:$0xff] }
 0x208   : > { %2966 = vperm.xlu1 %5576, %v1528_v53   ;;  %2961 = vperm.xlu0 %5575, %v1527_v54   ;;  %v4535_v1 = vsel %vm951_vm8, %v2642_v58, 0.0  ;;  %v4536_v7 = vsel %vm952_vm9, %v2647_v57, 0.0  ;;  %v448_v54 = vadd.s32 1432, %v5993_v33 }
 0x209   : > { %v5045_v61 = vadd.f32 %v5044_v56, %v4534_v60  ;;  %v1539_v56 = vld [vmem:[%s8429_s3 + $0x790] sm:$0xff]  ;;  %vm963_vm4 = vcmp.eq.s32.totalorder %v447_v51, %v6002_v38 }
 0x20a   : > { %vm964_vm5 = vcmp.eq.s32.totalorder %v448_v54, %v6002_v38 }
 0x20b   : > { %v5046_v3 = vadd.f32 %v5045_v61, %v4535_v1  ;;  %v2657_v4 = vpop.permute.xlu1 %2656  ;;  %v2652_v5 = vpop.permute.xlu0 %2651  ;;  %v449_v61 = vadd.s32 1440, %v5993_v33  ;;  %v1542_v1 = vld [vmem:[%s8429_s3 + $0x7a8] sm:$0xff] }
 0x20c   : > { %2976 = vperm.xlu1 %5576, %v1530_v63   ;;  %2971 = vperm.xlu0 %5575, %v1529_v0   ;;  %v4537_v14 = vsel %vm953_vm10, %v2652_v5, 0.0  ;;  %v4538_v19 = vsel %vm954_vm11, %v2657_v4, 0.0  ;;  %v450_v0 = vadd.s32 1448, %v5993_v33 }
 0x20d   : > { %v5047_v8 = vadd.f32 %v5046_v3, %v4536_v7  ;;  %v1541_v3 = vld [vmem:[%s8429_s3 + $0x7a0] sm:$0xff]  ;;  %vm965_vm6 = vcmp.eq.s32.totalorder %v449_v61, %v6002_v38 }
 0x20e   : > { %vm966_vm7 = vcmp.eq.s32.totalorder %v450_v0, %v6002_v38 }
 0x20f   : > { %v5048_v15 = vadd.f32 %v5047_v8, %v4537_v14  ;;  %v2667_v16 = vpop.permute.xlu1 %2666  ;;  %v2662_v17 = vpop.permute.xlu0 %2661  ;;  %v451_v8 = vadd.s32 1456, %v5993_v33  ;;  %v1544_v14 = vld [vmem:[%s8429_s3 + $0x7b8] sm:$0xff] }
 0x210   : > { %2986 = vperm.xlu1 %5576, %v1532_v10   ;;  %2981 = vperm.xlu0 %5575, %v1531_v11   ;;  %v4539_v25 = vsel %vm955_vm12, %v2662_v17, 0.0  ;;  %v4540_v30 = vsel %vm956_vm13, %v2667_v16, 0.0  ;;  %v452_v11 = vadd.s32 1464, %v5993_v33 }
 0x211   : > { %v5049_v20 = vadd.f32 %v5048_v15, %v4538_v19  ;;  %v1543_v15 = vld [vmem:[%s8429_s3 + $0x7b0] sm:$0xff]  ;;  %vm967_vm8 = vcmp.eq.s32.totalorder %v451_v8, %v6002_v38 }
 0x212   : > { %vm968_vm9 = vcmp.eq.s32.totalorder %v452_v11, %v6002_v38 }
 0x213   : > { %v5050_v26 = vadd.f32 %v5049_v20, %v4539_v25  ;;  %v2677_v27 = vpop.permute.xlu1 %2676  ;;  %v2672_v28 = vpop.permute.xlu0 %2671  ;;  %v453_v20 = vadd.s32 1472, %v5993_v33  ;;  %v1546_v25 = vld [vmem:[%s8429_s3 + $0x7c8] sm:$0xff] }
 0x214   : > { %2996 = vperm.xlu1 %5576, %v1534_v23   ;;  %2991 = vperm.xlu0 %5575, %v1533_v24   ;;  %v4541_v36 = vsel %vm957_vm14, %v2672_v28, 0.0  ;;  %v4542_v42 = vsel %vm958_vm15, %v2677_v27, 0.0  ;;  %v454_v24 = vadd.s32 1480, %v5993_v33 }
 0x215   : > { %v5051_v31 = vadd.f32 %v5050_v26, %v4540_v30  ;;  %v1545_v26 = vld [vmem:[%s8429_s3 + $0x7c0] sm:$0xff]  ;;  %vm969_vm10 = vcmp.eq.s32.totalorder %v453_v20, %v6002_v38 }
 0x216   : > { %vm970_vm11 = vcmp.eq.s32.totalorder %v454_v24, %v6002_v38 }
 0x217   : > { %v5052_v37 = vadd.f32 %v5051_v31, %v4541_v36  ;;  %v2687_v39 = vpop.permute.xlu1 %2686  ;;  %v2682_v40 = vpop.permute.xlu0 %2681  ;;  %v455_v31 = vadd.s32 1488, %v5993_v33  ;;  %v1548_v36 = vld [vmem:[%s8429_s3 + $0x7d8] sm:$0xff] }
 0x218   : > { %3006 = vperm.xlu1 %5576, %v1536_v34   ;;  %3001 = vperm.xlu0 %5575, %v1535_v35   ;;  %v4543_v47 = vsel %vm959_vm0, %v2682_v40, 0.0  ;;  %v4544_v52 = vsel %vm960_vm1, %v2687_v39, 0.0  ;;  %v456_v35 = vadd.s32 1496, %v5993_v33 }
 0x219   : > { %v5053_v43 = vadd.f32 %v5052_v37, %v4542_v42  ;;  %v1547_v37 = vld [vmem:[%s8429_s3 + $0x7d0] sm:$0xff]  ;;  %vm971_vm12 = vcmp.eq.s32.totalorder %v455_v31, %v6002_v38 }
 0x21a   : > { %vm972_vm13 = vcmp.eq.s32.totalorder %v456_v35, %v6002_v38 }
 0x21b   : > { %v5054_v48 = vadd.f32 %v5053_v43, %v4543_v47  ;;  %v2697_v49 = vpop.permute.xlu1 %2696  ;;  %v2692_v50 = vpop.permute.xlu0 %2691  ;;  %v457_v43 = vadd.s32 1504, %v5993_v33  ;;  %v1550_v47 = vld [vmem:[%s8429_s3 + $0x7e8] sm:$0xff] }
 0x21c   : > { %3016 = vperm.xlu1 %5576, %v1538_v45   ;;  %3011 = vperm.xlu0 %5575, %v1537_v46   ;;  %v4545_v57 = vsel %vm961_vm2, %v2692_v50, 0.0  ;;  %v4546_v62 = vsel %vm962_vm3, %v2697_v49, 0.0  ;;  %v458_v46 = vadd.s32 1512, %v5993_v33 }
 0x21d   : > { %v5055_v53 = vadd.f32 %v5054_v48, %v4544_v52  ;;  %v1549_v48 = vld [vmem:[%s8429_s3 + $0x7e0] sm:$0xff]  ;;  %vm973_vm14 = vcmp.eq.s32.totalorder %v457_v43, %v6002_v38 }
 0x21e   : > { %vm974_vm15 = vcmp.eq.s32.totalorder %v458_v46, %v6002_v38 }
 0x21f   : > { %v5056_v58 = vadd.f32 %v5055_v53, %v4545_v57  ;;  %v2707_v59 = vpop.permute.xlu1 %2706  ;;  %v2702_v60 = vpop.permute.xlu0 %2701  ;;  %v459_v53 = vadd.s32 1520, %v5993_v33  ;;  %v1552_v57 = vld [vmem:[%s8429_s3 + $0x7f8] sm:$0xff] }
 0x220   : > { %3026 = vperm.xlu1 %5576, %v1540_v55   ;;  %3021 = vperm.xlu0 %5575, %v1539_v56   ;;  %v4547_v4 = vsel %vm963_vm4, %v2702_v60, 0.0  ;;  %v4548_v9 = vsel %vm964_vm5, %v2707_v59, 0.0  ;;  %v460_v56 = vadd.s32 1528, %v5993_v33 }
 0x221   : > { %v5057_v63 = vadd.f32 %v5056_v58, %v4546_v62  ;;  %v1551_v58 = vld [vmem:[%s8429_s3 + $0x7f0] sm:$0xff]  ;;  %vm975_vm0 = vcmp.eq.s32.totalorder %v459_v53, %v6002_v38 }
 0x222   : > { %vm976_vm1 = vcmp.eq.s32.totalorder %v460_v56, %v6002_v38 }
 0x223   : > { %v5058_v5 = vadd.f32 %v5057_v63, %v4547_v4  ;;  %v2717_v6 = vpop.permute.xlu1 %2716  ;;  %v2712_v7 = vpop.permute.xlu0 %2711  ;;  %v461_v63 = vadd.s32 1536, %v5993_v33  ;;  %v1554_v4 = vld [vmem:[%s8429_s3 + $0x808] sm:$0xff] }
 0x224   : > { %3036 = vperm.xlu1 %5576, %v1542_v1   ;;  %3031 = vperm.xlu0 %5575, %v1541_v3   ;;  %v4549_v16 = vsel %vm965_vm6, %v2712_v7, 0.0  ;;  %v4550_v21 = vsel %vm966_vm7, %v2717_v6, 0.0  ;;  %v462_v3 = vadd.s32 1544, %v5993_v33 }
 0x225   : > { %v5059_v10 = vadd.f32 %v5058_v5, %v4548_v9  ;;  %v1553_v5 = vld [vmem:[%s8429_s3 + $0x800] sm:$0xff]  ;;  %vm977_vm2 = vcmp.eq.s32.totalorder %v461_v63, %v6002_v38 }
 0x226   : > { %vm978_vm3 = vcmp.eq.s32.totalorder %v462_v3, %v6002_v38 }
 0x227   : > { %v5060_v17 = vadd.f32 %v5059_v10, %v4549_v16  ;;  %v2727_v18 = vpop.permute.xlu1 %2726  ;;  %v2722_v19 = vpop.permute.xlu0 %2721  ;;  %v463_v10 = vadd.s32 1552, %v5993_v33  ;;  %v1556_v16 = vld [vmem:[%s8429_s3 + $0x818] sm:$0xff] }
 0x228   : > { %3046 = vperm.xlu1 %5576, %v1544_v14   ;;  %3041 = vperm.xlu0 %5575, %v1543_v15   ;;  %v4551_v27 = vsel %vm967_vm8, %v2722_v19, 0.0  ;;  %v4552_v32 = vsel %vm968_vm9, %v2727_v18, 0.0  ;;  %v464_v15 = vadd.s32 1560, %v5993_v33 }
 0x229   : > { %v5061_v23 = vadd.f32 %v5060_v17, %v4550_v21  ;;  %v1555_v17 = vld [vmem:[%s8429_s3 + $0x810] sm:$0xff]  ;;  %vm979_vm4 = vcmp.eq.s32.totalorder %v463_v10, %v6002_v38 }
 0x22a   : > { %vm980_vm5 = vcmp.eq.s32.totalorder %v464_v15, %v6002_v38 }
 0x22b   : > { %v5062_v28 = vadd.f32 %v5061_v23, %v4551_v27  ;;  %v2737_v29 = vpop.permute.xlu1 %2736  ;;  %v2732_v30 = vpop.permute.xlu0 %2731  ;;  %v465_v23 = vadd.s32 1568, %v5993_v33  ;;  %v1558_v27 = vld [vmem:[%s8429_s3 + $0x828] sm:$0xff] }
 0x22c   : > { %3056 = vperm.xlu1 %5576, %v1546_v25   ;;  %3051 = vperm.xlu0 %5575, %v1545_v26   ;;  %v4553_v39 = vsel %vm969_vm10, %v2732_v30, 0.0  ;;  %v4554_v44 = vsel %vm970_vm11, %v2737_v29, 0.0  ;;  %v466_v26 = vadd.s32 1576, %v5993_v33 }
 0x22d   : > { %v5063_v34 = vadd.f32 %v5062_v28, %v4552_v32  ;;  %v1557_v28 = vld [vmem:[%s8429_s3 + $0x820] sm:$0xff]  ;;  %vm981_vm6 = vcmp.eq.s32.totalorder %v465_v23, %v6002_v38 }
 0x22e   : > { %vm982_vm7 = vcmp.eq.s32.totalorder %v466_v26, %v6002_v38 }
 0x22f   : > { %v5064_v40 = vadd.f32 %v5063_v34, %v4553_v39  ;;  %v2747_v41 = vpop.permute.xlu1 %2746  ;;  %v2742_v42 = vpop.permute.xlu0 %2741  ;;  %v467_v34 = vadd.s32 1584, %v5993_v33  ;;  %v1560_v39 = vld [vmem:[%s8429_s3 + $0x838] sm:$0xff] }
 0x230   : > { %3066 = vperm.xlu1 %5576, %v1548_v36   ;;  %3061 = vperm.xlu0 %5575, %v1547_v37   ;;  %v4555_v49 = vsel %vm971_vm12, %v2742_v42, 0.0  ;;  %v4556_v54 = vsel %vm972_vm13, %v2747_v41, 0.0  ;;  %v468_v37 = vadd.s32 1592, %v5993_v33 }
 0x231   : > { %v5065_v45 = vadd.f32 %v5064_v40, %v4554_v44  ;;  %v1559_v40 = vld [vmem:[%s8429_s3 + $0x830] sm:$0xff]  ;;  %vm983_vm8 = vcmp.eq.s32.totalorder %v467_v34, %v6002_v38 }
 0x232   : > { %vm984_vm9 = vcmp.eq.s32.totalorder %v468_v37, %v6002_v38 }
 0x233   : > { %v5066_v50 = vadd.f32 %v5065_v45, %v4555_v49  ;;  %v2757_v51 = vpop.permute.xlu1 %2756  ;;  %v2752_v52 = vpop.permute.xlu0 %2751  ;;  %v469_v45 = vadd.s32 1600, %v5993_v33  ;;  %v1562_v49 = vld [vmem:[%s8429_s3 + $0x848] sm:$0xff] }
 0x234   : > { %3076 = vperm.xlu1 %5576, %v1550_v47   ;;  %3071 = vperm.xlu0 %5575, %v1549_v48   ;;  %v4557_v59 = vsel %vm973_vm14, %v2752_v52, 0.0  ;;  %v4558_v0 = vsel %vm974_vm15, %v2757_v51, 0.0  ;;  %v470_v48 = vadd.s32 1608, %v5993_v33 }
 0x235   : > { %v5067_v55 = vadd.f32 %v5066_v50, %v4556_v54  ;;  %v1561_v50 = vld [vmem:[%s8429_s3 + $0x840] sm:$0xff]  ;;  %vm985_vm10 = vcmp.eq.s32.totalorder %v469_v45, %v6002_v38 }
 0x236   : > { %vm986_vm11 = vcmp.eq.s32.totalorder %v470_v48, %v6002_v38 }
 0x237   : > { %v5068_v60 = vadd.f32 %v5067_v55, %v4557_v59  ;;  %v2767_v61 = vpop.permute.xlu1 %2766  ;;  %v2762_v62 = vpop.permute.xlu0 %2761  ;;  %v471_v55 = vadd.s32 1616, %v5993_v33  ;;  %v1564_v59 = vld [vmem:[%s8429_s3 + $0x858] sm:$0xff] }
 0x238   : > { %3086 = vperm.xlu1 %5576, %v1552_v57   ;;  %3081 = vperm.xlu0 %5575, %v1551_v58   ;;  %v4559_v6 = vsel %vm975_vm0, %v2762_v62, 0.0  ;;  %v4560_v11 = vsel %vm976_vm1, %v2767_v61, 0.0  ;;  %v472_v58 = vadd.s32 1624, %v5993_v33 }
 0x239   : > { %v5069_v1 = vadd.f32 %v5068_v60, %v4558_v0  ;;  %v1563_v60 = vld [vmem:[%s8429_s3 + $0x850] sm:$0xff]  ;;  %vm987_vm12 = vcmp.eq.s32.totalorder %v471_v55, %v6002_v38 }
 0x23a   : > { %vm988_vm13 = vcmp.eq.s32.totalorder %v472_v58, %v6002_v38 }
 0x23b   : > { %v5070_v7 = vadd.f32 %v5069_v1, %v4559_v6  ;;  %v2777_v8 = vpop.permute.xlu1 %2776  ;;  %v2772_v9 = vpop.permute.xlu0 %2771  ;;  %v473_v1 = vadd.s32 1632, %v5993_v33  ;;  %v1566_v6 = vld [vmem:[%s8429_s3 + $0x868] sm:$0xff] }
 0x23c   : > { %3096 = vperm.xlu1 %5576, %v1554_v4   ;;  %3091 = vperm.xlu0 %5575, %v1553_v5   ;;  %v4561_v18 = vsel %vm977_vm2, %v2772_v9, 0.0  ;;  %v4562_v24 = vsel %vm978_vm3, %v2777_v8, 0.0  ;;  %v474_v5 = vadd.s32 1640, %v5993_v33 }
 0x23d   : > { %v5071_v14 = vadd.f32 %v5070_v7, %v4560_v11  ;;  %v1565_v7 = vld [vmem:[%s8429_s3 + $0x860] sm:$0xff]  ;;  %vm989_vm14 = vcmp.eq.s32.totalorder %v473_v1, %v6002_v38 }
 0x23e   : > { %vm990_vm15 = vcmp.eq.s32.totalorder %v474_v5, %v6002_v38 }
 0x23f   : > { %v5072_v19 = vadd.f32 %v5071_v14, %v4561_v18  ;;  %v2787_v20 = vpop.permute.xlu1 %2786  ;;  %v2782_v21 = vpop.permute.xlu0 %2781  ;;  %v475_v14 = vadd.s32 1648, %v5993_v33  ;;  %v1568_v18 = vld [vmem:[%s8429_s3 + $0x878] sm:$0xff] }
 0x240   : > { %3106 = vperm.xlu1 %5576, %v1556_v16   ;;  %3101 = vperm.xlu0 %5575, %v1555_v17   ;;  %v4563_v29 = vsel %vm979_vm4, %v2782_v21, 0.0  ;;  %v4564_v35 = vsel %vm980_vm5, %v2787_v20, 0.0  ;;  %v476_v17 = vadd.s32 1656, %v5993_v33 }
 0x241   : > { %v5073_v25 = vadd.f32 %v5072_v19, %v4562_v24  ;;  %v1567_v19 = vld [vmem:[%s8429_s3 + $0x870] sm:$0xff]  ;;  %vm991_vm0 = vcmp.eq.s32.totalorder %v475_v14, %v6002_v38 }
 0x242   : > { %vm992_vm1 = vcmp.eq.s32.totalorder %v476_v17, %v6002_v38 }
 0x243   : > { %v5074_v30 = vadd.f32 %v5073_v25, %v4563_v29  ;;  %v2797_v31 = vpop.permute.xlu1 %2796  ;;  %v2792_v32 = vpop.permute.xlu0 %2791  ;;  %v477_v25 = vadd.s32 1664, %v5993_v33  ;;  %v1570_v29 = vld [vmem:[%s8429_s3 + $0x888] sm:$0xff] }
 0x244   : > { %3116 = vperm.xlu1 %5576, %v1558_v27   ;;  %3111 = vperm.xlu0 %5575, %v1557_v28   ;;  %v4565_v41 = vsel %vm981_vm6, %v2792_v32, 0.0  ;;  %v4566_v46 = vsel %vm982_vm7, %v2797_v31, 0.0  ;;  %v478_v28 = vadd.s32 1672, %v5993_v33 }
 0x245   : > { %v5075_v36 = vadd.f32 %v5074_v30, %v4564_v35  ;;  %v1569_v30 = vld [vmem:[%s8429_s3 + $0x880] sm:$0xff]  ;;  %vm993_vm2 = vcmp.eq.s32.totalorder %v477_v25, %v6002_v38 }
 0x246   : > { %vm994_vm3 = vcmp.eq.s32.totalorder %v478_v28, %v6002_v38 }
 0x247   : > { %v5076_v42 = vadd.f32 %v5075_v36, %v4565_v41  ;;  %v2807_v43 = vpop.permute.xlu1 %2806  ;;  %v2802_v44 = vpop.permute.xlu0 %2801  ;;  %v479_v36 = vadd.s32 1680, %v5993_v33  ;;  %v1572_v41 = vld [vmem:[%s8429_s3 + $0x898] sm:$0xff] }
 0x248   : > { %3126 = vperm.xlu1 %5576, %v1560_v39   ;;  %3121 = vperm.xlu0 %5575, %v1559_v40   ;;  %v4567_v51 = vsel %vm983_vm8, %v2802_v44, 0.0  ;;  %v4568_v56 = vsel %vm984_vm9, %v2807_v43, 0.0  ;;  %v480_v40 = vadd.s32 1688, %v5993_v33 }
 0x249   : > { %v5077_v47 = vadd.f32 %v5076_v42, %v4566_v46  ;;  %v1571_v42 = vld [vmem:[%s8429_s3 + $0x890] sm:$0xff]  ;;  %vm995_vm4 = vcmp.eq.s32.totalorder %v479_v36, %v6002_v38 }
 0x24a   : > { %vm996_vm5 = vcmp.eq.s32.totalorder %v480_v40, %v6002_v38 }
 0x24b   : > { %v5078_v52 = vadd.f32 %v5077_v47, %v4567_v51  ;;  %v2817_v53 = vpop.permute.xlu1 %2816  ;;  %v2812_v54 = vpop.permute.xlu0 %2811  ;;  %v481_v47 = vadd.s32 1696, %v5993_v33  ;;  %v1574_v51 = vld [vmem:[%s8429_s3 + $0x8a8] sm:$0xff] }
 0x24c   : > { %3136 = vperm.xlu1 %5576, %v1562_v49   ;;  %3131 = vperm.xlu0 %5575, %v1561_v50   ;;  %v4569_v61 = vsel %vm985_vm10, %v2812_v54, 0.0  ;;  %v4570_v3 = vsel %vm986_vm11, %v2817_v53, 0.0  ;;  %v482_v50 = vadd.s32 1704, %v5993_v33 }
 0x24d   : > { %v5079_v57 = vadd.f32 %v5078_v52, %v4568_v56  ;;  %v1573_v52 = vld [vmem:[%s8429_s3 + $0x8a0] sm:$0xff]  ;;  %vm997_vm6 = vcmp.eq.s32.totalorder %v481_v47, %v6002_v38 }
 0x24e   : > { %vm998_vm7 = vcmp.eq.s32.totalorder %v482_v50, %v6002_v38 }
 0x24f   : > { %v5080_v62 = vadd.f32 %v5079_v57, %v4569_v61  ;;  %v2827_v63 = vpop.permute.xlu1 %2826  ;;  %v2822_v0 = vpop.permute.xlu0 %2821  ;;  %v483_v57 = vadd.s32 1712, %v5993_v33  ;;  %v1576_v61 = vld [vmem:[%s8429_s3 + $0x8b8] sm:$0xff] }
 0x250   : > { %3146 = vperm.xlu1 %5576, %v1564_v59   ;;  %3141 = vperm.xlu0 %5575, %v1563_v60   ;;  %v4571_v8 = vsel %vm987_vm12, %v2822_v0, 0.0  ;;  %v4572_v15 = vsel %vm988_vm13, %v2827_v63, 0.0  ;;  %v484_v60 = vadd.s32 1720, %v5993_v33 }
 0x251   : > { %v5081_v4 = vadd.f32 %v5080_v62, %v4570_v3  ;;  %v1575_v62 = vld [vmem:[%s8429_s3 + $0x8b0] sm:$0xff]  ;;  %vm999_vm8 = vcmp.eq.s32.totalorder %v483_v57, %v6002_v38 }
 0x252   : > { %vm1000_vm9 = vcmp.eq.s32.totalorder %v484_v60, %v6002_v38 }
 0x253   : > { %v5082_v9 = vadd.f32 %v5081_v4, %v4571_v8  ;;  %v2837_v10 = vpop.permute.xlu1 %2836  ;;  %v2832_v11 = vpop.permute.xlu0 %2831  ;;  %v485_v4 = vadd.s32 1728, %v5993_v33  ;;  %v1578_v8 = vld [vmem:[%s8429_s3 + $0x8c8] sm:$0xff] }
 0x254   : > { %3156 = vperm.xlu1 %5576, %v1566_v6   ;;  %3151 = vperm.xlu0 %5575, %v1565_v7   ;;  %v4573_v20 = vsel %vm989_vm14, %v2832_v11, 0.0  ;;  %v4574_v26 = vsel %vm990_vm15, %v2837_v10, 0.0  ;;  %v486_v7 = vadd.s32 1736, %v5993_v33 }
 0x255   : > { %v5083_v16 = vadd.f32 %v5082_v9, %v4572_v15  ;;  %v1577_v9 = vld [vmem:[%s8429_s3 + $0x8c0] sm:$0xff]  ;;  %vm1001_vm10 = vcmp.eq.s32.totalorder %v485_v4, %v6002_v38 }
 0x256   : > { %vm1002_vm11 = vcmp.eq.s32.totalorder %v486_v7, %v6002_v38 }
 0x257   : > { %v5084_v21 = vadd.f32 %v5083_v16, %v4573_v20  ;;  %v2847_v23 = vpop.permute.xlu1 %2846  ;;  %v2842_v24 = vpop.permute.xlu0 %2841  ;;  %v487_v16 = vadd.s32 1744, %v5993_v33  ;;  %v1580_v20 = vld [vmem:[%s8429_s3 + $0x8d8] sm:$0xff] }
 0x258   : > { %3166 = vperm.xlu1 %5576, %v1568_v18   ;;  %3161 = vperm.xlu0 %5575, %v1567_v19   ;;  %v4575_v31 = vsel %vm991_vm0, %v2842_v24, 0.0  ;;  %v4576_v37 = vsel %vm992_vm1, %v2847_v23, 0.0  ;;  %v488_v19 = vadd.s32 1752, %v5993_v33 }
 0x259   : > { %v5085_v27 = vadd.f32 %v5084_v21, %v4574_v26  ;;  %v1579_v21 = vld [vmem:[%s8429_s3 + $0x8d0] sm:$0xff]  ;;  %vm1003_vm12 = vcmp.eq.s32.totalorder %v487_v16, %v6002_v38 }
 0x25a   : > { %vm1004_vm13 = vcmp.eq.s32.totalorder %v488_v19, %v6002_v38 }
 0x25b   : > { %v5086_v32 = vadd.f32 %v5085_v27, %v4575_v31  ;;  %v2857_v34 = vpop.permute.xlu1 %2856  ;;  %v2852_v35 = vpop.permute.xlu0 %2851  ;;  %v489_v27 = vadd.s32 1760, %v5993_v33  ;;  %v1582_v31 = vld [vmem:[%s8429_s3 + $0x8e8] sm:$0xff] }
 0x25c   : > { %3176 = vperm.xlu1 %5576, %v1570_v29   ;;  %3171 = vperm.xlu0 %5575, %v1569_v30   ;;  %v4577_v43 = vsel %vm993_vm2, %v2852_v35, 0.0  ;;  %v4578_v48 = vsel %vm994_vm3, %v2857_v34, 0.0  ;;  %v490_v30 = vadd.s32 1768, %v5993_v33 }
 0x25d   : > { %v5087_v39 = vadd.f32 %v5086_v32, %v4576_v37  ;;  %v1581_v32 = vld [vmem:[%s8429_s3 + $0x8e0] sm:$0xff]  ;;  %vm1005_vm14 = vcmp.eq.s32.totalorder %v489_v27, %v6002_v38 }
 0x25e   : > { %vm1006_vm15 = vcmp.eq.s32.totalorder %v490_v30, %v6002_v38 }
 0x25f   : > { %v5088_v44 = vadd.f32 %v5087_v39, %v4577_v43  ;;  %v2867_v45 = vpop.permute.xlu1 %2866  ;;  %v2862_v46 = vpop.permute.xlu0 %2861  ;;  %v491_v39 = vadd.s32 1776, %v5993_v33  ;;  %v1584_v43 = vld [vmem:[%s8429_s3 + $0x8f8] sm:$0xff] }
 0x260   : > { %3186 = vperm.xlu1 %5576, %v1572_v41   ;;  %3181 = vperm.xlu0 %5575, %v1571_v42   ;;  %v4579_v53 = vsel %vm995_vm4, %v2862_v46, 0.0  ;;  %v4580_v58 = vsel %vm996_vm5, %v2867_v45, 0.0  ;;  %v492_v42 = vadd.s32 1784, %v5993_v33 }
 0x261   : > { %v5089_v49 = vadd.f32 %v5088_v44, %v4578_v48  ;;  %v1583_v44 = vld [vmem:[%s8429_s3 + $0x8f0] sm:$0xff]  ;;  %vm1007_vm0 = vcmp.eq.s32.totalorder %v491_v39, %v6002_v38 }
 0x262   : > { %vm1008_vm1 = vcmp.eq.s32.totalorder %v492_v42, %v6002_v38 }
 0x263   : > { %v5090_v54 = vadd.f32 %v5089_v49, %v4579_v53  ;;  %v2877_v55 = vpop.permute.xlu1 %2876  ;;  %v2872_v56 = vpop.permute.xlu0 %2871  ;;  %v493_v49 = vadd.s32 1792, %v5993_v33  ;;  %v1586_v53 = vld [vmem:[%s8429_s3 + $0x908] sm:$0xff] }
 0x264   : > { %3196 = vperm.xlu1 %5576, %v1574_v51   ;;  %3191 = vperm.xlu0 %5575, %v1573_v52   ;;  %v4581_v63 = vsel %vm997_vm6, %v2872_v56, 0.0  ;;  %v4582_v5 = vsel %vm998_vm7, %v2877_v55, 0.0  ;;  %v494_v52 = vadd.s32 1800, %v5993_v33 }
 0x265   : > { %v5091_v59 = vadd.f32 %v5090_v54, %v4580_v58  ;;  %v1585_v54 = vld [vmem:[%s8429_s3 + $0x900] sm:$0xff]  ;;  %vm1009_vm2 = vcmp.eq.s32.totalorder %v493_v49, %v6002_v38 }
 0x266   : > { %vm1010_vm3 = vcmp.eq.s32.totalorder %v494_v52, %v6002_v38 }
 0x267   : > { %v5092_v0 = vadd.f32 %v5091_v59, %v4581_v63  ;;  %v2887_v1 = vpop.permute.xlu1 %2886  ;;  %v2882_v3 = vpop.permute.xlu0 %2881  ;;  %v495_v59 = vadd.s32 1808, %v5993_v33  ;;  %v1588_v63 = vld [vmem:[%s8429_s3 + $0x918] sm:$0xff] }
 0x268   : > { %3206 = vperm.xlu1 %5576, %v1576_v61   ;;  %3201 = vperm.xlu0 %5575, %v1575_v62   ;;  %v4583_v10 = vsel %vm999_vm8, %v2882_v3, 0.0  ;;  %v4584_v17 = vsel %vm1000_vm9, %v2887_v1, 0.0  ;;  %v496_v62 = vadd.s32 1816, %v5993_v33 }
 0x269   : > { %v5093_v6 = vadd.f32 %v5092_v0, %v4582_v5  ;;  %v1587_v0 = vld [vmem:[%s8429_s3 + $0x910] sm:$0xff]  ;;  %vm1011_vm4 = vcmp.eq.s32.totalorder %v495_v59, %v6002_v38 }
 0x26a   : > { %vm1012_vm5 = vcmp.eq.s32.totalorder %v496_v62, %v6002_v38 }
 0x26b   : > { %v5094_v11 = vadd.f32 %v5093_v6, %v4583_v10  ;;  %v2897_v14 = vpop.permute.xlu1 %2896  ;;  %v2892_v15 = vpop.permute.xlu0 %2891  ;;  %v497_v6 = vadd.s32 1824, %v5993_v33  ;;  %v1590_v10 = vld [vmem:[%s8429_s3 + $0x928] sm:$0xff] }
 0x26c   : > { %3216 = vperm.xlu1 %5576, %v1578_v8   ;;  %3211 = vperm.xlu0 %5575, %v1577_v9   ;;  %v4585_v23 = vsel %vm1001_vm10, %v2892_v15, 0.0  ;;  %v4586_v28 = vsel %vm1002_vm11, %v2897_v14, 0.0  ;;  %v498_v9 = vadd.s32 1832, %v5993_v33 }
 0x26d   : > { %v5095_v18 = vadd.f32 %v5094_v11, %v4584_v17  ;;  %v1589_v11 = vld [vmem:[%s8429_s3 + $0x920] sm:$0xff]  ;;  %vm1013_vm6 = vcmp.eq.s32.totalorder %v497_v6, %v6002_v38 }
 0x26e   : > { %vm1014_vm7 = vcmp.eq.s32.totalorder %v498_v9, %v6002_v38 }
 0x26f   : > { %v5096_v24 = vadd.f32 %v5095_v18, %v4585_v23  ;;  %v2907_v25 = vpop.permute.xlu1 %2906  ;;  %v2902_v26 = vpop.permute.xlu0 %2901  ;;  %v499_v18 = vadd.s32 1840, %v5993_v33  ;;  %v1592_v23 = vld [vmem:[%s8429_s3 + $0x938] sm:$0xff] }
 0x270   : > { %3226 = vperm.xlu1 %5576, %v1580_v20   ;;  %3221 = vperm.xlu0 %5575, %v1579_v21   ;;  %v4587_v34 = vsel %vm1003_vm12, %v2902_v26, 0.0  ;;  %v4588_v40 = vsel %vm1004_vm13, %v2907_v25, 0.0  ;;  %v500_v21 = vadd.s32 1848, %v5993_v33 }
 0x271   : > { %v5097_v29 = vadd.f32 %v5096_v24, %v4586_v28  ;;  %v1591_v24 = vld [vmem:[%s8429_s3 + $0x930] sm:$0xff]  ;;  %vm1015_vm8 = vcmp.eq.s32.totalorder %v499_v18, %v6002_v38 }
 0x272   : > { %vm1016_vm9 = vcmp.eq.s32.totalorder %v500_v21, %v6002_v38 }
 0x273   : > { %v5098_v35 = vadd.f32 %v5097_v29, %v4587_v34  ;;  %v2917_v36 = vpop.permute.xlu1 %2916  ;;  %v2912_v37 = vpop.permute.xlu0 %2911  ;;  %v501_v29 = vadd.s32 1856, %v5993_v33  ;;  %v1594_v34 = vld [vmem:[%s8429_s3 + $0x948] sm:$0xff] }
 0x274   : > { %3236 = vperm.xlu1 %5576, %v1582_v31   ;;  %3231 = vperm.xlu0 %5575, %v1581_v32   ;;  %v4589_v45 = vsel %vm1005_vm14, %v2912_v37, 0.0  ;;  %v4590_v50 = vsel %vm1006_vm15, %v2917_v36, 0.0  ;;  %v502_v32 = vadd.s32 1864, %v5993_v33 }
 0x275   : > { %v5099_v41 = vadd.f32 %v5098_v35, %v4588_v40  ;;  %v1593_v35 = vld [vmem:[%s8429_s3 + $0x940] sm:$0xff]  ;;  %vm1017_vm10 = vcmp.eq.s32.totalorder %v501_v29, %v6002_v38 }
 0x276   : > { %vm1018_vm11 = vcmp.eq.s32.totalorder %v502_v32, %v6002_v38 }
 0x277   : > { %v5100_v46 = vadd.f32 %v5099_v41, %v4589_v45  ;;  %v2927_v47 = vpop.permute.xlu1 %2926  ;;  %v2922_v48 = vpop.permute.xlu0 %2921  ;;  %v503_v41 = vadd.s32 1872, %v5993_v33  ;;  %v1596_v45 = vld [vmem:[%s8429_s3 + $0x958] sm:$0xff] }
 0x278   : > { %3246 = vperm.xlu1 %5576, %v1584_v43   ;;  %3241 = vperm.xlu0 %5575, %v1583_v44   ;;  %v4591_v55 = vsel %vm1007_vm0, %v2922_v48, 0.0  ;;  %v4592_v60 = vsel %vm1008_vm1, %v2927_v47, 0.0  ;;  %v504_v44 = vadd.s32 1880, %v5993_v33 }
 0x279   : > { %v5101_v51 = vadd.f32 %v5100_v46, %v4590_v50  ;;  %v1595_v46 = vld [vmem:[%s8429_s3 + $0x950] sm:$0xff]  ;;  %vm1019_vm12 = vcmp.eq.s32.totalorder %v503_v41, %v6002_v38 }
 0x27a   : > { %vm1020_vm13 = vcmp.eq.s32.totalorder %v504_v44, %v6002_v38 }
 0x27b   : > { %v5102_v56 = vadd.f32 %v5101_v51, %v4591_v55  ;;  %v2937_v57 = vpop.permute.xlu1 %2936  ;;  %v2932_v58 = vpop.permute.xlu0 %2931  ;;  %v505_v51 = vadd.s32 1888, %v5993_v33  ;;  %v1598_v55 = vld [vmem:[%s8429_s3 + $0x968] sm:$0xff] }
 0x27c   : > { %3256 = vperm.xlu1 %5576, %v1586_v53   ;;  %3251 = vperm.xlu0 %5575, %v1585_v54   ;;  %v4593_v1 = vsel %vm1009_vm2, %v2932_v58, 0.0  ;;  %v4594_v7 = vsel %vm1010_vm3, %v2937_v57, 0.0  ;;  %v506_v54 = vadd.s32 1896, %v5993_v33 }
 0x27d   : > { %v5103_v61 = vadd.f32 %v5102_v56, %v4592_v60  ;;  %v1597_v56 = vld [vmem:[%s8429_s3 + $0x960] sm:$0xff]  ;;  %vm1021_vm14 = vcmp.eq.s32.totalorder %v505_v51, %v6002_v38 }
 0x27e   : > { %vm1022_vm15 = vcmp.eq.s32.totalorder %v506_v54, %v6002_v38 }
 0x27f   : > { %v5104_v3 = vadd.f32 %v5103_v61, %v4593_v1  ;;  %v2947_v4 = vpop.permute.xlu1 %2946  ;;  %v2942_v5 = vpop.permute.xlu0 %2941  ;;  %v507_v61 = vadd.s32 1904, %v5993_v33  ;;  %v1600_v1 = vld [vmem:[%s8429_s3 + $0x978] sm:$0xff] }
 0x280   : > { %3266 = vperm.xlu1 %5576, %v1588_v63   ;;  %3261 = vperm.xlu0 %5575, %v1587_v0   ;;  %v4595_v14 = vsel %vm1011_vm4, %v2942_v5, 0.0  ;;  %v4596_v19 = vsel %vm1012_vm5, %v2947_v4, 0.0  ;;  %v508_v0 = vadd.s32 1912, %v5993_v33 }
 0x281   : > { %v5105_v8 = vadd.f32 %v5104_v3, %v4594_v7  ;;  %v1599_v3 = vld [vmem:[%s8429_s3 + $0x970] sm:$0xff]  ;;  %vm1023_vm0 = vcmp.eq.s32.totalorder %v507_v61, %v6002_v38 }
 0x282   : > { %vm1024_vm1 = vcmp.eq.s32.totalorder %v508_v0, %v6002_v38 }
 0x283   : > { %v5106_v15 = vadd.f32 %v5105_v8, %v4595_v14  ;;  %v2957_v16 = vpop.permute.xlu1 %2956  ;;  %v2952_v17 = vpop.permute.xlu0 %2951  ;;  %v509_v8 = vadd.s32 1920, %v5993_v33  ;;  %v1602_v14 = vld [vmem:[%s8429_s3 + $0x988] sm:$0xff] }
 0x284   : > { %3276 = vperm.xlu1 %5576, %v1590_v10   ;;  %3271 = vperm.xlu0 %5575, %v1589_v11   ;;  %v4597_v25 = vsel %vm1013_vm6, %v2952_v17, 0.0  ;;  %v4598_v30 = vsel %vm1014_vm7, %v2957_v16, 0.0  ;;  %v510_v11 = vadd.s32 1928, %v5993_v33 }
 0x285   : > { %v5107_v20 = vadd.f32 %v5106_v15, %v4596_v19  ;;  %v1601_v15 = vld [vmem:[%s8429_s3 + $0x980] sm:$0xff]  ;;  %vm1025_vm2 = vcmp.eq.s32.totalorder %v509_v8, %v6002_v38 }
 0x286   : > { %vm1026_vm3 = vcmp.eq.s32.totalorder %v510_v11, %v6002_v38 }
 0x287   : > { %v5108_v26 = vadd.f32 %v5107_v20, %v4597_v25  ;;  %v2967_v27 = vpop.permute.xlu1 %2966  ;;  %v2962_v28 = vpop.permute.xlu0 %2961  ;;  %v511_v20 = vadd.s32 1936, %v5993_v33  ;;  %v1604_v25 = vld [vmem:[%s8429_s3 + $0x998] sm:$0xff] }
 0x288   : > { %3286 = vperm.xlu1 %5576, %v1592_v23   ;;  %3281 = vperm.xlu0 %5575, %v1591_v24   ;;  %v4599_v36 = vsel %vm1015_vm8, %v2962_v28, 0.0  ;;  %v4600_v42 = vsel %vm1016_vm9, %v2967_v27, 0.0  ;;  %v512_v24 = vadd.s32 1944, %v5993_v33 }
 0x289   : > { %v5109_v31 = vadd.f32 %v5108_v26, %v4598_v30  ;;  %v1603_v26 = vld [vmem:[%s8429_s3 + $0x990] sm:$0xff]  ;;  %vm1027_vm4 = vcmp.eq.s32.totalorder %v511_v20, %v6002_v38 }
 0x28a   : > { %vm1028_vm5 = vcmp.eq.s32.totalorder %v512_v24, %v6002_v38 }
 0x28b   : > { %v5110_v37 = vadd.f32 %v5109_v31, %v4599_v36  ;;  %v2977_v39 = vpop.permute.xlu1 %2976  ;;  %v2972_v40 = vpop.permute.xlu0 %2971  ;;  %v513_v31 = vadd.s32 1952, %v5993_v33  ;;  %v1606_v36 = vld [vmem:[%s8429_s3 + $0x9a8] sm:$0xff] }
 0x28c   : > { %3296 = vperm.xlu1 %5576, %v1594_v34   ;;  %3291 = vperm.xlu0 %5575, %v1593_v35   ;;  %v4601_v47 = vsel %vm1017_vm10, %v2972_v40, 0.0  ;;  %v4602_v52 = vsel %vm1018_vm11, %v2977_v39, 0.0  ;;  %v514_v35 = vadd.s32 1960, %v5993_v33 }
 0x28d   : > { %v5111_v43 = vadd.f32 %v5110_v37, %v4600_v42  ;;  %v1605_v37 = vld [vmem:[%s8429_s3 + $0x9a0] sm:$0xff]  ;;  %vm1029_vm6 = vcmp.eq.s32.totalorder %v513_v31, %v6002_v38 }
 0x28e   : > { %vm1030_vm7 = vcmp.eq.s32.totalorder %v514_v35, %v6002_v38 }
 0x28f   : > { %v5112_v48 = vadd.f32 %v5111_v43, %v4601_v47  ;;  %v2987_v49 = vpop.permute.xlu1 %2986  ;;  %v2982_v50 = vpop.permute.xlu0 %2981  ;;  %v515_v43 = vadd.s32 1968, %v5993_v33  ;;  %v1608_v47 = vld [vmem:[%s8429_s3 + $0x9b8] sm:$0xff] }
 0x290   : > { %3306 = vperm.xlu1 %5576, %v1596_v45   ;;  %3301 = vperm.xlu0 %5575, %v1595_v46   ;;  %v4603_v57 = vsel %vm1019_vm12, %v2982_v50, 0.0  ;;  %v4604_v62 = vsel %vm1020_vm13, %v2987_v49, 0.0  ;;  %v516_v46 = vadd.s32 1976, %v5993_v33 }
 0x291   : > { %v5113_v53 = vadd.f32 %v5112_v48, %v4602_v52  ;;  %v1607_v48 = vld [vmem:[%s8429_s3 + $0x9b0] sm:$0xff]  ;;  %vm1031_vm8 = vcmp.eq.s32.totalorder %v515_v43, %v6002_v38 }
 0x292   : > { %vm1032_vm9 = vcmp.eq.s32.totalorder %v516_v46, %v6002_v38 }
 0x293   : > { %v5114_v58 = vadd.f32 %v5113_v53, %v4603_v57  ;;  %v2997_v59 = vpop.permute.xlu1 %2996  ;;  %v2992_v60 = vpop.permute.xlu0 %2991  ;;  %v517_v53 = vadd.s32 1984, %v5993_v33  ;;  %v1610_v57 = vld [vmem:[%s8429_s3 + $0x9c8] sm:$0xff] }
 0x294   : > { %3316 = vperm.xlu1 %5576, %v1598_v55   ;;  %3311 = vperm.xlu0 %5575, %v1597_v56   ;;  %v4605_v4 = vsel %vm1021_vm14, %v2992_v60, 0.0  ;;  %v4606_v9 = vsel %vm1022_vm15, %v2997_v59, 0.0  ;;  %v518_v56 = vadd.s32 1992, %v5993_v33 }
 0x295   : > { %v5115_v63 = vadd.f32 %v5114_v58, %v4604_v62  ;;  %v1609_v58 = vld [vmem:[%s8429_s3 + $0x9c0] sm:$0xff]  ;;  %vm1033_vm10 = vcmp.eq.s32.totalorder %v517_v53, %v6002_v38 }
 0x296   : > { %vm1034_vm11 = vcmp.eq.s32.totalorder %v518_v56, %v6002_v38 }
 0x297   : > { %v5116_v5 = vadd.f32 %v5115_v63, %v4605_v4  ;;  %v3007_v6 = vpop.permute.xlu1 %3006  ;;  %v3002_v7 = vpop.permute.xlu0 %3001  ;;  %v519_v63 = vadd.s32 2000, %v5993_v33  ;;  %v1612_v4 = vld [vmem:[%s8429_s3 + $0x9d8] sm:$0xff] }
 0x298   : > { %3326 = vperm.xlu1 %5576, %v1600_v1   ;;  %3321 = vperm.xlu0 %5575, %v1599_v3   ;;  %v4607_v16 = vsel %vm1023_vm0, %v3002_v7, 0.0  ;;  %v4608_v21 = vsel %vm1024_vm1, %v3007_v6, 0.0  ;;  %v520_v3 = vadd.s32 2008, %v5993_v33 }
 0x299   : > { %v5117_v10 = vadd.f32 %v5116_v5, %v4606_v9  ;;  %v1611_v5 = vld [vmem:[%s8429_s3 + $0x9d0] sm:$0xff]  ;;  %vm1035_vm12 = vcmp.eq.s32.totalorder %v519_v63, %v6002_v38 }
 0x29a   : > { %vm1036_vm13 = vcmp.eq.s32.totalorder %v520_v3, %v6002_v38 }
 0x29b   : > { %v5118_v17 = vadd.f32 %v5117_v10, %v4607_v16  ;;  %v3017_v18 = vpop.permute.xlu1 %3016  ;;  %v3012_v19 = vpop.permute.xlu0 %3011  ;;  %v521_v10 = vadd.s32 2016, %v5993_v33  ;;  %v1614_v16 = vld [vmem:[%s8429_s3 + $0x9e8] sm:$0xff] }
 0x29c   : > { %3336 = vperm.xlu1 %5576, %v1602_v14   ;;  %3331 = vperm.xlu0 %5575, %v1601_v15   ;;  %v4609_v27 = vsel %vm1025_vm2, %v3012_v19, 0.0  ;;  %v4610_v32 = vsel %vm1026_vm3, %v3017_v18, 0.0  ;;  %v522_v15 = vadd.s32 2024, %v5993_v33 }
 0x29d   : > { %v5119_v23 = vadd.f32 %v5118_v17, %v4608_v21  ;;  %v1613_v17 = vld [vmem:[%s8429_s3 + $0x9e0] sm:$0xff]  ;;  %vm1037_vm14 = vcmp.eq.s32.totalorder %v521_v10, %v6002_v38 }
 0x29e   : > { %vm1038_vm15 = vcmp.eq.s32.totalorder %v522_v15, %v6002_v38 }
 0x29f   : > { %v5120_v28 = vadd.f32 %v5119_v23, %v4609_v27  ;;  %v3027_v29 = vpop.permute.xlu1 %3026  ;;  %v3022_v30 = vpop.permute.xlu0 %3021  ;;  %v523_v23 = vadd.s32 2032, %v5993_v33  ;;  %v1616_v27 = vld [vmem:[%s8429_s3 + $0x9f8] sm:$0xff] }
 0x2a0   : > { %3346 = vperm.xlu1 %5576, %v1604_v25   ;;  %3341 = vperm.xlu0 %5575, %v1603_v26   ;;  %v4611_v39 = vsel %vm1027_vm4, %v3022_v30, 0.0  ;;  %v4612_v44 = vsel %vm1028_vm5, %v3027_v29, 0.0  ;;  %v524_v26 = vadd.s32 2040, %v5993_v33 }
 0x2a1   : > { %v5121_v34 = vadd.f32 %v5120_v28, %v4610_v32  ;;  %v1615_v28 = vld [vmem:[%s8429_s3 + $0x9f0] sm:$0xff]  ;;  %vm1039_vm0 = vcmp.eq.s32.totalorder %v523_v23, %v6002_v38 }
 0x2a2   : > { %vm1040_vm1 = vcmp.eq.s32.totalorder %v524_v26, %v6002_v38 }
 0x2a3   : > { %v5122_v40 = vadd.f32 %v5121_v34, %v4611_v39  ;;  %v3037_v41 = vpop.permute.xlu1 %3036  ;;  %v3032_v42 = vpop.permute.xlu0 %3031  ;;  %v525_v34 = vadd.s32 2048, %v5993_v33  ;;  %v1618_v39 = vld [vmem:[%s8429_s3 + $0xa08] sm:$0xff] }
 0x2a4   : > { %3356 = vperm.xlu1 %5576, %v1606_v36   ;;  %3351 = vperm.xlu0 %5575, %v1605_v37   ;;  %v4613_v49 = vsel %vm1029_vm6, %v3032_v42, 0.0  ;;  %v4614_v54 = vsel %vm1030_vm7, %v3037_v41, 0.0  ;;  %v526_v37 = vadd.s32 2056, %v5993_v33 }
 0x2a5   : > { %v5123_v45 = vadd.f32 %v5122_v40, %v4612_v44  ;;  %v1617_v40 = vld [vmem:[%s8429_s3 + $0xa00] sm:$0xff]  ;;  %vm1041_vm2 = vcmp.eq.s32.totalorder %v525_v34, %v6002_v38 }
 0x2a6   : > { %vm1042_vm3 = vcmp.eq.s32.totalorder %v526_v37, %v6002_v38 }
 0x2a7   : > { %v5124_v50 = vadd.f32 %v5123_v45, %v4613_v49  ;;  %v3047_v51 = vpop.permute.xlu1 %3046  ;;  %v3042_v52 = vpop.permute.xlu0 %3041  ;;  %v527_v45 = vadd.s32 2064, %v5993_v33  ;;  %v1620_v49 = vld [vmem:[%s8429_s3 + $0xa18] sm:$0xff] }
 0x2a8   : > { %3366 = vperm.xlu1 %5576, %v1608_v47   ;;  %3361 = vperm.xlu0 %5575, %v1607_v48   ;;  %v4615_v59 = vsel %vm1031_vm8, %v3042_v52, 0.0  ;;  %v4616_v0 = vsel %vm1032_vm9, %v3047_v51, 0.0  ;;  %v528_v48 = vadd.s32 2072, %v5993_v33 }
 0x2a9   : > { %v5125_v55 = vadd.f32 %v5124_v50, %v4614_v54  ;;  %v1619_v50 = vld [vmem:[%s8429_s3 + $0xa10] sm:$0xff]  ;;  %vm1043_vm4 = vcmp.eq.s32.totalorder %v527_v45, %v6002_v38 }
 0x2aa   : > { %vm1044_vm5 = vcmp.eq.s32.totalorder %v528_v48, %v6002_v38 }
 0x2ab   : > { %v5126_v60 = vadd.f32 %v5125_v55, %v4615_v59  ;;  %v3057_v61 = vpop.permute.xlu1 %3056  ;;  %v3052_v62 = vpop.permute.xlu0 %3051  ;;  %v529_v55 = vadd.s32 2080, %v5993_v33  ;;  %v1622_v59 = vld [vmem:[%s8429_s3 + $0xa28] sm:$0xff] }
 0x2ac   : > { %3376 = vperm.xlu1 %5576, %v1610_v57   ;;  %3371 = vperm.xlu0 %5575, %v1609_v58   ;;  %v4617_v6 = vsel %vm1033_vm10, %v3052_v62, 0.0  ;;  %v4618_v11 = vsel %vm1034_vm11, %v3057_v61, 0.0  ;;  %v530_v58 = vadd.s32 2088, %v5993_v33 }
 0x2ad   : > { %v5127_v1 = vadd.f32 %v5126_v60, %v4616_v0  ;;  %v1621_v60 = vld [vmem:[%s8429_s3 + $0xa20] sm:$0xff]  ;;  %vm1045_vm6 = vcmp.eq.s32.totalorder %v529_v55, %v6002_v38 }
 0x2ae   : > { %vm1046_vm7 = vcmp.eq.s32.totalorder %v530_v58, %v6002_v38 }
 0x2af   : > { %v5128_v7 = vadd.f32 %v5127_v1, %v4617_v6  ;;  %v3067_v8 = vpop.permute.xlu1 %3066  ;;  %v3062_v9 = vpop.permute.xlu0 %3061  ;;  %v531_v1 = vadd.s32 2096, %v5993_v33  ;;  %v1624_v6 = vld [vmem:[%s8429_s3 + $0xa38] sm:$0xff] }
 0x2b0   : > { %3386 = vperm.xlu1 %5576, %v1612_v4   ;;  %3381 = vperm.xlu0 %5575, %v1611_v5   ;;  %v4619_v18 = vsel %vm1035_vm12, %v3062_v9, 0.0  ;;  %v4620_v24 = vsel %vm1036_vm13, %v3067_v8, 0.0  ;;  %v532_v5 = vadd.s32 2104, %v5993_v33 }
 0x2b1   : > { %v5129_v14 = vadd.f32 %v5128_v7, %v4618_v11  ;;  %v1623_v7 = vld [vmem:[%s8429_s3 + $0xa30] sm:$0xff]  ;;  %vm1047_vm8 = vcmp.eq.s32.totalorder %v531_v1, %v6002_v38 }
 0x2b2   : > { %vm1048_vm9 = vcmp.eq.s32.totalorder %v532_v5, %v6002_v38 }
 0x2b3   : > { %v5130_v19 = vadd.f32 %v5129_v14, %v4619_v18  ;;  %v3077_v20 = vpop.permute.xlu1 %3076  ;;  %v3072_v21 = vpop.permute.xlu0 %3071  ;;  %v533_v14 = vadd.s32 2112, %v5993_v33  ;;  %v1626_v18 = vld [vmem:[%s8429_s3 + $0xa48] sm:$0xff] }
 0x2b4   : > { %3396 = vperm.xlu1 %5576, %v1614_v16   ;;  %3391 = vperm.xlu0 %5575, %v1613_v17   ;;  %v4621_v29 = vsel %vm1037_vm14, %v3072_v21, 0.0  ;;  %v4622_v35 = vsel %vm1038_vm15, %v3077_v20, 0.0  ;;  %v534_v17 = vadd.s32 2120, %v5993_v33 }
 0x2b5   : > { %v5131_v25 = vadd.f32 %v5130_v19, %v4620_v24  ;;  %v1625_v19 = vld [vmem:[%s8429_s3 + $0xa40] sm:$0xff]  ;;  %vm1049_vm10 = vcmp.eq.s32.totalorder %v533_v14, %v6002_v38 }
 0x2b6   : > { %vm1050_vm11 = vcmp.eq.s32.totalorder %v534_v17, %v6002_v38 }
 0x2b7   : > { %v5132_v30 = vadd.f32 %v5131_v25, %v4621_v29  ;;  %v3087_v31 = vpop.permute.xlu1 %3086  ;;  %v3082_v32 = vpop.permute.xlu0 %3081  ;;  %v535_v25 = vadd.s32 2128, %v5993_v33  ;;  %v1628_v29 = vld [vmem:[%s8429_s3 + $0xa58] sm:$0xff] }
 0x2b8   : > { %3406 = vperm.xlu1 %5576, %v1616_v27   ;;  %3401 = vperm.xlu0 %5575, %v1615_v28   ;;  %v4623_v41 = vsel %vm1039_vm0, %v3082_v32, 0.0  ;;  %v4624_v46 = vsel %vm1040_vm1, %v3087_v31, 0.0  ;;  %v536_v28 = vadd.s32 2136, %v5993_v33 }
 0x2b9   : > { %v5133_v36 = vadd.f32 %v5132_v30, %v4622_v35  ;;  %v1627_v30 = vld [vmem:[%s8429_s3 + $0xa50] sm:$0xff]  ;;  %vm1051_vm12 = vcmp.eq.s32.totalorder %v535_v25, %v6002_v38 }
 0x2ba   : > { %vm1052_vm13 = vcmp.eq.s32.totalorder %v536_v28, %v6002_v38 }
 0x2bb   : > { %v5134_v42 = vadd.f32 %v5133_v36, %v4623_v41  ;;  %v3097_v43 = vpop.permute.xlu1 %3096  ;;  %v3092_v44 = vpop.permute.xlu0 %3091  ;;  %v537_v36 = vadd.s32 2144, %v5993_v33  ;;  %v1630_v41 = vld [vmem:[%s8429_s3 + $0xa68] sm:$0xff] }
 0x2bc   : > { %3416 = vperm.xlu1 %5576, %v1618_v39   ;;  %3411 = vperm.xlu0 %5575, %v1617_v40   ;;  %v4625_v51 = vsel %vm1041_vm2, %v3092_v44, 0.0  ;;  %v4626_v56 = vsel %vm1042_vm3, %v3097_v43, 0.0  ;;  %v538_v40 = vadd.s32 2152, %v5993_v33 }
 0x2bd   : > { %v5135_v47 = vadd.f32 %v5134_v42, %v4624_v46  ;;  %v1629_v42 = vld [vmem:[%s8429_s3 + $0xa60] sm:$0xff]  ;;  %vm1053_vm14 = vcmp.eq.s32.totalorder %v537_v36, %v6002_v38 }
 0x2be   : > { %vm1054_vm15 = vcmp.eq.s32.totalorder %v538_v40, %v6002_v38 }
 0x2bf   : > { %v5136_v52 = vadd.f32 %v5135_v47, %v4625_v51  ;;  %v3107_v53 = vpop.permute.xlu1 %3106  ;;  %v3102_v54 = vpop.permute.xlu0 %3101  ;;  %v539_v47 = vadd.s32 2160, %v5993_v33  ;;  %v1632_v51 = vld [vmem:[%s8429_s3 + $0xa78] sm:$0xff] }
 0x2c0   : > { %3426 = vperm.xlu1 %5576, %v1620_v49   ;;  %3421 = vperm.xlu0 %5575, %v1619_v50   ;;  %v4627_v61 = vsel %vm1043_vm4, %v3102_v54, 0.0  ;;  %v4628_v3 = vsel %vm1044_vm5, %v3107_v53, 0.0  ;;  %v540_v50 = vadd.s32 2168, %v5993_v33 }
 0x2c1   : > { %v5137_v57 = vadd.f32 %v5136_v52, %v4626_v56  ;;  %v1631_v52 = vld [vmem:[%s8429_s3 + $0xa70] sm:$0xff]  ;;  %vm1055_vm0 = vcmp.eq.s32.totalorder %v539_v47, %v6002_v38 }
 0x2c2   : > { %vm1056_vm1 = vcmp.eq.s32.totalorder %v540_v50, %v6002_v38 }
 0x2c3   : > { %v5138_v62 = vadd.f32 %v5137_v57, %v4627_v61  ;;  %v3117_v63 = vpop.permute.xlu1 %3116  ;;  %v3112_v0 = vpop.permute.xlu0 %3111  ;;  %v541_v57 = vadd.s32 2176, %v5993_v33  ;;  %v1634_v61 = vld [vmem:[%s8429_s3 + $0xa88] sm:$0xff] }
 0x2c4   : > { %3436 = vperm.xlu1 %5576, %v1622_v59   ;;  %3431 = vperm.xlu0 %5575, %v1621_v60   ;;  %v4629_v8 = vsel %vm1045_vm6, %v3112_v0, 0.0  ;;  %v4630_v15 = vsel %vm1046_vm7, %v3117_v63, 0.0  ;;  %v542_v60 = vadd.s32 2184, %v5993_v33 }
 0x2c5   : > { %v5139_v4 = vadd.f32 %v5138_v62, %v4628_v3  ;;  %v1633_v62 = vld [vmem:[%s8429_s3 + $0xa80] sm:$0xff]  ;;  %vm1057_vm2 = vcmp.eq.s32.totalorder %v541_v57, %v6002_v38 }
 0x2c6   : > { %vm1058_vm3 = vcmp.eq.s32.totalorder %v542_v60, %v6002_v38 }
 0x2c7   : > { %v5140_v9 = vadd.f32 %v5139_v4, %v4629_v8  ;;  %v3127_v10 = vpop.permute.xlu1 %3126  ;;  %v3122_v11 = vpop.permute.xlu0 %3121  ;;  %v543_v4 = vadd.s32 2192, %v5993_v33  ;;  %v1636_v8 = vld [vmem:[%s8429_s3 + $0xa98] sm:$0xff] }
 0x2c8   : > { %3446 = vperm.xlu1 %5576, %v1624_v6   ;;  %3441 = vperm.xlu0 %5575, %v1623_v7   ;;  %v4631_v20 = vsel %vm1047_vm8, %v3122_v11, 0.0  ;;  %v4632_v26 = vsel %vm1048_vm9, %v3127_v10, 0.0  ;;  %v544_v7 = vadd.s32 2200, %v5993_v33 }
 0x2c9   : > { %v5141_v16 = vadd.f32 %v5140_v9, %v4630_v15  ;;  %v1635_v9 = vld [vmem:[%s8429_s3 + $0xa90] sm:$0xff]  ;;  %vm1059_vm4 = vcmp.eq.s32.totalorder %v543_v4, %v6002_v38 }
 0x2ca   : > { %vm1060_vm5 = vcmp.eq.s32.totalorder %v544_v7, %v6002_v38 }
 0x2cb   : > { %v5142_v21 = vadd.f32 %v5141_v16, %v4631_v20  ;;  %v3137_v23 = vpop.permute.xlu1 %3136  ;;  %v3132_v24 = vpop.permute.xlu0 %3131  ;;  %v545_v16 = vadd.s32 2208, %v5993_v33  ;;  %v1638_v20 = vld [vmem:[%s8429_s3 + $0xaa8] sm:$0xff] }
 0x2cc   : > { %3456 = vperm.xlu1 %5576, %v1626_v18   ;;  %3451 = vperm.xlu0 %5575, %v1625_v19   ;;  %v4633_v31 = vsel %vm1049_vm10, %v3132_v24, 0.0  ;;  %v4634_v37 = vsel %vm1050_vm11, %v3137_v23, 0.0  ;;  %v546_v19 = vadd.s32 2216, %v5993_v33 }
 0x2cd   : > { %v5143_v27 = vadd.f32 %v5142_v21, %v4632_v26  ;;  %v1637_v21 = vld [vmem:[%s8429_s3 + $0xaa0] sm:$0xff]  ;;  %vm1061_vm6 = vcmp.eq.s32.totalorder %v545_v16, %v6002_v38 }
 0x2ce   : > { %vm1062_vm7 = vcmp.eq.s32.totalorder %v546_v19, %v6002_v38 }
 0x2cf   : > { %v5144_v32 = vadd.f32 %v5143_v27, %v4633_v31  ;;  %v3147_v34 = vpop.permute.xlu1 %3146  ;;  %v3142_v35 = vpop.permute.xlu0 %3141  ;;  %v547_v27 = vadd.s32 2224, %v5993_v33  ;;  %v1640_v31 = vld [vmem:[%s8429_s3 + $0xab8] sm:$0xff] }
 0x2d0   : > { %3466 = vperm.xlu1 %5576, %v1628_v29   ;;  %3461 = vperm.xlu0 %5575, %v1627_v30   ;;  %v4635_v43 = vsel %vm1051_vm12, %v3142_v35, 0.0  ;;  %v4636_v48 = vsel %vm1052_vm13, %v3147_v34, 0.0  ;;  %v548_v30 = vadd.s32 2232, %v5993_v33 }
 0x2d1   : > { %v5145_v39 = vadd.f32 %v5144_v32, %v4634_v37  ;;  %v1639_v32 = vld [vmem:[%s8429_s3 + $0xab0] sm:$0xff]  ;;  %vm1063_vm8 = vcmp.eq.s32.totalorder %v547_v27, %v6002_v38 }
 0x2d2   : > { %vm1064_vm9 = vcmp.eq.s32.totalorder %v548_v30, %v6002_v38 }
 0x2d3   : > { %v5146_v44 = vadd.f32 %v5145_v39, %v4635_v43  ;;  %v3157_v45 = vpop.permute.xlu1 %3156  ;;  %v3152_v46 = vpop.permute.xlu0 %3151  ;;  %v549_v39 = vadd.s32 2240, %v5993_v33  ;;  %v1642_v43 = vld [vmem:[%s8429_s3 + $0xac8] sm:$0xff] }
 0x2d4   : > { %3476 = vperm.xlu1 %5576, %v1630_v41   ;;  %3471 = vperm.xlu0 %5575, %v1629_v42   ;;  %v4637_v53 = vsel %vm1053_vm14, %v3152_v46, 0.0  ;;  %v4638_v58 = vsel %vm1054_vm15, %v3157_v45, 0.0  ;;  %v550_v42 = vadd.s32 2248, %v5993_v33 }
 0x2d5   : > { %v5147_v49 = vadd.f32 %v5146_v44, %v4636_v48  ;;  %v1641_v44 = vld [vmem:[%s8429_s3 + $0xac0] sm:$0xff]  ;;  %vm1065_vm10 = vcmp.eq.s32.totalorder %v549_v39, %v6002_v38 }
 0x2d6   : > { %vm1066_vm11 = vcmp.eq.s32.totalorder %v550_v42, %v6002_v38 }
 0x2d7   : > { %v5148_v54 = vadd.f32 %v5147_v49, %v4637_v53  ;;  %v3167_v55 = vpop.permute.xlu1 %3166  ;;  %v3162_v56 = vpop.permute.xlu0 %3161  ;;  %v551_v49 = vadd.s32 2256, %v5993_v33  ;;  %v1644_v53 = vld [vmem:[%s8429_s3 + $0xad8] sm:$0xff] }
 0x2d8   : > { %3486 = vperm.xlu1 %5576, %v1632_v51   ;;  %3481 = vperm.xlu0 %5575, %v1631_v52   ;;  %v4639_v63 = vsel %vm1055_vm0, %v3162_v56, 0.0  ;;  %v4640_v5 = vsel %vm1056_vm1, %v3167_v55, 0.0  ;;  %v552_v52 = vadd.s32 2264, %v5993_v33 }
 0x2d9   : > { %v5149_v59 = vadd.f32 %v5148_v54, %v4638_v58  ;;  %v1643_v54 = vld [vmem:[%s8429_s3 + $0xad0] sm:$0xff]  ;;  %vm1067_vm12 = vcmp.eq.s32.totalorder %v551_v49, %v6002_v38 }
 0x2da   : > { %vm1068_vm13 = vcmp.eq.s32.totalorder %v552_v52, %v6002_v38 }
 0x2db   : > { %v5150_v0 = vadd.f32 %v5149_v59, %v4639_v63  ;;  %v3177_v1 = vpop.permute.xlu1 %3176  ;;  %v3172_v3 = vpop.permute.xlu0 %3171  ;;  %v553_v59 = vadd.s32 2272, %v5993_v33  ;;  %v1646_v63 = vld [vmem:[%s8429_s3 + $0xae8] sm:$0xff] }
 0x2dc   : > { %3496 = vperm.xlu1 %5576, %v1634_v61   ;;  %3491 = vperm.xlu0 %5575, %v1633_v62   ;;  %v4641_v10 = vsel %vm1057_vm2, %v3172_v3, 0.0  ;;  %v4642_v17 = vsel %vm1058_vm3, %v3177_v1, 0.0  ;;  %v554_v62 = vadd.s32 2280, %v5993_v33 }
 0x2dd   : > { %v5151_v6 = vadd.f32 %v5150_v0, %v4640_v5  ;;  %v1645_v0 = vld [vmem:[%s8429_s3 + $0xae0] sm:$0xff]  ;;  %vm1069_vm14 = vcmp.eq.s32.totalorder %v553_v59, %v6002_v38 }
 0x2de   : > { %vm1070_vm15 = vcmp.eq.s32.totalorder %v554_v62, %v6002_v38 }
 0x2df   : > { %v5152_v11 = vadd.f32 %v5151_v6, %v4641_v10  ;;  %v3187_v14 = vpop.permute.xlu1 %3186  ;;  %v3182_v15 = vpop.permute.xlu0 %3181  ;;  %v555_v6 = vadd.s32 2288, %v5993_v33  ;;  %v1648_v10 = vld [vmem:[%s8429_s3 + $0xaf8] sm:$0xff] }
 0x2e0   : > { %3506 = vperm.xlu1 %5576, %v1636_v8   ;;  %3501 = vperm.xlu0 %5575, %v1635_v9   ;;  %v4643_v23 = vsel %vm1059_vm4, %v3182_v15, 0.0  ;;  %v4644_v28 = vsel %vm1060_vm5, %v3187_v14, 0.0  ;;  %v556_v9 = vadd.s32 2296, %v5993_v33 }
 0x2e1   : > { %v5153_v18 = vadd.f32 %v5152_v11, %v4642_v17  ;;  %v1647_v11 = vld [vmem:[%s8429_s3 + $0xaf0] sm:$0xff]  ;;  %vm1071_vm0 = vcmp.eq.s32.totalorder %v555_v6, %v6002_v38 }
 0x2e2   : > { %vm1072_vm1 = vcmp.eq.s32.totalorder %v556_v9, %v6002_v38 }
 0x2e3   : > { %v5154_v24 = vadd.f32 %v5153_v18, %v4643_v23  ;;  %v3197_v25 = vpop.permute.xlu1 %3196  ;;  %v3192_v26 = vpop.permute.xlu0 %3191  ;;  %v557_v18 = vadd.s32 2304, %v5993_v33  ;;  %v1650_v23 = vld [vmem:[%s8429_s3 + $0xb08] sm:$0xff] }
 0x2e4   : > { %3516 = vperm.xlu1 %5576, %v1638_v20   ;;  %3511 = vperm.xlu0 %5575, %v1637_v21   ;;  %v4645_v34 = vsel %vm1061_vm6, %v3192_v26, 0.0  ;;  %v4646_v40 = vsel %vm1062_vm7, %v3197_v25, 0.0  ;;  %v558_v21 = vadd.s32 2312, %v5993_v33 }
 0x2e5   : > { %v5155_v29 = vadd.f32 %v5154_v24, %v4644_v28  ;;  %v1649_v24 = vld [vmem:[%s8429_s3 + $0xb00] sm:$0xff]  ;;  %vm1073_vm2 = vcmp.eq.s32.totalorder %v557_v18, %v6002_v38 }
 0x2e6   : > { %vm1074_vm3 = vcmp.eq.s32.totalorder %v558_v21, %v6002_v38 }
 0x2e7   : > { %v5156_v35 = vadd.f32 %v5155_v29, %v4645_v34  ;;  %v3207_v36 = vpop.permute.xlu1 %3206  ;;  %v3202_v37 = vpop.permute.xlu0 %3201  ;;  %v559_v29 = vadd.s32 2320, %v5993_v33  ;;  %v1652_v34 = vld [vmem:[%s8429_s3 + $0xb18] sm:$0xff] }
 0x2e8   : > { %3526 = vperm.xlu1 %5576, %v1640_v31   ;;  %3521 = vperm.xlu0 %5575, %v1639_v32   ;;  %v4647_v45 = vsel %vm1063_vm8, %v3202_v37, 0.0  ;;  %v4648_v50 = vsel %vm1064_vm9, %v3207_v36, 0.0  ;;  %v560_v32 = vadd.s32 2328, %v5993_v33 }
 0x2e9   : > { %v5157_v41 = vadd.f32 %v5156_v35, %v4646_v40  ;;  %v1651_v35 = vld [vmem:[%s8429_s3 + $0xb10] sm:$0xff]  ;;  %vm1075_vm4 = vcmp.eq.s32.totalorder %v559_v29, %v6002_v38 }
 0x2ea   : > { %vm1076_vm5 = vcmp.eq.s32.totalorder %v560_v32, %v6002_v38 }
 0x2eb   : > { %v5158_v46 = vadd.f32 %v5157_v41, %v4647_v45  ;;  %v3217_v47 = vpop.permute.xlu1 %3216  ;;  %v3212_v48 = vpop.permute.xlu0 %3211  ;;  %v561_v41 = vadd.s32 2336, %v5993_v33  ;;  %v1654_v45 = vld [vmem:[%s8429_s3 + $0xb28] sm:$0xff] }
 0x2ec   : > { %3536 = vperm.xlu1 %5576, %v1642_v43   ;;  %3531 = vperm.xlu0 %5575, %v1641_v44   ;;  %v4649_v55 = vsel %vm1065_vm10, %v3212_v48, 0.0  ;;  %v4650_v60 = vsel %vm1066_vm11, %v3217_v47, 0.0  ;;  %v562_v44 = vadd.s32 2344, %v5993_v33 }
 0x2ed   : > { %v5159_v51 = vadd.f32 %v5158_v46, %v4648_v50  ;;  %v1653_v46 = vld [vmem:[%s8429_s3 + $0xb20] sm:$0xff]  ;;  %vm1077_vm6 = vcmp.eq.s32.totalorder %v561_v41, %v6002_v38 }
 0x2ee   : > { %vm1078_vm7 = vcmp.eq.s32.totalorder %v562_v44, %v6002_v38 }
 0x2ef   : > { %v5160_v56 = vadd.f32 %v5159_v51, %v4649_v55  ;;  %v3227_v57 = vpop.permute.xlu1 %3226  ;;  %v3222_v58 = vpop.permute.xlu0 %3221  ;;  %v563_v51 = vadd.s32 2352, %v5993_v33  ;;  %v1656_v55 = vld [vmem:[%s8429_s3 + $0xb38] sm:$0xff] }
 0x2f0   : > { %3546 = vperm.xlu1 %5576, %v1644_v53   ;;  %3541 = vperm.xlu0 %5575, %v1643_v54   ;;  %v4651_v1 = vsel %vm1067_vm12, %v3222_v58, 0.0  ;;  %v4652_v7 = vsel %vm1068_vm13, %v3227_v57, 0.0  ;;  %v564_v54 = vadd.s32 2360, %v5993_v33 }
 0x2f1   : > { %v5161_v61 = vadd.f32 %v5160_v56, %v4650_v60  ;;  %v1655_v56 = vld [vmem:[%s8429_s3 + $0xb30] sm:$0xff]  ;;  %vm1079_vm8 = vcmp.eq.s32.totalorder %v563_v51, %v6002_v38 }
 0x2f2   : > { %vm1080_vm9 = vcmp.eq.s32.totalorder %v564_v54, %v6002_v38 }
 0x2f3   : > { %v5162_v3 = vadd.f32 %v5161_v61, %v4651_v1  ;;  %v3237_v4 = vpop.permute.xlu1 %3236  ;;  %v3232_v5 = vpop.permute.xlu0 %3231  ;;  %v565_v61 = vadd.s32 2368, %v5993_v33  ;;  %v1658_v1 = vld [vmem:[%s8429_s3 + $0xb48] sm:$0xff] }
 0x2f4   : > { %3556 = vperm.xlu1 %5576, %v1646_v63   ;;  %3551 = vperm.xlu0 %5575, %v1645_v0   ;;  %v4653_v14 = vsel %vm1069_vm14, %v3232_v5, 0.0  ;;  %v4654_v19 = vsel %vm1070_vm15, %v3237_v4, 0.0  ;;  %v566_v0 = vadd.s32 2376, %v5993_v33 }
 0x2f5   : > { %v5163_v8 = vadd.f32 %v5162_v3, %v4652_v7  ;;  %v1657_v3 = vld [vmem:[%s8429_s3 + $0xb40] sm:$0xff]  ;;  %vm1081_vm10 = vcmp.eq.s32.totalorder %v565_v61, %v6002_v38 }
 0x2f6   : > { %vm1082_vm11 = vcmp.eq.s32.totalorder %v566_v0, %v6002_v38 }
 0x2f7   : > { %v5164_v15 = vadd.f32 %v5163_v8, %v4653_v14  ;;  %v3247_v16 = vpop.permute.xlu1 %3246  ;;  %v3242_v17 = vpop.permute.xlu0 %3241  ;;  %v567_v8 = vadd.s32 2384, %v5993_v33  ;;  %v1660_v14 = vld [vmem:[%s8429_s3 + $0xb58] sm:$0xff] }
 0x2f8   : > { %3566 = vperm.xlu1 %5576, %v1648_v10   ;;  %3561 = vperm.xlu0 %5575, %v1647_v11   ;;  %v4655_v25 = vsel %vm1071_vm0, %v3242_v17, 0.0  ;;  %v4656_v30 = vsel %vm1072_vm1, %v3247_v16, 0.0  ;;  %v568_v11 = vadd.s32 2392, %v5993_v33 }
 0x2f9   : > { %v5165_v20 = vadd.f32 %v5164_v15, %v4654_v19  ;;  %v1659_v15 = vld [vmem:[%s8429_s3 + $0xb50] sm:$0xff]  ;;  %vm1083_vm12 = vcmp.eq.s32.totalorder %v567_v8, %v6002_v38 }
 0x2fa   : > { %vm1084_vm13 = vcmp.eq.s32.totalorder %v568_v11, %v6002_v38 }
 0x2fb   : > { %v5166_v26 = vadd.f32 %v5165_v20, %v4655_v25  ;;  %v3257_v27 = vpop.permute.xlu1 %3256  ;;  %v3252_v28 = vpop.permute.xlu0 %3251  ;;  %v569_v20 = vadd.s32 2400, %v5993_v33  ;;  %v1662_v25 = vld [vmem:[%s8429_s3 + $0xb68] sm:$0xff] }
 0x2fc   : > { %3576 = vperm.xlu1 %5576, %v1650_v23   ;;  %3571 = vperm.xlu0 %5575, %v1649_v24   ;;  %v4657_v36 = vsel %vm1073_vm2, %v3252_v28, 0.0  ;;  %v4658_v42 = vsel %vm1074_vm3, %v3257_v27, 0.0  ;;  %v570_v24 = vadd.s32 2408, %v5993_v33 }
 0x2fd   : > { %v5167_v31 = vadd.f32 %v5166_v26, %v4656_v30  ;;  %v1661_v26 = vld [vmem:[%s8429_s3 + $0xb60] sm:$0xff]  ;;  %vm1085_vm14 = vcmp.eq.s32.totalorder %v569_v20, %v6002_v38 }
 0x2fe   : > { %vm1086_vm15 = vcmp.eq.s32.totalorder %v570_v24, %v6002_v38 }
 0x2ff   : > { %v5168_v37 = vadd.f32 %v5167_v31, %v4657_v36  ;;  %v3267_v39 = vpop.permute.xlu1 %3266  ;;  %v3262_v40 = vpop.permute.xlu0 %3261  ;;  %v571_v31 = vadd.s32 2416, %v5993_v33  ;;  %v1664_v36 = vld [vmem:[%s8429_s3 + $0xb78] sm:$0xff] }
 0x300   : > { %3586 = vperm.xlu1 %5576, %v1652_v34   ;;  %3581 = vperm.xlu0 %5575, %v1651_v35   ;;  %v4659_v47 = vsel %vm1075_vm4, %v3262_v40, 0.0  ;;  %v4660_v52 = vsel %vm1076_vm5, %v3267_v39, 0.0  ;;  %v572_v35 = vadd.s32 2424, %v5993_v33 }
 0x301   : > { %v5169_v43 = vadd.f32 %v5168_v37, %v4658_v42  ;;  %v1663_v37 = vld [vmem:[%s8429_s3 + $0xb70] sm:$0xff]  ;;  %vm1087_vm0 = vcmp.eq.s32.totalorder %v571_v31, %v6002_v38 }
 0x302   : > { %vm1088_vm1 = vcmp.eq.s32.totalorder %v572_v35, %v6002_v38 }
 0x303   : > { %v5170_v48 = vadd.f32 %v5169_v43, %v4659_v47  ;;  %v3277_v49 = vpop.permute.xlu1 %3276  ;;  %v3272_v50 = vpop.permute.xlu0 %3271  ;;  %v573_v43 = vadd.s32 2432, %v5993_v33  ;;  %v1666_v47 = vld [vmem:[%s8429_s3 + $0xb88] sm:$0xff] }
 0x304   : > { %3596 = vperm.xlu1 %5576, %v1654_v45   ;;  %3591 = vperm.xlu0 %5575, %v1653_v46   ;;  %v4661_v57 = vsel %vm1077_vm6, %v3272_v50, 0.0  ;;  %v4662_v62 = vsel %vm1078_vm7, %v3277_v49, 0.0  ;;  %v574_v46 = vadd.s32 2440, %v5993_v33 }
 0x305   : > { %v5171_v53 = vadd.f32 %v5170_v48, %v4660_v52  ;;  %v1665_v48 = vld [vmem:[%s8429_s3 + $0xb80] sm:$0xff]  ;;  %vm1089_vm2 = vcmp.eq.s32.totalorder %v573_v43, %v6002_v38 }
 0x306   : > { %vm1090_vm3 = vcmp.eq.s32.totalorder %v574_v46, %v6002_v38 }
 0x307   : > { %v5172_v58 = vadd.f32 %v5171_v53, %v4661_v57  ;;  %v3287_v59 = vpop.permute.xlu1 %3286  ;;  %v3282_v60 = vpop.permute.xlu0 %3281  ;;  %v575_v53 = vadd.s32 2448, %v5993_v33  ;;  %v1668_v57 = vld [vmem:[%s8429_s3 + $0xb98] sm:$0xff] }
 0x308   : > { %3606 = vperm.xlu1 %5576, %v1656_v55   ;;  %3601 = vperm.xlu0 %5575, %v1655_v56   ;;  %v4663_v4 = vsel %vm1079_vm8, %v3282_v60, 0.0  ;;  %v4664_v9 = vsel %vm1080_vm9, %v3287_v59, 0.0  ;;  %v576_v56 = vadd.s32 2456, %v5993_v33 }
 0x309   : > { %v5173_v63 = vadd.f32 %v5172_v58, %v4662_v62  ;;  %v1667_v58 = vld [vmem:[%s8429_s3 + $0xb90] sm:$0xff]  ;;  %vm1091_vm4 = vcmp.eq.s32.totalorder %v575_v53, %v6002_v38 }
 0x30a   : > { %vm1092_vm5 = vcmp.eq.s32.totalorder %v576_v56, %v6002_v38 }
 0x30b   : > { %v5174_v5 = vadd.f32 %v5173_v63, %v4663_v4  ;;  %v3297_v6 = vpop.permute.xlu1 %3296  ;;  %v3292_v7 = vpop.permute.xlu0 %3291  ;;  %v577_v63 = vadd.s32 2464, %v5993_v33  ;;  %v1670_v4 = vld [vmem:[%s8429_s3 + $0xba8] sm:$0xff] }
 0x30c   : > { %3616 = vperm.xlu1 %5576, %v1658_v1   ;;  %3611 = vperm.xlu0 %5575, %v1657_v3   ;;  %v4665_v16 = vsel %vm1081_vm10, %v3292_v7, 0.0  ;;  %v4666_v21 = vsel %vm1082_vm11, %v3297_v6, 0.0  ;;  %v578_v3 = vadd.s32 2472, %v5993_v33 }
 0x30d   : > { %v5175_v10 = vadd.f32 %v5174_v5, %v4664_v9  ;;  %v1669_v5 = vld [vmem:[%s8429_s3 + $0xba0] sm:$0xff]  ;;  %vm1093_vm6 = vcmp.eq.s32.totalorder %v577_v63, %v6002_v38 }
 0x30e   : > { %vm1094_vm7 = vcmp.eq.s32.totalorder %v578_v3, %v6002_v38 }
 0x30f   : > { %v5176_v17 = vadd.f32 %v5175_v10, %v4665_v16  ;;  %v3307_v18 = vpop.permute.xlu1 %3306  ;;  %v3302_v19 = vpop.permute.xlu0 %3301  ;;  %v579_v10 = vadd.s32 2480, %v5993_v33  ;;  %v1672_v16 = vld [vmem:[%s8429_s3 + $0xbb8] sm:$0xff] }
 0x310   : > { %3626 = vperm.xlu1 %5576, %v1660_v14   ;;  %3621 = vperm.xlu0 %5575, %v1659_v15   ;;  %v4667_v27 = vsel %vm1083_vm12, %v3302_v19, 0.0  ;;  %v4668_v32 = vsel %vm1084_vm13, %v3307_v18, 0.0  ;;  %v580_v15 = vadd.s32 2488, %v5993_v33 }
 0x311   : > { %v5177_v23 = vadd.f32 %v5176_v17, %v4666_v21  ;;  %v1671_v17 = vld [vmem:[%s8429_s3 + $0xbb0] sm:$0xff]  ;;  %vm1095_vm8 = vcmp.eq.s32.totalorder %v579_v10, %v6002_v38 }
 0x312   : > { %vm1096_vm9 = vcmp.eq.s32.totalorder %v580_v15, %v6002_v38 }
 0x313   : > { %v5178_v28 = vadd.f32 %v5177_v23, %v4667_v27  ;;  %v3317_v29 = vpop.permute.xlu1 %3316  ;;  %v3312_v30 = vpop.permute.xlu0 %3311  ;;  %v581_v23 = vadd.s32 2496, %v5993_v33  ;;  %v1674_v27 = vld [vmem:[%s8429_s3 + $0xbc8] sm:$0xff] }
 0x314   : > { %3636 = vperm.xlu1 %5576, %v1662_v25   ;;  %3631 = vperm.xlu0 %5575, %v1661_v26   ;;  %v4669_v39 = vsel %vm1085_vm14, %v3312_v30, 0.0  ;;  %v4670_v44 = vsel %vm1086_vm15, %v3317_v29, 0.0  ;;  %v582_v26 = vadd.s32 2504, %v5993_v33 }
 0x315   : > { %v5179_v34 = vadd.f32 %v5178_v28, %v4668_v32  ;;  %v1673_v28 = vld [vmem:[%s8429_s3 + $0xbc0] sm:$0xff]  ;;  %vm1097_vm10 = vcmp.eq.s32.totalorder %v581_v23, %v6002_v38 }
 0x316   : > { %vm1098_vm11 = vcmp.eq.s32.totalorder %v582_v26, %v6002_v38 }
 0x317   : > { %v5180_v40 = vadd.f32 %v5179_v34, %v4669_v39  ;;  %v3327_v41 = vpop.permute.xlu1 %3326  ;;  %v3322_v42 = vpop.permute.xlu0 %3321  ;;  %v583_v34 = vadd.s32 2512, %v5993_v33  ;;  %v1676_v39 = vld [vmem:[%s8429_s3 + $0xbd8] sm:$0xff] }
 0x318   : > { %3646 = vperm.xlu1 %5576, %v1664_v36   ;;  %3641 = vperm.xlu0 %5575, %v1663_v37   ;;  %v4671_v49 = vsel %vm1087_vm0, %v3322_v42, 0.0  ;;  %v4672_v54 = vsel %vm1088_vm1, %v3327_v41, 0.0  ;;  %v584_v37 = vadd.s32 2520, %v5993_v33 }
 0x319   : > { %v5181_v45 = vadd.f32 %v5180_v40, %v4670_v44  ;;  %v1675_v40 = vld [vmem:[%s8429_s3 + $0xbd0] sm:$0xff]  ;;  %vm1099_vm12 = vcmp.eq.s32.totalorder %v583_v34, %v6002_v38 }
 0x31a   : > { %vm1100_vm13 = vcmp.eq.s32.totalorder %v584_v37, %v6002_v38 }
 0x31b   : > { %v5182_v50 = vadd.f32 %v5181_v45, %v4671_v49  ;;  %v3337_v51 = vpop.permute.xlu1 %3336  ;;  %v3332_v52 = vpop.permute.xlu0 %3331  ;;  %v585_v45 = vadd.s32 2528, %v5993_v33  ;;  %v1678_v49 = vld [vmem:[%s8429_s3 + $0xbe8] sm:$0xff] }
 0x31c   : > { %3656 = vperm.xlu1 %5576, %v1666_v47   ;;  %3651 = vperm.xlu0 %5575, %v1665_v48   ;;  %v4673_v59 = vsel %vm1089_vm2, %v3332_v52, 0.0  ;;  %v4674_v0 = vsel %vm1090_vm3, %v3337_v51, 0.0  ;;  %v586_v48 = vadd.s32 2536, %v5993_v33 }
 0x31d   : > { %v5183_v55 = vadd.f32 %v5182_v50, %v4672_v54  ;;  %v1677_v50 = vld [vmem:[%s8429_s3 + $0xbe0] sm:$0xff]  ;;  %vm1101_vm14 = vcmp.eq.s32.totalorder %v585_v45, %v6002_v38 }
 0x31e   : > { %vm1102_vm15 = vcmp.eq.s32.totalorder %v586_v48, %v6002_v38 }
 0x31f   : > { %v5184_v60 = vadd.f32 %v5183_v55, %v4673_v59  ;;  %v3347_v61 = vpop.permute.xlu1 %3346  ;;  %v3342_v62 = vpop.permute.xlu0 %3341  ;;  %v587_v55 = vadd.s32 2544, %v5993_v33  ;;  %v1680_v59 = vld [vmem:[%s8429_s3 + $0xbf8] sm:$0xff] }
 0x320   : > { %3666 = vperm.xlu1 %5576, %v1668_v57   ;;  %3661 = vperm.xlu0 %5575, %v1667_v58   ;;  %v4675_v6 = vsel %vm1091_vm4, %v3342_v62, 0.0  ;;  %v4676_v11 = vsel %vm1092_vm5, %v3347_v61, 0.0  ;;  %v588_v58 = vadd.s32 2552, %v5993_v33 }
 0x321   : > { %v5185_v1 = vadd.f32 %v5184_v60, %v4674_v0  ;;  %v1679_v60 = vld [vmem:[%s8429_s3 + $0xbf0] sm:$0xff]  ;;  %vm1103_vm0 = vcmp.eq.s32.totalorder %v587_v55, %v6002_v38 }
 0x322   : > { %vm1104_vm1 = vcmp.eq.s32.totalorder %v588_v58, %v6002_v38 }
 0x323   : > { %v5186_v7 = vadd.f32 %v5185_v1, %v4675_v6  ;;  %v3357_v8 = vpop.permute.xlu1 %3356  ;;  %v3352_v9 = vpop.permute.xlu0 %3351  ;;  %v589_v1 = vadd.s32 2560, %v5993_v33  ;;  %v1682_v6 = vld [vmem:[%s8429_s3 + $0xc08] sm:$0xff] }
 0x324   : > { %3676 = vperm.xlu1 %5576, %v1670_v4   ;;  %3671 = vperm.xlu0 %5575, %v1669_v5   ;;  %v4677_v18 = vsel %vm1093_vm6, %v3352_v9, 0.0  ;;  %v4678_v24 = vsel %vm1094_vm7, %v3357_v8, 0.0  ;;  %v590_v5 = vadd.s32 2568, %v5993_v33 }
 0x325   : > { %v5187_v14 = vadd.f32 %v5186_v7, %v4676_v11  ;;  %v1681_v7 = vld [vmem:[%s8429_s3 + $0xc00] sm:$0xff]  ;;  %vm1105_vm2 = vcmp.eq.s32.totalorder %v589_v1, %v6002_v38 }
 0x326   : > { %vm1106_vm3 = vcmp.eq.s32.totalorder %v590_v5, %v6002_v38 }
 0x327   : > { %v5188_v19 = vadd.f32 %v5187_v14, %v4677_v18  ;;  %v3367_v20 = vpop.permute.xlu1 %3366  ;;  %v3362_v21 = vpop.permute.xlu0 %3361  ;;  %v591_v14 = vadd.s32 2576, %v5993_v33  ;;  %v1684_v18 = vld [vmem:[%s8429_s3 + $0xc18] sm:$0xff] }
 0x328   : > { %3686 = vperm.xlu1 %5576, %v1672_v16   ;;  %3681 = vperm.xlu0 %5575, %v1671_v17   ;;  %v4679_v29 = vsel %vm1095_vm8, %v3362_v21, 0.0  ;;  %v4680_v35 = vsel %vm1096_vm9, %v3367_v20, 0.0  ;;  %v592_v17 = vadd.s32 2584, %v5993_v33 }
 0x329   : > { %v5189_v25 = vadd.f32 %v5188_v19, %v4678_v24  ;;  %v1683_v19 = vld [vmem:[%s8429_s3 + $0xc10] sm:$0xff]  ;;  %vm1107_vm4 = vcmp.eq.s32.totalorder %v591_v14, %v6002_v38 }
 0x32a   : > { %vm1108_vm5 = vcmp.eq.s32.totalorder %v592_v17, %v6002_v38 }
 0x32b   : > { %v5190_v30 = vadd.f32 %v5189_v25, %v4679_v29  ;;  %v3377_v31 = vpop.permute.xlu1 %3376  ;;  %v3372_v32 = vpop.permute.xlu0 %3371  ;;  %v593_v25 = vadd.s32 2592, %v5993_v33  ;;  %v1686_v29 = vld [vmem:[%s8429_s3 + $0xc28] sm:$0xff] }
 0x32c   : > { %3696 = vperm.xlu1 %5576, %v1674_v27   ;;  %3691 = vperm.xlu0 %5575, %v1673_v28   ;;  %v4681_v41 = vsel %vm1097_vm10, %v3372_v32, 0.0  ;;  %v4682_v46 = vsel %vm1098_vm11, %v3377_v31, 0.0  ;;  %v594_v28 = vadd.s32 2600, %v5993_v33 }
 0x32d   : > { %v5191_v36 = vadd.f32 %v5190_v30, %v4680_v35  ;;  %v1685_v30 = vld [vmem:[%s8429_s3 + $0xc20] sm:$0xff]  ;;  %vm1109_vm6 = vcmp.eq.s32.totalorder %v593_v25, %v6002_v38 }
 0x32e   : > { %vm1110_vm7 = vcmp.eq.s32.totalorder %v594_v28, %v6002_v38 }
 0x32f   : > { %v5192_v42 = vadd.f32 %v5191_v36, %v4681_v41  ;;  %v3387_v43 = vpop.permute.xlu1 %3386  ;;  %v3382_v44 = vpop.permute.xlu0 %3381  ;;  %v595_v36 = vadd.s32 2608, %v5993_v33  ;;  %v1688_v41 = vld [vmem:[%s8429_s3 + $0xc38] sm:$0xff] }
 0x330   : > { %3706 = vperm.xlu1 %5576, %v1676_v39   ;;  %3701 = vperm.xlu0 %5575, %v1675_v40   ;;  %v4683_v51 = vsel %vm1099_vm12, %v3382_v44, 0.0  ;;  %v4684_v56 = vsel %vm1100_vm13, %v3387_v43, 0.0  ;;  %v596_v40 = vadd.s32 2616, %v5993_v33 }
 0x331   : > { %v5193_v47 = vadd.f32 %v5192_v42, %v4682_v46  ;;  %v1687_v42 = vld [vmem:[%s8429_s3 + $0xc30] sm:$0xff]  ;;  %vm1111_vm8 = vcmp.eq.s32.totalorder %v595_v36, %v6002_v38 }
 0x332   : > { %vm1112_vm9 = vcmp.eq.s32.totalorder %v596_v40, %v6002_v38 }
 0x333   : > { %v5194_v52 = vadd.f32 %v5193_v47, %v4683_v51  ;;  %v3397_v53 = vpop.permute.xlu1 %3396  ;;  %v3392_v54 = vpop.permute.xlu0 %3391  ;;  %v597_v47 = vadd.s32 2624, %v5993_v33  ;;  %v1690_v51 = vld [vmem:[%s8429_s3 + $0xc48] sm:$0xff] }
 0x334   : > { %3716 = vperm.xlu1 %5576, %v1678_v49   ;;  %3711 = vperm.xlu0 %5575, %v1677_v50   ;;  %v4685_v61 = vsel %vm1101_vm14, %v3392_v54, 0.0  ;;  %v4686_v3 = vsel %vm1102_vm15, %v3397_v53, 0.0  ;;  %v598_v50 = vadd.s32 2632, %v5993_v33 }
 0x335   : > { %v5195_v57 = vadd.f32 %v5194_v52, %v4684_v56  ;;  %v1689_v52 = vld [vmem:[%s8429_s3 + $0xc40] sm:$0xff]  ;;  %vm1113_vm10 = vcmp.eq.s32.totalorder %v597_v47, %v6002_v38 }
 0x336   : > { %vm1114_vm11 = vcmp.eq.s32.totalorder %v598_v50, %v6002_v38 }
 0x337   : > { %v5196_v62 = vadd.f32 %v5195_v57, %v4685_v61  ;;  %v3407_v63 = vpop.permute.xlu1 %3406  ;;  %v3402_v0 = vpop.permute.xlu0 %3401  ;;  %v599_v57 = vadd.s32 2640, %v5993_v33  ;;  %v1692_v61 = vld [vmem:[%s8429_s3 + $0xc58] sm:$0xff] }
 0x338   : > { %3726 = vperm.xlu1 %5576, %v1680_v59   ;;  %3721 = vperm.xlu0 %5575, %v1679_v60   ;;  %v4687_v8 = vsel %vm1103_vm0, %v3402_v0, 0.0  ;;  %v4688_v15 = vsel %vm1104_vm1, %v3407_v63, 0.0  ;;  %v600_v60 = vadd.s32 2648, %v5993_v33 }
 0x339   : > { %v5197_v4 = vadd.f32 %v5196_v62, %v4686_v3  ;;  %v1691_v62 = vld [vmem:[%s8429_s3 + $0xc50] sm:$0xff]  ;;  %vm1115_vm12 = vcmp.eq.s32.totalorder %v599_v57, %v6002_v38 }
 0x33a   : > { %vm1116_vm13 = vcmp.eq.s32.totalorder %v600_v60, %v6002_v38 }
 0x33b   : > { %v5198_v9 = vadd.f32 %v5197_v4, %v4687_v8  ;;  %v3417_v10 = vpop.permute.xlu1 %3416  ;;  %v3412_v11 = vpop.permute.xlu0 %3411  ;;  %v601_v4 = vadd.s32 2656, %v5993_v33  ;;  %v1694_v8 = vld [vmem:[%s8429_s3 + $0xc68] sm:$0xff] }
 0x33c   : > { %3736 = vperm.xlu1 %5576, %v1682_v6   ;;  %3731 = vperm.xlu0 %5575, %v1681_v7   ;;  %v4689_v20 = vsel %vm1105_vm2, %v3412_v11, 0.0  ;;  %v4690_v26 = vsel %vm1106_vm3, %v3417_v10, 0.0  ;;  %v602_v7 = vadd.s32 2664, %v5993_v33 }
 0x33d   : > { %v5199_v16 = vadd.f32 %v5198_v9, %v4688_v15  ;;  %v1693_v9 = vld [vmem:[%s8429_s3 + $0xc60] sm:$0xff]  ;;  %vm1117_vm14 = vcmp.eq.s32.totalorder %v601_v4, %v6002_v38 }
 0x33e   : > { %vm1118_vm15 = vcmp.eq.s32.totalorder %v602_v7, %v6002_v38 }
 0x33f   : > { %v5200_v21 = vadd.f32 %v5199_v16, %v4689_v20  ;;  %v3427_v23 = vpop.permute.xlu1 %3426  ;;  %v3422_v24 = vpop.permute.xlu0 %3421  ;;  %v603_v16 = vadd.s32 2672, %v5993_v33  ;;  %v1696_v20 = vld [vmem:[%s8429_s3 + $0xc78] sm:$0xff] }
 0x340   : > { %3746 = vperm.xlu1 %5576, %v1684_v18   ;;  %3741 = vperm.xlu0 %5575, %v1683_v19   ;;  %v4691_v31 = vsel %vm1107_vm4, %v3422_v24, 0.0  ;;  %v4692_v37 = vsel %vm1108_vm5, %v3427_v23, 0.0  ;;  %v604_v19 = vadd.s32 2680, %v5993_v33 }
 0x341   : > { %v5201_v27 = vadd.f32 %v5200_v21, %v4690_v26  ;;  %v1695_v21 = vld [vmem:[%s8429_s3 + $0xc70] sm:$0xff]  ;;  %vm1119_vm0 = vcmp.eq.s32.totalorder %v603_v16, %v6002_v38 }
 0x342   : > { %vm1120_vm1 = vcmp.eq.s32.totalorder %v604_v19, %v6002_v38 }
 0x343   : > { %v5202_v32 = vadd.f32 %v5201_v27, %v4691_v31  ;;  %v3437_v34 = vpop.permute.xlu1 %3436  ;;  %v3432_v35 = vpop.permute.xlu0 %3431  ;;  %v605_v27 = vadd.s32 2688, %v5993_v33  ;;  %v1698_v31 = vld [vmem:[%s8429_s3 + $0xc88] sm:$0xff] }
 0x344   : > { %3756 = vperm.xlu1 %5576, %v1686_v29   ;;  %3751 = vperm.xlu0 %5575, %v1685_v30   ;;  %v4693_v43 = vsel %vm1109_vm6, %v3432_v35, 0.0  ;;  %v4694_v48 = vsel %vm1110_vm7, %v3437_v34, 0.0  ;;  %v606_v30 = vadd.s32 2696, %v5993_v33 }
 0x345   : > { %v5203_v39 = vadd.f32 %v5202_v32, %v4692_v37  ;;  %v1697_v32 = vld [vmem:[%s8429_s3 + $0xc80] sm:$0xff]  ;;  %vm1121_vm2 = vcmp.eq.s32.totalorder %v605_v27, %v6002_v38 }
 0x346   : > { %vm1122_vm3 = vcmp.eq.s32.totalorder %v606_v30, %v6002_v38 }
 0x347   : > { %v5204_v44 = vadd.f32 %v5203_v39, %v4693_v43  ;;  %v3447_v45 = vpop.permute.xlu1 %3446  ;;  %v3442_v46 = vpop.permute.xlu0 %3441  ;;  %v607_v39 = vadd.s32 2704, %v5993_v33  ;;  %v1700_v43 = vld [vmem:[%s8429_s3 + $0xc98] sm:$0xff] }
 0x348   : > { %3766 = vperm.xlu1 %5576, %v1688_v41   ;;  %3761 = vperm.xlu0 %5575, %v1687_v42   ;;  %v4695_v53 = vsel %vm1111_vm8, %v3442_v46, 0.0  ;;  %v4696_v58 = vsel %vm1112_vm9, %v3447_v45, 0.0  ;;  %v608_v42 = vadd.s32 2712, %v5993_v33 }
 0x349   : > { %v5205_v49 = vadd.f32 %v5204_v44, %v4694_v48  ;;  %v1699_v44 = vld [vmem:[%s8429_s3 + $0xc90] sm:$0xff]  ;;  %vm1123_vm4 = vcmp.eq.s32.totalorder %v607_v39, %v6002_v38 }
 0x34a   : > { %vm1124_vm5 = vcmp.eq.s32.totalorder %v608_v42, %v6002_v38 }
 0x34b   : > { %v5206_v54 = vadd.f32 %v5205_v49, %v4695_v53  ;;  %v3457_v55 = vpop.permute.xlu1 %3456  ;;  %v3452_v56 = vpop.permute.xlu0 %3451  ;;  %v609_v49 = vadd.s32 2720, %v5993_v33  ;;  %v1702_v53 = vld [vmem:[%s8429_s3 + $0xca8] sm:$0xff] }
 0x34c   : > { %3776 = vperm.xlu1 %5576, %v1690_v51   ;;  %3771 = vperm.xlu0 %5575, %v1689_v52   ;;  %v4697_v63 = vsel %vm1113_vm10, %v3452_v56, 0.0  ;;  %v4698_v5 = vsel %vm1114_vm11, %v3457_v55, 0.0  ;;  %v610_v52 = vadd.s32 2728, %v5993_v33 }
 0x34d   : > { %v5207_v59 = vadd.f32 %v5206_v54, %v4696_v58  ;;  %v1701_v54 = vld [vmem:[%s8429_s3 + $0xca0] sm:$0xff]  ;;  %vm1125_vm6 = vcmp.eq.s32.totalorder %v609_v49, %v6002_v38 }
 0x34e   : > { %vm1126_vm7 = vcmp.eq.s32.totalorder %v610_v52, %v6002_v38 }
 0x34f   : > { %v5208_v0 = vadd.f32 %v5207_v59, %v4697_v63  ;;  %v3467_v1 = vpop.permute.xlu1 %3466  ;;  %v3462_v3 = vpop.permute.xlu0 %3461  ;;  %v611_v59 = vadd.s32 2736, %v5993_v33  ;;  %v1704_v63 = vld [vmem:[%s8429_s3 + $0xcb8] sm:$0xff] }
 0x350   : > { %3786 = vperm.xlu1 %5576, %v1692_v61   ;;  %3781 = vperm.xlu0 %5575, %v1691_v62   ;;  %v4699_v10 = vsel %vm1115_vm12, %v3462_v3, 0.0  ;;  %v4700_v17 = vsel %vm1116_vm13, %v3467_v1, 0.0  ;;  %v612_v62 = vadd.s32 2744, %v5993_v33 }
 0x351   : > { %v5209_v6 = vadd.f32 %v5208_v0, %v4698_v5  ;;  %v1703_v0 = vld [vmem:[%s8429_s3 + $0xcb0] sm:$0xff]  ;;  %vm1127_vm8 = vcmp.eq.s32.totalorder %v611_v59, %v6002_v38 }
 0x352   : > { %vm1128_vm9 = vcmp.eq.s32.totalorder %v612_v62, %v6002_v38 }
 0x353   : > { %v5210_v11 = vadd.f32 %v5209_v6, %v4699_v10  ;;  %v3477_v14 = vpop.permute.xlu1 %3476  ;;  %v3472_v15 = vpop.permute.xlu0 %3471  ;;  %v613_v6 = vadd.s32 2752, %v5993_v33  ;;  %v1706_v10 = vld [vmem:[%s8429_s3 + $0xcc8] sm:$0xff] }
 0x354   : > { %3796 = vperm.xlu1 %5576, %v1694_v8   ;;  %3791 = vperm.xlu0 %5575, %v1693_v9   ;;  %v4701_v23 = vsel %vm1117_vm14, %v3472_v15, 0.0  ;;  %v4702_v28 = vsel %vm1118_vm15, %v3477_v14, 0.0  ;;  %v614_v9 = vadd.s32 2760, %v5993_v33 }
 0x355   : > { %v5211_v18 = vadd.f32 %v5210_v11, %v4700_v17  ;;  %v1705_v11 = vld [vmem:[%s8429_s3 + $0xcc0] sm:$0xff]  ;;  %vm1129_vm10 = vcmp.eq.s32.totalorder %v613_v6, %v6002_v38 }
 0x356   : > { %vm1130_vm11 = vcmp.eq.s32.totalorder %v614_v9, %v6002_v38 }
 0x357   : > { %v5212_v24 = vadd.f32 %v5211_v18, %v4701_v23  ;;  %v3487_v25 = vpop.permute.xlu1 %3486  ;;  %v3482_v26 = vpop.permute.xlu0 %3481  ;;  %v615_v18 = vadd.s32 2768, %v5993_v33  ;;  %v1708_v23 = vld [vmem:[%s8429_s3 + $0xcd8] sm:$0xff] }
 0x358   : > { %3806 = vperm.xlu1 %5576, %v1696_v20   ;;  %3801 = vperm.xlu0 %5575, %v1695_v21   ;;  %v4703_v34 = vsel %vm1119_vm0, %v3482_v26, 0.0  ;;  %v4704_v40 = vsel %vm1120_vm1, %v3487_v25, 0.0  ;;  %v616_v21 = vadd.s32 2776, %v5993_v33 }
 0x359   : > { %v5213_v29 = vadd.f32 %v5212_v24, %v4702_v28  ;;  %v1707_v24 = vld [vmem:[%s8429_s3 + $0xcd0] sm:$0xff]  ;;  %vm1131_vm12 = vcmp.eq.s32.totalorder %v615_v18, %v6002_v38 }
 0x35a   : > { %vm1132_vm13 = vcmp.eq.s32.totalorder %v616_v21, %v6002_v38 }
 0x35b   : > { %v5214_v35 = vadd.f32 %v5213_v29, %v4703_v34  ;;  %v3497_v36 = vpop.permute.xlu1 %3496  ;;  %v3492_v37 = vpop.permute.xlu0 %3491  ;;  %v617_v29 = vadd.s32 2784, %v5993_v33  ;;  %v1710_v34 = vld [vmem:[%s8429_s3 + $0xce8] sm:$0xff] }
 0x35c   : > { %3816 = vperm.xlu1 %5576, %v1698_v31   ;;  %3811 = vperm.xlu0 %5575, %v1697_v32   ;;  %v4705_v45 = vsel %vm1121_vm2, %v3492_v37, 0.0  ;;  %v4706_v50 = vsel %vm1122_vm3, %v3497_v36, 0.0  ;;  %v618_v32 = vadd.s32 2792, %v5993_v33 }
 0x35d   : > { %v5215_v41 = vadd.f32 %v5214_v35, %v4704_v40  ;;  %v1709_v35 = vld [vmem:[%s8429_s3 + $0xce0] sm:$0xff]  ;;  %vm1133_vm14 = vcmp.eq.s32.totalorder %v617_v29, %v6002_v38 }
 0x35e   : > { %vm1134_vm15 = vcmp.eq.s32.totalorder %v618_v32, %v6002_v38 }
 0x35f   : > { %v5216_v46 = vadd.f32 %v5215_v41, %v4705_v45  ;;  %v3507_v47 = vpop.permute.xlu1 %3506  ;;  %v3502_v48 = vpop.permute.xlu0 %3501  ;;  %v619_v41 = vadd.s32 2800, %v5993_v33  ;;  %v1712_v45 = vld [vmem:[%s8429_s3 + $0xcf8] sm:$0xff] }
 0x360   : > { %3826 = vperm.xlu1 %5576, %v1700_v43   ;;  %3821 = vperm.xlu0 %5575, %v1699_v44   ;;  %v4707_v55 = vsel %vm1123_vm4, %v3502_v48, 0.0  ;;  %v4708_v60 = vsel %vm1124_vm5, %v3507_v47, 0.0  ;;  %v620_v44 = vadd.s32 2808, %v5993_v33 }
 0x361   : > { %v5217_v51 = vadd.f32 %v5216_v46, %v4706_v50  ;;  %v1711_v46 = vld [vmem:[%s8429_s3 + $0xcf0] sm:$0xff]  ;;  %vm1135_vm0 = vcmp.eq.s32.totalorder %v619_v41, %v6002_v38 }
 0x362   : > { %vm1136_vm1 = vcmp.eq.s32.totalorder %v620_v44, %v6002_v38 }
 0x363   : > { %v5218_v56 = vadd.f32 %v5217_v51, %v4707_v55  ;;  %v3517_v57 = vpop.permute.xlu1 %3516  ;;  %v3512_v58 = vpop.permute.xlu0 %3511  ;;  %v621_v51 = vadd.s32 2816, %v5993_v33  ;;  %v1714_v55 = vld [vmem:[%s8429_s3 + $0xd08] sm:$0xff] }
 0x364   : > { %3836 = vperm.xlu1 %5576, %v1702_v53   ;;  %3831 = vperm.xlu0 %5575, %v1701_v54   ;;  %v4709_v1 = vsel %vm1125_vm6, %v3512_v58, 0.0  ;;  %v4710_v7 = vsel %vm1126_vm7, %v3517_v57, 0.0  ;;  %v622_v54 = vadd.s32 2824, %v5993_v33 }
 0x365   : > { %v5219_v61 = vadd.f32 %v5218_v56, %v4708_v60  ;;  %v1713_v56 = vld [vmem:[%s8429_s3 + $0xd00] sm:$0xff]  ;;  %vm1137_vm2 = vcmp.eq.s32.totalorder %v621_v51, %v6002_v38 }
 0x366   : > { %vm1138_vm3 = vcmp.eq.s32.totalorder %v622_v54, %v6002_v38 }
 0x367   : > { %v5220_v3 = vadd.f32 %v5219_v61, %v4709_v1  ;;  %v3527_v4 = vpop.permute.xlu1 %3526  ;;  %v3522_v5 = vpop.permute.xlu0 %3521  ;;  %v623_v61 = vadd.s32 2832, %v5993_v33  ;;  %v1716_v1 = vld [vmem:[%s8429_s3 + $0xd18] sm:$0xff] }
 0x368   : > { %3846 = vperm.xlu1 %5576, %v1704_v63   ;;  %3841 = vperm.xlu0 %5575, %v1703_v0   ;;  %v4711_v14 = vsel %vm1127_vm8, %v3522_v5, 0.0  ;;  %v4712_v19 = vsel %vm1128_vm9, %v3527_v4, 0.0  ;;  %v624_v0 = vadd.s32 2840, %v5993_v33 }
 0x369   : > { %v5221_v8 = vadd.f32 %v5220_v3, %v4710_v7  ;;  %v1715_v3 = vld [vmem:[%s8429_s3 + $0xd10] sm:$0xff]  ;;  %vm1139_vm4 = vcmp.eq.s32.totalorder %v623_v61, %v6002_v38 }
 0x36a   : > { %vm1140_vm5 = vcmp.eq.s32.totalorder %v624_v0, %v6002_v38 }
 0x36b   : > { %v5222_v15 = vadd.f32 %v5221_v8, %v4711_v14  ;;  %v3537_v16 = vpop.permute.xlu1 %3536  ;;  %v3532_v17 = vpop.permute.xlu0 %3531  ;;  %v625_v8 = vadd.s32 2848, %v5993_v33  ;;  %v1718_v14 = vld [vmem:[%s8429_s3 + $0xd28] sm:$0xff] }
 0x36c   : > { %3856 = vperm.xlu1 %5576, %v1706_v10   ;;  %3851 = vperm.xlu0 %5575, %v1705_v11   ;;  %v4713_v25 = vsel %vm1129_vm10, %v3532_v17, 0.0  ;;  %v4714_v30 = vsel %vm1130_vm11, %v3537_v16, 0.0  ;;  %v626_v11 = vadd.s32 2856, %v5993_v33 }
 0x36d   : > { %v5223_v20 = vadd.f32 %v5222_v15, %v4712_v19  ;;  %v1717_v15 = vld [vmem:[%s8429_s3 + $0xd20] sm:$0xff]  ;;  %vm1141_vm6 = vcmp.eq.s32.totalorder %v625_v8, %v6002_v38 }
 0x36e   : > { %vm1142_vm7 = vcmp.eq.s32.totalorder %v626_v11, %v6002_v38 }
 0x36f   : > { %v5224_v26 = vadd.f32 %v5223_v20, %v4713_v25  ;;  %v3547_v27 = vpop.permute.xlu1 %3546  ;;  %v3542_v28 = vpop.permute.xlu0 %3541  ;;  %v627_v20 = vadd.s32 2864, %v5993_v33  ;;  %v1720_v25 = vld [vmem:[%s8429_s3 + $0xd38] sm:$0xff] }
 0x370   : > { %3866 = vperm.xlu1 %5576, %v1708_v23   ;;  %3861 = vperm.xlu0 %5575, %v1707_v24   ;;  %v4715_v36 = vsel %vm1131_vm12, %v3542_v28, 0.0  ;;  %v4716_v42 = vsel %vm1132_vm13, %v3547_v27, 0.0  ;;  %v628_v24 = vadd.s32 2872, %v5993_v33 }
 0x371   : > { %v5225_v31 = vadd.f32 %v5224_v26, %v4714_v30  ;;  %v1719_v26 = vld [vmem:[%s8429_s3 + $0xd30] sm:$0xff]  ;;  %vm1143_vm8 = vcmp.eq.s32.totalorder %v627_v20, %v6002_v38 }
 0x372   : > { %vm1144_vm9 = vcmp.eq.s32.totalorder %v628_v24, %v6002_v38 }
 0x373   : > { %v5226_v37 = vadd.f32 %v5225_v31, %v4715_v36  ;;  %v3557_v39 = vpop.permute.xlu1 %3556  ;;  %v3552_v40 = vpop.permute.xlu0 %3551  ;;  %v629_v31 = vadd.s32 2880, %v5993_v33  ;;  %v1722_v36 = vld [vmem:[%s8429_s3 + $0xd48] sm:$0xff] }
 0x374   : > { %3876 = vperm.xlu1 %5576, %v1710_v34   ;;  %3871 = vperm.xlu0 %5575, %v1709_v35   ;;  %v4717_v47 = vsel %vm1133_vm14, %v3552_v40, 0.0  ;;  %v4718_v52 = vsel %vm1134_vm15, %v3557_v39, 0.0  ;;  %v630_v35 = vadd.s32 2888, %v5993_v33 }
 0x375   : > { %v5227_v43 = vadd.f32 %v5226_v37, %v4716_v42  ;;  %v1721_v37 = vld [vmem:[%s8429_s3 + $0xd40] sm:$0xff]  ;;  %vm1145_vm10 = vcmp.eq.s32.totalorder %v629_v31, %v6002_v38 }
 0x376   : > { %vm1146_vm11 = vcmp.eq.s32.totalorder %v630_v35, %v6002_v38 }
 0x377   : > { %v5228_v48 = vadd.f32 %v5227_v43, %v4717_v47  ;;  %v3567_v49 = vpop.permute.xlu1 %3566  ;;  %v3562_v50 = vpop.permute.xlu0 %3561  ;;  %v631_v43 = vadd.s32 2896, %v5993_v33  ;;  %v1724_v47 = vld [vmem:[%s8429_s3 + $0xd58] sm:$0xff] }
 0x378   : > { %3886 = vperm.xlu1 %5576, %v1712_v45   ;;  %3881 = vperm.xlu0 %5575, %v1711_v46   ;;  %v4719_v57 = vsel %vm1135_vm0, %v3562_v50, 0.0  ;;  %v4720_v62 = vsel %vm1136_vm1, %v3567_v49, 0.0  ;;  %v632_v46 = vadd.s32 2904, %v5993_v33 }
 0x379   : > { %v5229_v53 = vadd.f32 %v5228_v48, %v4718_v52  ;;  %v1723_v48 = vld [vmem:[%s8429_s3 + $0xd50] sm:$0xff]  ;;  %vm1147_vm12 = vcmp.eq.s32.totalorder %v631_v43, %v6002_v38 }
 0x37a   : > { %vm1148_vm13 = vcmp.eq.s32.totalorder %v632_v46, %v6002_v38 }
 0x37b   : > { %v5230_v58 = vadd.f32 %v5229_v53, %v4719_v57  ;;  %v3577_v59 = vpop.permute.xlu1 %3576  ;;  %v3572_v60 = vpop.permute.xlu0 %3571  ;;  %v633_v53 = vadd.s32 2912, %v5993_v33  ;;  %v1726_v57 = vld [vmem:[%s8429_s3 + $0xd68] sm:$0xff] }
 0x37c   : > { %3896 = vperm.xlu1 %5576, %v1714_v55   ;;  %3891 = vperm.xlu0 %5575, %v1713_v56   ;;  %v4721_v4 = vsel %vm1137_vm2, %v3572_v60, 0.0  ;;  %v4722_v9 = vsel %vm1138_vm3, %v3577_v59, 0.0  ;;  %v634_v56 = vadd.s32 2920, %v5993_v33 }
 0x37d   : > { %v5231_v63 = vadd.f32 %v5230_v58, %v4720_v62  ;;  %v1725_v58 = vld [vmem:[%s8429_s3 + $0xd60] sm:$0xff]  ;;  %vm1149_vm14 = vcmp.eq.s32.totalorder %v633_v53, %v6002_v38 }
 0x37e   : > { %vm1150_vm15 = vcmp.eq.s32.totalorder %v634_v56, %v6002_v38 }
 0x37f   : > { %v5232_v5 = vadd.f32 %v5231_v63, %v4721_v4  ;;  %v3587_v6 = vpop.permute.xlu1 %3586  ;;  %v3582_v7 = vpop.permute.xlu0 %3581  ;;  %v635_v63 = vadd.s32 2928, %v5993_v33  ;;  %v1728_v4 = vld [vmem:[%s8429_s3 + $0xd78] sm:$0xff] }
 0x380   : > { %3906 = vperm.xlu1 %5576, %v1716_v1   ;;  %3901 = vperm.xlu0 %5575, %v1715_v3   ;;  %v4723_v16 = vsel %vm1139_vm4, %v3582_v7, 0.0  ;;  %v4724_v21 = vsel %vm1140_vm5, %v3587_v6, 0.0  ;;  %v636_v3 = vadd.s32 2936, %v5993_v33 }
 0x381   : > { %v5233_v10 = vadd.f32 %v5232_v5, %v4722_v9  ;;  %v1727_v5 = vld [vmem:[%s8429_s3 + $0xd70] sm:$0xff]  ;;  %vm1151_vm0 = vcmp.eq.s32.totalorder %v635_v63, %v6002_v38 }
 0x382   : > { %vm1152_vm1 = vcmp.eq.s32.totalorder %v636_v3, %v6002_v38 }
 0x383   : > { %v5234_v17 = vadd.f32 %v5233_v10, %v4723_v16  ;;  %v3597_v18 = vpop.permute.xlu1 %3596  ;;  %v3592_v19 = vpop.permute.xlu0 %3591  ;;  %v637_v10 = vadd.s32 2944, %v5993_v33  ;;  %v1730_v16 = vld [vmem:[%s8429_s3 + $0xd88] sm:$0xff] }
 0x384   : > { %3916 = vperm.xlu1 %5576, %v1718_v14   ;;  %3911 = vperm.xlu0 %5575, %v1717_v15   ;;  %v4725_v27 = vsel %vm1141_vm6, %v3592_v19, 0.0  ;;  %v4726_v32 = vsel %vm1142_vm7, %v3597_v18, 0.0  ;;  %v638_v15 = vadd.s32 2952, %v5993_v33 }
 0x385   : > { %v5235_v23 = vadd.f32 %v5234_v17, %v4724_v21  ;;  %v1729_v17 = vld [vmem:[%s8429_s3 + $0xd80] sm:$0xff]  ;;  %vm1153_vm2 = vcmp.eq.s32.totalorder %v637_v10, %v6002_v38 }
 0x386   : > { %vm1154_vm3 = vcmp.eq.s32.totalorder %v638_v15, %v6002_v38 }
 0x387   : > { %v5236_v28 = vadd.f32 %v5235_v23, %v4725_v27  ;;  %v3607_v29 = vpop.permute.xlu1 %3606  ;;  %v3602_v30 = vpop.permute.xlu0 %3601  ;;  %v639_v23 = vadd.s32 2960, %v5993_v33  ;;  %v1732_v27 = vld [vmem:[%s8429_s3 + $0xd98] sm:$0xff] }
 0x388   : > { %3926 = vperm.xlu1 %5576, %v1720_v25   ;;  %3921 = vperm.xlu0 %5575, %v1719_v26   ;;  %v4727_v39 = vsel %vm1143_vm8, %v3602_v30, 0.0  ;;  %v4728_v44 = vsel %vm1144_vm9, %v3607_v29, 0.0  ;;  %v640_v26 = vadd.s32 2968, %v5993_v33 }
 0x389   : > { %v5237_v34 = vadd.f32 %v5236_v28, %v4726_v32  ;;  %v1731_v28 = vld [vmem:[%s8429_s3 + $0xd90] sm:$0xff]  ;;  %vm1155_vm4 = vcmp.eq.s32.totalorder %v639_v23, %v6002_v38 }
 0x38a   : > { %vm1156_vm5 = vcmp.eq.s32.totalorder %v640_v26, %v6002_v38 }
 0x38b   : > { %v5238_v40 = vadd.f32 %v5237_v34, %v4727_v39  ;;  %v3617_v41 = vpop.permute.xlu1 %3616  ;;  %v3612_v42 = vpop.permute.xlu0 %3611  ;;  %v641_v34 = vadd.s32 2976, %v5993_v33  ;;  %v1734_v39 = vld [vmem:[%s8429_s3 + $0xda8] sm:$0xff] }
 0x38c   : > { %3936 = vperm.xlu1 %5576, %v1722_v36   ;;  %3931 = vperm.xlu0 %5575, %v1721_v37   ;;  %v4729_v49 = vsel %vm1145_vm10, %v3612_v42, 0.0  ;;  %v4730_v54 = vsel %vm1146_vm11, %v3617_v41, 0.0  ;;  %v642_v37 = vadd.s32 2984, %v5993_v33 }
 0x38d   : > { %v5239_v45 = vadd.f32 %v5238_v40, %v4728_v44  ;;  %v1733_v40 = vld [vmem:[%s8429_s3 + $0xda0] sm:$0xff]  ;;  %vm1157_vm6 = vcmp.eq.s32.totalorder %v641_v34, %v6002_v38 }
 0x38e   : > { %vm1158_vm7 = vcmp.eq.s32.totalorder %v642_v37, %v6002_v38 }
 0x38f   : > { %v5240_v50 = vadd.f32 %v5239_v45, %v4729_v49  ;;  %v3627_v51 = vpop.permute.xlu1 %3626  ;;  %v3622_v52 = vpop.permute.xlu0 %3621  ;;  %v643_v45 = vadd.s32 2992, %v5993_v33  ;;  %v1736_v49 = vld [vmem:[%s8429_s3 + $0xdb8] sm:$0xff] }
 0x390   : > { %3946 = vperm.xlu1 %5576, %v1724_v47   ;;  %3941 = vperm.xlu0 %5575, %v1723_v48   ;;  %v4731_v59 = vsel %vm1147_vm12, %v3622_v52, 0.0  ;;  %v4732_v0 = vsel %vm1148_vm13, %v3627_v51, 0.0  ;;  %v644_v48 = vadd.s32 3000, %v5993_v33 }
 0x391   : > { %v5241_v55 = vadd.f32 %v5240_v50, %v4730_v54  ;;  %v1735_v50 = vld [vmem:[%s8429_s3 + $0xdb0] sm:$0xff]  ;;  %vm1159_vm8 = vcmp.eq.s32.totalorder %v643_v45, %v6002_v38 }
 0x392   : > { %vm1160_vm9 = vcmp.eq.s32.totalorder %v644_v48, %v6002_v38 }
 0x393   : > { %v5242_v60 = vadd.f32 %v5241_v55, %v4731_v59  ;;  %v3637_v61 = vpop.permute.xlu1 %3636  ;;  %v3632_v62 = vpop.permute.xlu0 %3631  ;;  %v645_v55 = vadd.s32 3008, %v5993_v33  ;;  %v1738_v59 = vld [vmem:[%s8429_s3 + $0xdc8] sm:$0xff] }
 0x394   : > { %3956 = vperm.xlu1 %5576, %v1726_v57   ;;  %3951 = vperm.xlu0 %5575, %v1725_v58   ;;  %v4733_v6 = vsel %vm1149_vm14, %v3632_v62, 0.0  ;;  %v4734_v11 = vsel %vm1150_vm15, %v3637_v61, 0.0  ;;  %v646_v58 = vadd.s32 3016, %v5993_v33 }
 0x395   : > { %v5243_v1 = vadd.f32 %v5242_v60, %v4732_v0  ;;  %v1737_v60 = vld [vmem:[%s8429_s3 + $0xdc0] sm:$0xff]  ;;  %vm1161_vm10 = vcmp.eq.s32.totalorder %v645_v55, %v6002_v38 }
 0x396   : > { %vm1162_vm11 = vcmp.eq.s32.totalorder %v646_v58, %v6002_v38 }
 0x397   : > { %v5244_v7 = vadd.f32 %v5243_v1, %v4733_v6  ;;  %v3647_v8 = vpop.permute.xlu1 %3646  ;;  %v3642_v9 = vpop.permute.xlu0 %3641  ;;  %v647_v1 = vadd.s32 3024, %v5993_v33  ;;  %v1740_v6 = vld [vmem:[%s8429_s3 + $0xdd8] sm:$0xff] }
 0x398   : > { %3966 = vperm.xlu1 %5576, %v1728_v4   ;;  %3961 = vperm.xlu0 %5575, %v1727_v5   ;;  %v4735_v18 = vsel %vm1151_vm0, %v3642_v9, 0.0  ;;  %v4736_v24 = vsel %vm1152_vm1, %v3647_v8, 0.0  ;;  %v648_v5 = vadd.s32 3032, %v5993_v33 }
 0x399   : > { %v5245_v14 = vadd.f32 %v5244_v7, %v4734_v11  ;;  %v1739_v7 = vld [vmem:[%s8429_s3 + $0xdd0] sm:$0xff]  ;;  %vm1163_vm12 = vcmp.eq.s32.totalorder %v647_v1, %v6002_v38 }
 0x39a   : > { %vm1164_vm13 = vcmp.eq.s32.totalorder %v648_v5, %v6002_v38 }
 0x39b   : > { %v5246_v19 = vadd.f32 %v5245_v14, %v4735_v18  ;;  %v3657_v20 = vpop.permute.xlu1 %3656  ;;  %v3652_v21 = vpop.permute.xlu0 %3651  ;;  %v649_v14 = vadd.s32 3040, %v5993_v33  ;;  %v1742_v18 = vld [vmem:[%s8429_s3 + $0xde8] sm:$0xff] }
 0x39c   : > { %3976 = vperm.xlu1 %5576, %v1730_v16   ;;  %3971 = vperm.xlu0 %5575, %v1729_v17   ;;  %v4737_v29 = vsel %vm1153_vm2, %v3652_v21, 0.0  ;;  %v4738_v35 = vsel %vm1154_vm3, %v3657_v20, 0.0  ;;  %v650_v17 = vadd.s32 3048, %v5993_v33 }
 0x39d   : > { %v5247_v25 = vadd.f32 %v5246_v19, %v4736_v24  ;;  %v1741_v19 = vld [vmem:[%s8429_s3 + $0xde0] sm:$0xff]  ;;  %vm1165_vm14 = vcmp.eq.s32.totalorder %v649_v14, %v6002_v38 }
 0x39e   : > { %vm1166_vm15 = vcmp.eq.s32.totalorder %v650_v17, %v6002_v38 }
 0x39f   : > { %v5248_v30 = vadd.f32 %v5247_v25, %v4737_v29  ;;  %v3667_v31 = vpop.permute.xlu1 %3666  ;;  %v3662_v32 = vpop.permute.xlu0 %3661  ;;  %v651_v25 = vadd.s32 3056, %v5993_v33  ;;  %v1744_v29 = vld [vmem:[%s8429_s3 + $0xdf8] sm:$0xff] }
 0x3a0   : > { %3986 = vperm.xlu1 %5576, %v1732_v27   ;;  %3981 = vperm.xlu0 %5575, %v1731_v28   ;;  %v4739_v41 = vsel %vm1155_vm4, %v3662_v32, 0.0  ;;  %v4740_v46 = vsel %vm1156_vm5, %v3667_v31, 0.0  ;;  %v652_v28 = vadd.s32 3064, %v5993_v33 }
 0x3a1   : > { %v5249_v36 = vadd.f32 %v5248_v30, %v4738_v35  ;;  %v1743_v30 = vld [vmem:[%s8429_s3 + $0xdf0] sm:$0xff]  ;;  %vm1167_vm0 = vcmp.eq.s32.totalorder %v651_v25, %v6002_v38 }
 0x3a2   : > { %vm1168_vm1 = vcmp.eq.s32.totalorder %v652_v28, %v6002_v38 }
 0x3a3   : > { %v5250_v42 = vadd.f32 %v5249_v36, %v4739_v41  ;;  %v3677_v43 = vpop.permute.xlu1 %3676  ;;  %v3672_v44 = vpop.permute.xlu0 %3671  ;;  %v653_v36 = vadd.s32 3072, %v5993_v33  ;;  %v1746_v41 = vld [vmem:[%s8429_s3 + $0xe08] sm:$0xff] }
 0x3a4   : > { %3996 = vperm.xlu1 %5576, %v1734_v39   ;;  %3991 = vperm.xlu0 %5575, %v1733_v40   ;;  %v4741_v51 = vsel %vm1157_vm6, %v3672_v44, 0.0  ;;  %v4742_v56 = vsel %vm1158_vm7, %v3677_v43, 0.0  ;;  %v654_v40 = vadd.s32 3080, %v5993_v33 }
 0x3a5   : > { %v5251_v47 = vadd.f32 %v5250_v42, %v4740_v46  ;;  %v1745_v42 = vld [vmem:[%s8429_s3 + $0xe00] sm:$0xff]  ;;  %vm1169_vm2 = vcmp.eq.s32.totalorder %v653_v36, %v6002_v38 }
 0x3a6   : > { %vm1170_vm3 = vcmp.eq.s32.totalorder %v654_v40, %v6002_v38 }
 0x3a7   : > { %v5252_v52 = vadd.f32 %v5251_v47, %v4741_v51  ;;  %v3687_v53 = vpop.permute.xlu1 %3686  ;;  %v3682_v54 = vpop.permute.xlu0 %3681  ;;  %v655_v47 = vadd.s32 3088, %v5993_v33  ;;  %v1748_v51 = vld [vmem:[%s8429_s3 + $0xe18] sm:$0xff] }
 0x3a8   : > { %4006 = vperm.xlu1 %5576, %v1736_v49   ;;  %4001 = vperm.xlu0 %5575, %v1735_v50   ;;  %v4743_v61 = vsel %vm1159_vm8, %v3682_v54, 0.0  ;;  %v4744_v3 = vsel %vm1160_vm9, %v3687_v53, 0.0  ;;  %v656_v50 = vadd.s32 3096, %v5993_v33 }
 0x3a9   : > { %v5253_v57 = vadd.f32 %v5252_v52, %v4742_v56  ;;  %v1747_v52 = vld [vmem:[%s8429_s3 + $0xe10] sm:$0xff]  ;;  %vm1171_vm4 = vcmp.eq.s32.totalorder %v655_v47, %v6002_v38 }
 0x3aa   : > { %vm1172_vm5 = vcmp.eq.s32.totalorder %v656_v50, %v6002_v38 }
 0x3ab   : > { %v5254_v62 = vadd.f32 %v5253_v57, %v4743_v61  ;;  %v3697_v63 = vpop.permute.xlu1 %3696  ;;  %v3692_v0 = vpop.permute.xlu0 %3691  ;;  %v657_v57 = vadd.s32 3104, %v5993_v33  ;;  %v1750_v61 = vld [vmem:[%s8429_s3 + $0xe28] sm:$0xff] }
 0x3ac   : > { %4016 = vperm.xlu1 %5576, %v1738_v59   ;;  %4011 = vperm.xlu0 %5575, %v1737_v60   ;;  %v4745_v8 = vsel %vm1161_vm10, %v3692_v0, 0.0  ;;  %v4746_v15 = vsel %vm1162_vm11, %v3697_v63, 0.0  ;;  %v658_v60 = vadd.s32 3112, %v5993_v33 }
 0x3ad   : > { %v5255_v4 = vadd.f32 %v5254_v62, %v4744_v3  ;;  %v1749_v62 = vld [vmem:[%s8429_s3 + $0xe20] sm:$0xff]  ;;  %vm1173_vm6 = vcmp.eq.s32.totalorder %v657_v57, %v6002_v38 }
 0x3ae   : > { %vm1174_vm7 = vcmp.eq.s32.totalorder %v658_v60, %v6002_v38 }
 0x3af   : > { %v5256_v9 = vadd.f32 %v5255_v4, %v4745_v8  ;;  %v3707_v10 = vpop.permute.xlu1 %3706  ;;  %v3702_v11 = vpop.permute.xlu0 %3701  ;;  %v659_v4 = vadd.s32 3120, %v5993_v33  ;;  %v1752_v8 = vld [vmem:[%s8429_s3 + $0xe38] sm:$0xff] }
 0x3b0   : > { %4026 = vperm.xlu1 %5576, %v1740_v6   ;;  %4021 = vperm.xlu0 %5575, %v1739_v7   ;;  %v4747_v20 = vsel %vm1163_vm12, %v3702_v11, 0.0  ;;  %v4748_v26 = vsel %vm1164_vm13, %v3707_v10, 0.0  ;;  %v660_v7 = vadd.s32 3128, %v5993_v33 }
 0x3b1   : > { %v5257_v16 = vadd.f32 %v5256_v9, %v4746_v15  ;;  %v1751_v9 = vld [vmem:[%s8429_s3 + $0xe30] sm:$0xff]  ;;  %vm1175_vm8 = vcmp.eq.s32.totalorder %v659_v4, %v6002_v38 }
 0x3b2   : > { %vm1176_vm9 = vcmp.eq.s32.totalorder %v660_v7, %v6002_v38 }
 0x3b3   : > { %v5258_v21 = vadd.f32 %v5257_v16, %v4747_v20  ;;  %v3717_v23 = vpop.permute.xlu1 %3716  ;;  %v3712_v24 = vpop.permute.xlu0 %3711  ;;  %v661_v16 = vadd.s32 3136, %v5993_v33  ;;  %v1754_v20 = vld [vmem:[%s8429_s3 + $0xe48] sm:$0xff] }
 0x3b4   : > { %4036 = vperm.xlu1 %5576, %v1742_v18   ;;  %4031 = vperm.xlu0 %5575, %v1741_v19   ;;  %v4749_v31 = vsel %vm1165_vm14, %v3712_v24, 0.0  ;;  %v4750_v37 = vsel %vm1166_vm15, %v3717_v23, 0.0  ;;  %v662_v19 = vadd.s32 3144, %v5993_v33 }
 0x3b5   : > { %v5259_v27 = vadd.f32 %v5258_v21, %v4748_v26  ;;  %v1753_v21 = vld [vmem:[%s8429_s3 + $0xe40] sm:$0xff]  ;;  %vm1177_vm10 = vcmp.eq.s32.totalorder %v661_v16, %v6002_v38 }
 0x3b6   : > { %vm1178_vm11 = vcmp.eq.s32.totalorder %v662_v19, %v6002_v38 }
 0x3b7   : > { %v5260_v32 = vadd.f32 %v5259_v27, %v4749_v31  ;;  %v3727_v34 = vpop.permute.xlu1 %3726  ;;  %v3722_v35 = vpop.permute.xlu0 %3721  ;;  %v663_v27 = vadd.s32 3152, %v5993_v33  ;;  %v1756_v31 = vld [vmem:[%s8429_s3 + $0xe58] sm:$0xff] }
 0x3b8   : > { %4046 = vperm.xlu1 %5576, %v1744_v29   ;;  %4041 = vperm.xlu0 %5575, %v1743_v30   ;;  %v4751_v43 = vsel %vm1167_vm0, %v3722_v35, 0.0  ;;  %v4752_v48 = vsel %vm1168_vm1, %v3727_v34, 0.0  ;;  %v664_v30 = vadd.s32 3160, %v5993_v33 }
 0x3b9   : > { %v5261_v39 = vadd.f32 %v5260_v32, %v4750_v37  ;;  %v1755_v32 = vld [vmem:[%s8429_s3 + $0xe50] sm:$0xff]  ;;  %vm1179_vm12 = vcmp.eq.s32.totalorder %v663_v27, %v6002_v38 }
 0x3ba   : > { %vm1180_vm13 = vcmp.eq.s32.totalorder %v664_v30, %v6002_v38 }
 0x3bb   : > { %v5262_v44 = vadd.f32 %v5261_v39, %v4751_v43  ;;  %v3737_v45 = vpop.permute.xlu1 %3736  ;;  %v3732_v46 = vpop.permute.xlu0 %3731  ;;  %v665_v39 = vadd.s32 3168, %v5993_v33  ;;  %v1758_v43 = vld [vmem:[%s8429_s3 + $0xe68] sm:$0xff] }
 0x3bc   : > { %4056 = vperm.xlu1 %5576, %v1746_v41   ;;  %4051 = vperm.xlu0 %5575, %v1745_v42   ;;  %v4753_v53 = vsel %vm1169_vm2, %v3732_v46, 0.0  ;;  %v4754_v58 = vsel %vm1170_vm3, %v3737_v45, 0.0  ;;  %v666_v42 = vadd.s32 3176, %v5993_v33 }
 0x3bd   : > { %v5263_v49 = vadd.f32 %v5262_v44, %v4752_v48  ;;  %v1757_v44 = vld [vmem:[%s8429_s3 + $0xe60] sm:$0xff]  ;;  %vm1181_vm14 = vcmp.eq.s32.totalorder %v665_v39, %v6002_v38 }
 0x3be   : > { %vm1182_vm15 = vcmp.eq.s32.totalorder %v666_v42, %v6002_v38 }
 0x3bf   : > { %v5264_v54 = vadd.f32 %v5263_v49, %v4753_v53  ;;  %v3747_v55 = vpop.permute.xlu1 %3746  ;;  %v3742_v56 = vpop.permute.xlu0 %3741  ;;  %v667_v49 = vadd.s32 3184, %v5993_v33  ;;  %v1760_v53 = vld [vmem:[%s8429_s3 + $0xe78] sm:$0xff] }
 0x3c0   : > { %4066 = vperm.xlu1 %5576, %v1748_v51   ;;  %4061 = vperm.xlu0 %5575, %v1747_v52   ;;  %v4755_v63 = vsel %vm1171_vm4, %v3742_v56, 0.0  ;;  %v4756_v5 = vsel %vm1172_vm5, %v3747_v55, 0.0  ;;  %v668_v52 = vadd.s32 3192, %v5993_v33 }
 0x3c1   : > { %v5265_v59 = vadd.f32 %v5264_v54, %v4754_v58  ;;  %v1759_v54 = vld [vmem:[%s8429_s3 + $0xe70] sm:$0xff]  ;;  %vm1183_vm0 = vcmp.eq.s32.totalorder %v667_v49, %v6002_v38 }
 0x3c2   : > { %vm1184_vm1 = vcmp.eq.s32.totalorder %v668_v52, %v6002_v38 }
 0x3c3   : > { %v5266_v0 = vadd.f32 %v5265_v59, %v4755_v63  ;;  %v3757_v1 = vpop.permute.xlu1 %3756  ;;  %v3752_v3 = vpop.permute.xlu0 %3751  ;;  %v669_v59 = vadd.s32 3200, %v5993_v33  ;;  %v1762_v63 = vld [vmem:[%s8429_s3 + $0xe88] sm:$0xff] }
 0x3c4   : > { %4076 = vperm.xlu1 %5576, %v1750_v61   ;;  %4071 = vperm.xlu0 %5575, %v1749_v62   ;;  %v4757_v10 = vsel %vm1173_vm6, %v3752_v3, 0.0  ;;  %v4758_v17 = vsel %vm1174_vm7, %v3757_v1, 0.0  ;;  %v670_v62 = vadd.s32 3208, %v5993_v33 }
 0x3c5   : > { %v5267_v6 = vadd.f32 %v5266_v0, %v4756_v5  ;;  %v1761_v0 = vld [vmem:[%s8429_s3 + $0xe80] sm:$0xff]  ;;  %vm1185_vm2 = vcmp.eq.s32.totalorder %v669_v59, %v6002_v38 }
 0x3c6   : > { %vm1186_vm3 = vcmp.eq.s32.totalorder %v670_v62, %v6002_v38 }
 0x3c7   : > { %v5268_v11 = vadd.f32 %v5267_v6, %v4757_v10  ;;  %v3767_v14 = vpop.permute.xlu1 %3766  ;;  %v3762_v15 = vpop.permute.xlu0 %3761  ;;  %v671_v6 = vadd.s32 3216, %v5993_v33  ;;  %v1764_v10 = vld [vmem:[%s8429_s3 + $0xe98] sm:$0xff] }
 0x3c8   : > { %4086 = vperm.xlu1 %5576, %v1752_v8   ;;  %4081 = vperm.xlu0 %5575, %v1751_v9   ;;  %v4759_v23 = vsel %vm1175_vm8, %v3762_v15, 0.0  ;;  %v4760_v28 = vsel %vm1176_vm9, %v3767_v14, 0.0  ;;  %v672_v9 = vadd.s32 3224, %v5993_v33 }
 0x3c9   : > { %v5269_v18 = vadd.f32 %v5268_v11, %v4758_v17  ;;  %v1763_v11 = vld [vmem:[%s8429_s3 + $0xe90] sm:$0xff]  ;;  %vm1187_vm4 = vcmp.eq.s32.totalorder %v671_v6, %v6002_v38 }
 0x3ca   : > { %vm1188_vm5 = vcmp.eq.s32.totalorder %v672_v9, %v6002_v38 }
 0x3cb   : > { %v5270_v24 = vadd.f32 %v5269_v18, %v4759_v23  ;;  %v3777_v25 = vpop.permute.xlu1 %3776  ;;  %v3772_v26 = vpop.permute.xlu0 %3771  ;;  %v673_v18 = vadd.s32 3232, %v5993_v33  ;;  %v1766_v23 = vld [vmem:[%s8429_s3 + $0xea8] sm:$0xff] }
 0x3cc   : > { %4096 = vperm.xlu1 %5576, %v1754_v20   ;;  %4091 = vperm.xlu0 %5575, %v1753_v21   ;;  %v4761_v34 = vsel %vm1177_vm10, %v3772_v26, 0.0  ;;  %v4762_v40 = vsel %vm1178_vm11, %v3777_v25, 0.0  ;;  %v674_v21 = vadd.s32 3240, %v5993_v33 }
 0x3cd   : > { %v5271_v29 = vadd.f32 %v5270_v24, %v4760_v28  ;;  %v1765_v24 = vld [vmem:[%s8429_s3 + $0xea0] sm:$0xff]  ;;  %vm1189_vm6 = vcmp.eq.s32.totalorder %v673_v18, %v6002_v38 }
 0x3ce   : > { %vm1190_vm7 = vcmp.eq.s32.totalorder %v674_v21, %v6002_v38 }
 0x3cf   : > { %v5272_v35 = vadd.f32 %v5271_v29, %v4761_v34  ;;  %v3787_v36 = vpop.permute.xlu1 %3786  ;;  %v3782_v37 = vpop.permute.xlu0 %3781  ;;  %v675_v29 = vadd.s32 3248, %v5993_v33  ;;  %v1768_v34 = vld [vmem:[%s8429_s3 + $0xeb8] sm:$0xff] }
 0x3d0   : > { %4106 = vperm.xlu1 %5576, %v1756_v31   ;;  %4101 = vperm.xlu0 %5575, %v1755_v32   ;;  %v4763_v45 = vsel %vm1179_vm12, %v3782_v37, 0.0  ;;  %v4764_v50 = vsel %vm1180_vm13, %v3787_v36, 0.0  ;;  %v676_v32 = vadd.s32 3256, %v5993_v33 }
 0x3d1   : > { %v5273_v41 = vadd.f32 %v5272_v35, %v4762_v40  ;;  %v1767_v35 = vld [vmem:[%s8429_s3 + $0xeb0] sm:$0xff]  ;;  %vm1191_vm8 = vcmp.eq.s32.totalorder %v675_v29, %v6002_v38 }
 0x3d2   : > { %vm1192_vm9 = vcmp.eq.s32.totalorder %v676_v32, %v6002_v38 }
 0x3d3   : > { %v5274_v46 = vadd.f32 %v5273_v41, %v4763_v45  ;;  %v3797_v47 = vpop.permute.xlu1 %3796  ;;  %v3792_v48 = vpop.permute.xlu0 %3791  ;;  %v677_v41 = vadd.s32 3264, %v5993_v33  ;;  %v1770_v45 = vld [vmem:[%s8429_s3 + $0xec8] sm:$0xff] }
 0x3d4   : > { %4116 = vperm.xlu1 %5576, %v1758_v43   ;;  %4111 = vperm.xlu0 %5575, %v1757_v44   ;;  %v4765_v55 = vsel %vm1181_vm14, %v3792_v48, 0.0  ;;  %v4766_v60 = vsel %vm1182_vm15, %v3797_v47, 0.0  ;;  %v678_v44 = vadd.s32 3272, %v5993_v33 }
 0x3d5   : > { %v5275_v51 = vadd.f32 %v5274_v46, %v4764_v50  ;;  %v1769_v46 = vld [vmem:[%s8429_s3 + $0xec0] sm:$0xff]  ;;  %vm1193_vm10 = vcmp.eq.s32.totalorder %v677_v41, %v6002_v38 }
 0x3d6   : > { %vm1194_vm11 = vcmp.eq.s32.totalorder %v678_v44, %v6002_v38 }
 0x3d7   : > { %v5276_v56 = vadd.f32 %v5275_v51, %v4765_v55  ;;  %v3807_v57 = vpop.permute.xlu1 %3806  ;;  %v3802_v58 = vpop.permute.xlu0 %3801  ;;  %v679_v51 = vadd.s32 3280, %v5993_v33  ;;  %v1772_v55 = vld [vmem:[%s8429_s3 + $0xed8] sm:$0xff] }
 0x3d8   : > { %4126 = vperm.xlu1 %5576, %v1760_v53   ;;  %4121 = vperm.xlu0 %5575, %v1759_v54   ;;  %v4767_v1 = vsel %vm1183_vm0, %v3802_v58, 0.0  ;;  %v4768_v7 = vsel %vm1184_vm1, %v3807_v57, 0.0  ;;  %v680_v54 = vadd.s32 3288, %v5993_v33 }
 0x3d9   : > { %v5277_v61 = vadd.f32 %v5276_v56, %v4766_v60  ;;  %v1771_v56 = vld [vmem:[%s8429_s3 + $0xed0] sm:$0xff]  ;;  %vm1195_vm12 = vcmp.eq.s32.totalorder %v679_v51, %v6002_v38 }
 0x3da   : > { %vm1196_vm13 = vcmp.eq.s32.totalorder %v680_v54, %v6002_v38 }
 0x3db   : > { %v5278_v3 = vadd.f32 %v5277_v61, %v4767_v1  ;;  %v3817_v4 = vpop.permute.xlu1 %3816  ;;  %v3812_v5 = vpop.permute.xlu0 %3811  ;;  %v681_v61 = vadd.s32 3296, %v5993_v33  ;;  %v1774_v1 = vld [vmem:[%s8429_s3 + $0xee8] sm:$0xff] }
 0x3dc   : > { %4136 = vperm.xlu1 %5576, %v1762_v63   ;;  %4131 = vperm.xlu0 %5575, %v1761_v0   ;;  %v4769_v14 = vsel %vm1185_vm2, %v3812_v5, 0.0  ;;  %v4770_v19 = vsel %vm1186_vm3, %v3817_v4, 0.0  ;;  %v682_v0 = vadd.s32 3304, %v5993_v33 }
 0x3dd   : > { %v5279_v8 = vadd.f32 %v5278_v3, %v4768_v7  ;;  %v1773_v3 = vld [vmem:[%s8429_s3 + $0xee0] sm:$0xff]  ;;  %vm1197_vm14 = vcmp.eq.s32.totalorder %v681_v61, %v6002_v38 }
 0x3de   : > { %vm1198_vm15 = vcmp.eq.s32.totalorder %v682_v0, %v6002_v38 }
 0x3df   : > { %v5280_v15 = vadd.f32 %v5279_v8, %v4769_v14  ;;  %v3827_v16 = vpop.permute.xlu1 %3826  ;;  %v3822_v17 = vpop.permute.xlu0 %3821  ;;  %v683_v8 = vadd.s32 3312, %v5993_v33  ;;  %v1776_v14 = vld [vmem:[%s8429_s3 + $0xef8] sm:$0xff] }
 0x3e0   : > { %4146 = vperm.xlu1 %5576, %v1764_v10   ;;  %4141 = vperm.xlu0 %5575, %v1763_v11   ;;  %v4771_v25 = vsel %vm1187_vm4, %v3822_v17, 0.0  ;;  %v4772_v30 = vsel %vm1188_vm5, %v3827_v16, 0.0  ;;  %v684_v11 = vadd.s32 3320, %v5993_v33 }
 0x3e1   : > { %v5281_v20 = vadd.f32 %v5280_v15, %v4770_v19  ;;  %v1775_v15 = vld [vmem:[%s8429_s3 + $0xef0] sm:$0xff]  ;;  %vm1199_vm0 = vcmp.eq.s32.totalorder %v683_v8, %v6002_v38 }
 0x3e2   : > { %vm1200_vm1 = vcmp.eq.s32.totalorder %v684_v11, %v6002_v38 }
 0x3e3   : > { %v5282_v26 = vadd.f32 %v5281_v20, %v4771_v25  ;;  %v3837_v27 = vpop.permute.xlu1 %3836  ;;  %v3832_v28 = vpop.permute.xlu0 %3831  ;;  %v685_v20 = vadd.s32 3328, %v5993_v33  ;;  %v1778_v25 = vld [vmem:[%s8429_s3 + $0xf08] sm:$0xff] }
 0x3e4   : > { %4156 = vperm.xlu1 %5576, %v1766_v23   ;;  %4151 = vperm.xlu0 %5575, %v1765_v24   ;;  %v4773_v36 = vsel %vm1189_vm6, %v3832_v28, 0.0  ;;  %v4774_v42 = vsel %vm1190_vm7, %v3837_v27, 0.0  ;;  %v686_v24 = vadd.s32 3336, %v5993_v33 }
 0x3e5   : > { %v5283_v31 = vadd.f32 %v5282_v26, %v4772_v30  ;;  %v1777_v26 = vld [vmem:[%s8429_s3 + $0xf00] sm:$0xff]  ;;  %vm1201_vm2 = vcmp.eq.s32.totalorder %v685_v20, %v6002_v38 }
 0x3e6   : > { %vm1202_vm3 = vcmp.eq.s32.totalorder %v686_v24, %v6002_v38 }
 0x3e7   : > { %v5284_v37 = vadd.f32 %v5283_v31, %v4773_v36  ;;  %v3847_v39 = vpop.permute.xlu1 %3846  ;;  %v3842_v40 = vpop.permute.xlu0 %3841  ;;  %v687_v31 = vadd.s32 3344, %v5993_v33  ;;  %v1780_v36 = vld [vmem:[%s8429_s3 + $0xf18] sm:$0xff] }
 0x3e8   : > { %4166 = vperm.xlu1 %5576, %v1768_v34   ;;  %4161 = vperm.xlu0 %5575, %v1767_v35   ;;  %v4775_v47 = vsel %vm1191_vm8, %v3842_v40, 0.0  ;;  %v4776_v52 = vsel %vm1192_vm9, %v3847_v39, 0.0  ;;  %v688_v35 = vadd.s32 3352, %v5993_v33 }
 0x3e9   : > { %v5285_v43 = vadd.f32 %v5284_v37, %v4774_v42  ;;  %v1779_v37 = vld [vmem:[%s8429_s3 + $0xf10] sm:$0xff]  ;;  %vm1203_vm4 = vcmp.eq.s32.totalorder %v687_v31, %v6002_v38 }
 0x3ea   : > { %vm1204_vm5 = vcmp.eq.s32.totalorder %v688_v35, %v6002_v38 }
 0x3eb   : > { %v5286_v48 = vadd.f32 %v5285_v43, %v4775_v47  ;;  %v3857_v49 = vpop.permute.xlu1 %3856  ;;  %v3852_v50 = vpop.permute.xlu0 %3851  ;;  %v689_v43 = vadd.s32 3360, %v5993_v33  ;;  %v1782_v47 = vld [vmem:[%s8429_s3 + $0xf28] sm:$0xff] }
 0x3ec   : > { %4176 = vperm.xlu1 %5576, %v1770_v45   ;;  %4171 = vperm.xlu0 %5575, %v1769_v46   ;;  %v4777_v57 = vsel %vm1193_vm10, %v3852_v50, 0.0  ;;  %v4778_v62 = vsel %vm1194_vm11, %v3857_v49, 0.0  ;;  %v690_v46 = vadd.s32 3368, %v5993_v33 }
 0x3ed   : > { %v5287_v53 = vadd.f32 %v5286_v48, %v4776_v52  ;;  %v1781_v48 = vld [vmem:[%s8429_s3 + $0xf20] sm:$0xff]  ;;  %vm1205_vm6 = vcmp.eq.s32.totalorder %v689_v43, %v6002_v38 }
 0x3ee   : > { %vm1206_vm7 = vcmp.eq.s32.totalorder %v690_v46, %v6002_v38 }
 0x3ef   : > { %v5288_v58 = vadd.f32 %v5287_v53, %v4777_v57  ;;  %v3867_v59 = vpop.permute.xlu1 %3866  ;;  %v3862_v60 = vpop.permute.xlu0 %3861  ;;  %v691_v53 = vadd.s32 3376, %v5993_v33  ;;  %v1784_v57 = vld [vmem:[%s8429_s3 + $0xf38] sm:$0xff] }
 0x3f0   : > { %4186 = vperm.xlu1 %5576, %v1772_v55   ;;  %4181 = vperm.xlu0 %5575, %v1771_v56   ;;  %v4779_v4 = vsel %vm1195_vm12, %v3862_v60, 0.0  ;;  %v4780_v9 = vsel %vm1196_vm13, %v3867_v59, 0.0  ;;  %v692_v56 = vadd.s32 3384, %v5993_v33 }
 0x3f1   : > { %v5289_v63 = vadd.f32 %v5288_v58, %v4778_v62  ;;  %v1783_v58 = vld [vmem:[%s8429_s3 + $0xf30] sm:$0xff]  ;;  %vm1207_vm8 = vcmp.eq.s32.totalorder %v691_v53, %v6002_v38 }
 0x3f2   : > { %vm1208_vm9 = vcmp.eq.s32.totalorder %v692_v56, %v6002_v38 }
 0x3f3   : > { %v5290_v5 = vadd.f32 %v5289_v63, %v4779_v4  ;;  %v3877_v6 = vpop.permute.xlu1 %3876  ;;  %v3872_v7 = vpop.permute.xlu0 %3871  ;;  %v693_v63 = vadd.s32 3392, %v5993_v33  ;;  %v1786_v4 = vld [vmem:[%s8429_s3 + $0xf48] sm:$0xff] }
 0x3f4   : > { %4196 = vperm.xlu1 %5576, %v1774_v1   ;;  %4191 = vperm.xlu0 %5575, %v1773_v3   ;;  %v4781_v16 = vsel %vm1197_vm14, %v3872_v7, 0.0  ;;  %v4782_v21 = vsel %vm1198_vm15, %v3877_v6, 0.0  ;;  %v694_v3 = vadd.s32 3400, %v5993_v33 }
 0x3f5   : > { %v5291_v10 = vadd.f32 %v5290_v5, %v4780_v9  ;;  %v1785_v5 = vld [vmem:[%s8429_s3 + $0xf40] sm:$0xff]  ;;  %vm1209_vm10 = vcmp.eq.s32.totalorder %v693_v63, %v6002_v38 }
 0x3f6   : > { %vm1210_vm11 = vcmp.eq.s32.totalorder %v694_v3, %v6002_v38 }
 0x3f7   : > { %v5292_v17 = vadd.f32 %v5291_v10, %v4781_v16  ;;  %v3887_v18 = vpop.permute.xlu1 %3886  ;;  %v3882_v19 = vpop.permute.xlu0 %3881  ;;  %v695_v10 = vadd.s32 3408, %v5993_v33  ;;  %v1788_v16 = vld [vmem:[%s8429_s3 + $0xf58] sm:$0xff] }
 0x3f8   : > { %4206 = vperm.xlu1 %5576, %v1776_v14   ;;  %4201 = vperm.xlu0 %5575, %v1775_v15   ;;  %v4783_v27 = vsel %vm1199_vm0, %v3882_v19, 0.0  ;;  %v4784_v32 = vsel %vm1200_vm1, %v3887_v18, 0.0  ;;  %v696_v15 = vadd.s32 3416, %v5993_v33 }
 0x3f9   : > { %v5293_v23 = vadd.f32 %v5292_v17, %v4782_v21  ;;  %v1787_v17 = vld [vmem:[%s8429_s3 + $0xf50] sm:$0xff]  ;;  %vm1211_vm12 = vcmp.eq.s32.totalorder %v695_v10, %v6002_v38 }
 0x3fa   : > { %vm1212_vm13 = vcmp.eq.s32.totalorder %v696_v15, %v6002_v38 }
 0x3fb   : > { %v5294_v28 = vadd.f32 %v5293_v23, %v4783_v27  ;;  %v3897_v29 = vpop.permute.xlu1 %3896  ;;  %v3892_v30 = vpop.permute.xlu0 %3891  ;;  %v697_v23 = vadd.s32 3424, %v5993_v33  ;;  %v1790_v27 = vld [vmem:[%s8429_s3 + $0xf68] sm:$0xff] }
 0x3fc   : > { %4216 = vperm.xlu1 %5576, %v1778_v25   ;;  %4211 = vperm.xlu0 %5575, %v1777_v26   ;;  %v4785_v39 = vsel %vm1201_vm2, %v3892_v30, 0.0  ;;  %v4786_v44 = vsel %vm1202_vm3, %v3897_v29, 0.0  ;;  %v698_v26 = vadd.s32 3432, %v5993_v33 }
 0x3fd   : > { %v5295_v34 = vadd.f32 %v5294_v28, %v4784_v32  ;;  %v1789_v28 = vld [vmem:[%s8429_s3 + $0xf60] sm:$0xff]  ;;  %vm1213_vm14 = vcmp.eq.s32.totalorder %v697_v23, %v6002_v38 }
 0x3fe   : > { %vm1214_vm15 = vcmp.eq.s32.totalorder %v698_v26, %v6002_v38 }
 0x3ff   : > { %v5296_v40 = vadd.f32 %v5295_v34, %v4785_v39  ;;  %v3907_v41 = vpop.permute.xlu1 %3906  ;;  %v3902_v42 = vpop.permute.xlu0 %3901  ;;  %v699_v34 = vadd.s32 3440, %v5993_v33  ;;  %v1792_v39 = vld [vmem:[%s8429_s3 + $0xf78] sm:$0xff] }
 0x400   : > { %4226 = vperm.xlu1 %5576, %v1780_v36   ;;  %4221 = vperm.xlu0 %5575, %v1779_v37   ;;  %v4787_v49 = vsel %vm1203_vm4, %v3902_v42, 0.0  ;;  %v4788_v54 = vsel %vm1204_vm5, %v3907_v41, 0.0  ;;  %v700_v37 = vadd.s32 3448, %v5993_v33 }
 0x401   : > { %v5297_v45 = vadd.f32 %v5296_v40, %v4786_v44  ;;  %v1791_v40 = vld [vmem:[%s8429_s3 + $0xf70] sm:$0xff]  ;;  %vm1215_vm0 = vcmp.eq.s32.totalorder %v699_v34, %v6002_v38 }
 0x402   : > { %vm1216_vm1 = vcmp.eq.s32.totalorder %v700_v37, %v6002_v38 }
 0x403   : > { %v5298_v50 = vadd.f32 %v5297_v45, %v4787_v49  ;;  %v3917_v51 = vpop.permute.xlu1 %3916  ;;  %v3912_v52 = vpop.permute.xlu0 %3911  ;;  %v701_v45 = vadd.s32 3456, %v5993_v33  ;;  %v1794_v49 = vld [vmem:[%s8429_s3 + $0xf88] sm:$0xff] }
 0x404   : > { %4236 = vperm.xlu1 %5576, %v1782_v47   ;;  %4231 = vperm.xlu0 %5575, %v1781_v48   ;;  %v4789_v59 = vsel %vm1205_vm6, %v3912_v52, 0.0  ;;  %v4790_v0 = vsel %vm1206_vm7, %v3917_v51, 0.0  ;;  %v702_v48 = vadd.s32 3464, %v5993_v33 }
 0x405   : > { %v5299_v55 = vadd.f32 %v5298_v50, %v4788_v54  ;;  %v1793_v50 = vld [vmem:[%s8429_s3 + $0xf80] sm:$0xff]  ;;  %vm1217_vm2 = vcmp.eq.s32.totalorder %v701_v45, %v6002_v38 }
 0x406   : > { %vm1218_vm3 = vcmp.eq.s32.totalorder %v702_v48, %v6002_v38 }
 0x407   : > { %v5300_v60 = vadd.f32 %v5299_v55, %v4789_v59  ;;  %v3927_v61 = vpop.permute.xlu1 %3926  ;;  %v3922_v62 = vpop.permute.xlu0 %3921  ;;  %v703_v55 = vadd.s32 3472, %v5993_v33  ;;  %v1796_v59 = vld [vmem:[%s8429_s3 + $0xf98] sm:$0xff] }
 0x408   : > { %4246 = vperm.xlu1 %5576, %v1784_v57   ;;  %4241 = vperm.xlu0 %5575, %v1783_v58   ;;  %v4791_v6 = vsel %vm1207_vm8, %v3922_v62, 0.0  ;;  %v4792_v11 = vsel %vm1208_vm9, %v3927_v61, 0.0  ;;  %v704_v58 = vadd.s32 3480, %v5993_v33 }
 0x409   : > { %v5301_v1 = vadd.f32 %v5300_v60, %v4790_v0  ;;  %v1795_v60 = vld [vmem:[%s8429_s3 + $0xf90] sm:$0xff]  ;;  %vm1219_vm4 = vcmp.eq.s32.totalorder %v703_v55, %v6002_v38 }
 0x40a   : > { %vm1220_vm5 = vcmp.eq.s32.totalorder %v704_v58, %v6002_v38 }
 0x40b   : > { %v5302_v7 = vadd.f32 %v5301_v1, %v4791_v6  ;;  %v3937_v8 = vpop.permute.xlu1 %3936  ;;  %v3932_v9 = vpop.permute.xlu0 %3931  ;;  %v705_v1 = vadd.s32 3488, %v5993_v33  ;;  %v1798_v6 = vld [vmem:[%s8429_s3 + $0xfa8] sm:$0xff] }
 0x40c   : > { %4256 = vperm.xlu1 %5576, %v1786_v4   ;;  %4251 = vperm.xlu0 %5575, %v1785_v5   ;;  %v4793_v18 = vsel %vm1209_vm10, %v3932_v9, 0.0  ;;  %v4794_v24 = vsel %vm1210_vm11, %v3937_v8, 0.0  ;;  %v706_v5 = vadd.s32 3496, %v5993_v33 }
 0x40d   : > { %v5303_v14 = vadd.f32 %v5302_v7, %v4792_v11  ;;  %v1797_v7 = vld [vmem:[%s8429_s3 + $0xfa0] sm:$0xff]  ;;  %vm1221_vm6 = vcmp.eq.s32.totalorder %v705_v1, %v6002_v38 }
 0x40e   : > { %vm1222_vm7 = vcmp.eq.s32.totalorder %v706_v5, %v6002_v38 }
 0x40f   : > { %v5304_v19 = vadd.f32 %v5303_v14, %v4793_v18  ;;  %v3947_v20 = vpop.permute.xlu1 %3946  ;;  %v3942_v21 = vpop.permute.xlu0 %3941  ;;  %v707_v14 = vadd.s32 3504, %v5993_v33  ;;  %v1800_v18 = vld [vmem:[%s8429_s3 + $0xfb8] sm:$0xff] }
 0x410   : > { %4266 = vperm.xlu1 %5576, %v1788_v16   ;;  %4261 = vperm.xlu0 %5575, %v1787_v17   ;;  %v4795_v29 = vsel %vm1211_vm12, %v3942_v21, 0.0  ;;  %v4796_v35 = vsel %vm1212_vm13, %v3947_v20, 0.0  ;;  %v708_v17 = vadd.s32 3512, %v5993_v33 }
 0x411   : > { %v5305_v25 = vadd.f32 %v5304_v19, %v4794_v24  ;;  %v1799_v19 = vld [vmem:[%s8429_s3 + $0xfb0] sm:$0xff]  ;;  %vm1223_vm8 = vcmp.eq.s32.totalorder %v707_v14, %v6002_v38  ;;  %v719_v14 = vadd.s32 3600, %v5993_v33 }
 0x412   : > { %vm1224_vm9 = vcmp.eq.s32.totalorder %v708_v17, %v6002_v38  ;;  %v720_v17 = vadd.s32 3608, %v5993_v33 }
 0x413   : > { %v5306_v30 = vadd.f32 %v5305_v25, %v4795_v29  ;;  %v3957_v31 = vpop.permute.xlu1 %3956  ;;  %v3952_v32 = vpop.permute.xlu0 %3951  ;;  %v709_v25 = vadd.s32 3520, %v5993_v33  ;;  %v1802_v29 = vld [vmem:[%s8429_s3 + $0xfc8] sm:$0xff] }
 0x414   : > { %4276 = vperm.xlu1 %5576, %v1790_v27   ;;  %4271 = vperm.xlu0 %5575, %v1789_v28   ;;  %v4797_v41 = vsel %vm1213_vm14, %v3952_v32, 0.0  ;;  %v4798_v46 = vsel %vm1214_vm15, %v3957_v31, 0.0  ;;  %v710_v28 = vadd.s32 3528, %v5993_v33 }
 0x415   : > { %v5307_v36 = vadd.f32 %v5306_v30, %v4796_v35  ;;  %v1801_v30 = vld [vmem:[%s8429_s3 + $0xfc0] sm:$0xff]  ;;  %vm1225_vm10 = vcmp.eq.s32.totalorder %v709_v25, %v6002_v38 }
 0x416   : > { %vm1226_vm11 = vcmp.eq.s32.totalorder %v710_v28, %v6002_v38 }
 0x417   : > { %v5308_v42 = vadd.f32 %v5307_v36, %v4797_v41  ;;  %v3967_v43 = vpop.permute.xlu1 %3966  ;;  %v3962_v44 = vpop.permute.xlu0 %3961  ;;  %v711_v36 = vadd.s32 3536, %v5993_v33  ;;  %v1804_v41 = vld [vmem:[%s8429_s3 + $0xfd8] sm:$0xff] }
 0x418   : > { %4286 = vperm.xlu1 %5576, %v1792_v39   ;;  %4281 = vperm.xlu0 %5575, %v1791_v40   ;;  %v4799_v51 = vsel %vm1215_vm0, %v3962_v44, 0.0  ;;  %v4800_v56 = vsel %vm1216_vm1, %v3967_v43, 0.0  ;;  %v712_v40 = vadd.s32 3544, %v5993_v33 }
 0x419   : > { %v5309_v47 = vadd.f32 %v5308_v42, %v4798_v46  ;;  %v1803_v42 = vld [vmem:[%s8429_s3 + $0xfd0] sm:$0xff]  ;;  %vm1227_vm12 = vcmp.eq.s32.totalorder %v711_v36, %v6002_v38 }
 0x41a   : > { %vm1228_vm13 = vcmp.eq.s32.totalorder %v712_v40, %v6002_v38 }
 0x41b   : > { %v5310_v52 = vadd.f32 %v5309_v47, %v4799_v51  ;;  %v3977_v53 = vpop.permute.xlu1 %3976  ;;  %v3972_v54 = vpop.permute.xlu0 %3971  ;;  %v713_v47 = vadd.s32 3552, %v5993_v33  ;;  %v1806_v51 = vld [vmem:[%s8429_s3 + $0xfe8] sm:$0xff] }
 0x41c   : > { %4296 = vperm.xlu1 %5576, %v1794_v49   ;;  %4291 = vperm.xlu0 %5575, %v1793_v50   ;;  %v4801_v61 = vsel %vm1217_vm2, %v3972_v54, 0.0  ;;  %v4802_v3 = vsel %vm1218_vm3, %v3977_v53, 0.0  ;;  %v714_v50 = vadd.s32 3560, %v5993_v33 }
 0x41d   : > { %v5311_v57 = vadd.f32 %v5310_v52, %v4800_v56  ;;  %v1805_v52 = vld [vmem:[%s8429_s3 + $0xfe0] sm:$0xff]  ;;  %vm1229_vm14 = vcmp.eq.s32.totalorder %v713_v47, %v6002_v38 }
 0x41e   : > { %vm1230_vm15 = vcmp.eq.s32.totalorder %v714_v50, %v6002_v38 }
 0x41f   : > { %v5312_v62 = vadd.f32 %v5311_v57, %v4801_v61  ;;  %v3987_v63 = vpop.permute.xlu1 %3986  ;;  %v3982_v0 = vpop.permute.xlu0 %3981  ;;  %v715_v57 = vadd.s32 3568, %v5993_v33  ;;  %v1808_v61 = vld [vmem:[%s8429_s3 + $0xff8] sm:$0xff] }
 0x420   : > { %4306 = vperm.xlu1 %5576, %v1796_v59   ;;  %4301 = vperm.xlu0 %5575, %v1795_v60   ;;  %v4803_v8 = vsel %vm1219_vm4, %v3982_v0, 0.0  ;;  %v4804_v15 = vsel %vm1220_vm5, %v3987_v63, 0.0  ;;  %v716_v60 = vadd.s32 3576, %v5993_v33  ;;  %vm1235_vm4 = vcmp.eq.s32.totalorder %v719_v14, %v6002_v38 }
 0x421   : > { %v5313_v4 = vadd.f32 %v5312_v62, %v4802_v3  ;;  %v1807_v62 = vld [vmem:[%s8429_s3 + $0xff0] sm:$0xff]  ;;  %vm1231_vm0 = vcmp.eq.s32.totalorder %v715_v57, %v6002_v38  ;;  %vm1236_vm5 = vcmp.eq.s32.totalorder %v720_v17, %v6002_v38  ;;  %v729_v57 = vadd.s32 3680, %v5993_v33 }
 0x422   : > { %vm1232_vm1 = vcmp.eq.s32.totalorder %v716_v60, %v6002_v38  ;;  %v730_v60 = vadd.s32 3688, %v5993_v33 }
 0x423   : > { %v5314_v9 = vadd.f32 %v5313_v4, %v4803_v8  ;;  %v3997_v10 = vpop.permute.xlu1 %3996  ;;  %v3992_v11 = vpop.permute.xlu0 %3991  ;;  %v717_v4 = vadd.s32 3584, %v5993_v33 }
 0x424   : > { %4316 = vperm.xlu1 %5576, %v1798_v6   ;;  %4311 = vperm.xlu0 %5575, %v1797_v7   ;;  %v4805_v20 = vsel %vm1221_vm6, %v3992_v11, 0.0  ;;  %v4806_v26 = vsel %vm1222_vm7, %v3997_v10, 0.0  ;;  %v718_v7 = vadd.s32 3592, %v5993_v33 }
 0x425   : > { %v5315_v16 = vadd.f32 %v5314_v9, %v4804_v15  ;;  %vm1233_vm2 = vcmp.eq.s32.totalorder %v717_v4, %v6002_v38 }
 0x426   : > { %vm1234_vm3 = vcmp.eq.s32.totalorder %v718_v7, %v6002_v38 }
 0x427   : > { %v5316_v21 = vadd.f32 %v5315_v16, %v4805_v20  ;;  %v4007_v23 = vpop.permute.xlu1 %4006  ;;  %v4002_v24 = vpop.permute.xlu0 %4001 }
 0x428   : > { %4326 = vperm.xlu1 %5576, %v1800_v18   ;;  %4321 = vperm.xlu0 %5575, %v1799_v19   ;;  %v4807_v31 = vsel %vm1223_vm8, %v4002_v24, 0.0  ;;  %v4808_v37 = vsel %vm1224_vm9, %v4007_v23, 0.0  ;;  %v721_v23 = vadd.s32 3616, %v5993_v33 }
 0x429   : > { %v5317_v27 = vadd.f32 %v5316_v21, %v4806_v26  ;;  %v722_v26 = vadd.s32 3624, %v5993_v33 }
 0x42a   : > { %vm1237_vm6 = vcmp.eq.s32.totalorder %v721_v23, %v6002_v38 }
 0x42b   : > { %v5318_v32 = vadd.f32 %v5317_v27, %v4807_v31  ;;  %v4017_v34 = vpop.permute.xlu1 %4016  ;;  %v4012_v35 = vpop.permute.xlu0 %4011  ;;  %v723_v31 = vadd.s32 3632, %v5993_v33  ;;  %vm1238_vm7 = vcmp.eq.s32.totalorder %v722_v26, %v6002_v38 }
 0x42c   : > { %4336 = vperm.xlu1 %5576, %v1802_v29   ;;  %4331 = vperm.xlu0 %5575, %v1801_v30   ;;  %v4809_v43 = vsel %vm1225_vm10, %v4012_v35, 0.0  ;;  %v4810_v48 = vsel %vm1226_vm11, %v4017_v34, 0.0  ;;  %v724_v35 = vadd.s32 3640, %v5993_v33 }
 0x42d   : > { %v5319_v39 = vadd.f32 %v5318_v32, %v4808_v37  ;;  %vm1239_vm8 = vcmp.eq.s32.totalorder %v723_v31, %v6002_v38 }
 0x42e   : > { %vm1240_vm9 = vcmp.eq.s32.totalorder %v724_v35, %v6002_v38 }
 0x42f   : > { %v5320_v44 = vadd.f32 %v5319_v39, %v4809_v43  ;;  %v4027_v45 = vpop.permute.xlu1 %4026  ;;  %v4022_v46 = vpop.permute.xlu0 %4021 }
 0x430   : > { %4346 = vperm.xlu1 %5576, %v1804_v41   ;;  %4341 = vperm.xlu0 %5575, %v1803_v42   ;;  %v4811_v53 = vsel %vm1227_vm12, %v4022_v46, 0.0  ;;  %v4812_v58 = vsel %vm1228_vm13, %v4027_v45, 0.0  ;;  %v725_v41 = vadd.s32 3648, %v5993_v33 }
 0x431   : > { %v5321_v49 = vadd.f32 %v5320_v44, %v4810_v48  ;;  %v726_v44 = vadd.s32 3656, %v5993_v33 }
 0x432   : > { %vm1241_vm10 = vcmp.eq.s32.totalorder %v725_v41, %v6002_v38 }
 0x433   : > { %v5322_v54 = vadd.f32 %v5321_v49, %v4811_v53  ;;  %v4037_v55 = vpop.permute.xlu1 %4036  ;;  %v4032_v56 = vpop.permute.xlu0 %4031  ;;  %v727_v49 = vadd.s32 3664, %v5993_v33  ;;  %vm1242_vm11 = vcmp.eq.s32.totalorder %v726_v44, %v6002_v38 }
 0x434   : > { %4356 = vperm.xlu1 %5576, %v1806_v51   ;;  %4351 = vperm.xlu0 %5575, %v1805_v52   ;;  %v4813_v63 = vsel %vm1229_vm14, %v4032_v56, 0.0  ;;  %v4814_v5 = vsel %vm1230_vm15, %v4037_v55, 0.0  ;;  %v728_v52 = vadd.s32 3672, %v5993_v33  ;;  %vm1245_vm14 = vcmp.eq.s32.totalorder %v729_v57, %v6002_v38 }
 0x435   : > { %v5323_v59 = vadd.f32 %v5322_v54, %v4812_v58  ;;  %vm1243_vm12 = vcmp.eq.s32.totalorder %v727_v49, %v6002_v38  ;;  %vm1246_vm15 = vcmp.eq.s32.totalorder %v730_v60, %v6002_v38 }
 0x436   : > { %vm1244_vm13 = vcmp.eq.s32.totalorder %v728_v52, %v6002_v38 }
 0x437   : > { %v5324_v0 = vadd.f32 %v5323_v59, %v4813_v63  ;;  %v4047_v1 = vpop.permute.xlu1 %4046  ;;  %v4042_v3 = vpop.permute.xlu0 %4041 }
 0x438   : > { %4366 = vperm.xlu1 %5576, %v1808_v61   ;;  %4361 = vperm.xlu0 %5575, %v1807_v62   ;;  %v4815_v8 = vsel %vm1231_vm0, %v4042_v3, 0.0  ;;  %v4816_v15 = vsel %vm1232_vm1, %v4047_v1, 0.0  ;;  %v731_v1 = vadd.s32 3696, %v5993_v33 }
 0x439   : > { %v5325_v6 = vadd.f32 %v5324_v0, %v4814_v5  ;;  %v732_v5 = vadd.s32 3704, %v5993_v33 }
 0x43a   : > { %vm1247_vm0 = vcmp.eq.s32.totalorder %v731_v1, %v6002_v38 }
 0x43b   : > { %v5326_v9 = vadd.f32 %v5325_v6, %v4815_v8  ;;  %v4057_v10 = vpop.permute.xlu1 %4056  ;;  %v4052_v11 = vpop.permute.xlu0 %4051  ;;  %vm1248_vm1 = vcmp.eq.s32.totalorder %v732_v5, %v6002_v38 }
 0x43c   : > { %v4817_v18 = vsel %vm1233_vm2, %v4052_v11, 0.0  ;;  %v4818_v24 = vsel %vm1234_vm3, %v4057_v10, 0.0  ;;  %v733_v10 = vadd.s32 3712, %v5993_v33 }
 0x43d   : > { %v5327_v16 = vadd.f32 %v5326_v9, %v4816_v15  ;;  %v734_v15 = vadd.s32 3720, %v5993_v33 }
 0x43e   : > { %vm1249_vm2 = vcmp.eq.s32.totalorder %v733_v10, %v6002_v38 }
 0x43f   : > { %v5328_v19 = vadd.f32 %v5327_v16, %v4817_v18  ;;  %v4067_v20 = vpop.permute.xlu1 %4066  ;;  %v4062_v21 = vpop.permute.xlu0 %4061  ;;  %vm1250_vm3 = vcmp.eq.s32.totalorder %v734_v15, %v6002_v38 }
 0x440   : > { %v4819_v27 = vsel %vm1235_vm4, %v4062_v21, 0.0  ;;  %v4820_v32 = vsel %vm1236_vm5, %v4067_v20, 0.0  ;;  %v735_v20 = vadd.s32 3728, %v5993_v33 }
 0x441   : > { %v5329_v25 = vadd.f32 %v5328_v19, %v4818_v24  ;;  %v736_v24 = vadd.s32 3736, %v5993_v33 }
 0x442   : > { %vm1251_vm4 = vcmp.eq.s32.totalorder %v735_v20, %v6002_v38 }
 0x443   : > { %v5330_v28 = vadd.f32 %v5329_v25, %v4819_v27  ;;  %v4077_v29 = vpop.permute.xlu1 %4076  ;;  %v4072_v30 = vpop.permute.xlu0 %4071  ;;  %vm1252_vm5 = vcmp.eq.s32.totalorder %v736_v24, %v6002_v38 }
 0x444   : > { %v4821_v36 = vsel %vm1237_vm6, %v4072_v30, 0.0  ;;  %v4822_v42 = vsel %vm1238_vm7, %v4077_v29, 0.0  ;;  %v737_v29 = vadd.s32 3744, %v5993_v33 }
 0x445   : > { %v5331_v34 = vadd.f32 %v5330_v28, %v4820_v32  ;;  %v738_v32 = vadd.s32 3752, %v5993_v33 }
 0x446   : > { %vm1253_vm6 = vcmp.eq.s32.totalorder %v737_v29, %v6002_v38 }
 0x447   : > { %v5332_v37 = vadd.f32 %v5331_v34, %v4821_v36  ;;  %v4087_v39 = vpop.permute.xlu1 %4086  ;;  %v4082_v40 = vpop.permute.xlu0 %4081  ;;  %vm1254_vm7 = vcmp.eq.s32.totalorder %v738_v32, %v6002_v38 }
 0x448   : > { %v4823_v45 = vsel %vm1239_vm8, %v4082_v40, 0.0  ;;  %v4824_v50 = vsel %vm1240_vm9, %v4087_v39, 0.0  ;;  %v739_v39 = vadd.s32 3760, %v5993_v33 }
 0x449   : > { %v5333_v43 = vadd.f32 %v5332_v37, %v4822_v42  ;;  %v740_v42 = vadd.s32 3768, %v5993_v33 }
 0x44a   : > { %vm1255_vm8 = vcmp.eq.s32.totalorder %v739_v39, %v6002_v38 }
 0x44b   : > { %v5334_v46 = vadd.f32 %v5333_v43, %v4823_v45  ;;  %v4097_v47 = vpop.permute.xlu1 %4096  ;;  %v4092_v48 = vpop.permute.xlu0 %4091  ;;  %vm1256_vm9 = vcmp.eq.s32.totalorder %v740_v42, %v6002_v38 }
 0x44c   : > { %v4825_v53 = vsel %vm1241_vm10, %v4092_v48, 0.0  ;;  %v4826_v58 = vsel %vm1242_vm11, %v4097_v47, 0.0  ;;  %v741_v47 = vadd.s32 3776, %v5993_v33 }
 0x44d   : > { %v5335_v51 = vadd.f32 %v5334_v46, %v4824_v50  ;;  %v742_v50 = vadd.s32 3784, %v5993_v33 }
 0x44e   : > { %vm1257_vm10 = vcmp.eq.s32.totalorder %v741_v47, %v6002_v38 }
 0x44f   : > { %v5336_v54 = vadd.f32 %v5335_v51, %v4825_v53  ;;  %v4107_v55 = vpop.permute.xlu1 %4106  ;;  %v4102_v56 = vpop.permute.xlu0 %4101  ;;  %vm1258_vm11 = vcmp.eq.s32.totalorder %v742_v50, %v6002_v38 }
 0x450   : > { %v4827_v61 = vsel %vm1243_vm12, %v4102_v56, 0.0  ;;  %v4828_v3 = vsel %vm1244_vm13, %v4107_v55, 0.0  ;;  %v743_v55 = vadd.s32 3792, %v5993_v33 }
 0x451   : > { %v5337_v59 = vadd.f32 %v5336_v54, %v4826_v58  ;;  %v744_v58 = vadd.s32 3800, %v5993_v33 }
 0x452   : > { %vm1259_vm12 = vcmp.eq.s32.totalorder %v743_v55, %v6002_v38 }
 0x453   : > { %v5338_v62 = vadd.f32 %v5337_v59, %v4827_v61  ;;  %v4117_v63 = vpop.permute.xlu1 %4116  ;;  %v4112_v0 = vpop.permute.xlu0 %4111  ;;  %vm1260_vm13 = vcmp.eq.s32.totalorder %v744_v58, %v6002_v38 }
 0x454   : > { %v4829_v6 = vsel %vm1245_vm14, %v4112_v0, 0.0  ;;  %v4830_v11 = vsel %vm1246_vm15, %v4117_v63, 0.0  ;;  %v745_v63 = vadd.s32 3808, %v5993_v33 }
 0x455   : > { %v5339_v4 = vadd.f32 %v5338_v62, %v4828_v3  ;;  %v746_v3 = vadd.s32 3816, %v5993_v33 }
 0x456   : > { %vm1261_vm14 = vcmp.eq.s32.totalorder %v745_v63, %v6002_v38 }
 0x457   : > { %v5340_v7 = vadd.f32 %v5339_v4, %v4829_v6  ;;  %v4127_v8 = vpop.permute.xlu1 %4126  ;;  %v4122_v9 = vpop.permute.xlu0 %4121  ;;  %vm1262_vm15 = vcmp.eq.s32.totalorder %v746_v3, %v6002_v38 }
 0x458   : > { %v4831_v16 = vsel %vm1247_vm0, %v4122_v9, 0.0  ;;  %v4832_v21 = vsel %vm1248_vm1, %v4127_v8, 0.0  ;;  %v747_v8 = vadd.s32 3824, %v5993_v33 }
 0x459   : > { %v5341_v14 = vadd.f32 %v5340_v7, %v4830_v11  ;;  %v748_v11 = vadd.s32 3832, %v5993_v33 }
 0x45a   : > { %vm1263_vm0 = vcmp.eq.s32.totalorder %v747_v8, %v6002_v38 }
 0x45b   : > { %v5342_v17 = vadd.f32 %v5341_v14, %v4831_v16  ;;  %v4137_v18 = vpop.permute.xlu1 %4136  ;;  %v4132_v19 = vpop.permute.xlu0 %4131  ;;  %vm1264_vm1 = vcmp.eq.s32.totalorder %v748_v11, %v6002_v38 }
 0x45c   : > { %v4833_v25 = vsel %vm1249_vm2, %v4132_v19, 0.0  ;;  %v4834_v30 = vsel %vm1250_vm3, %v4137_v18, 0.0  ;;  %v749_v18 = vadd.s32 3840, %v5993_v33 }
 0x45d   : > { %v5343_v23 = vadd.f32 %v5342_v17, %v4832_v21  ;;  %v750_v21 = vadd.s32 3848, %v5993_v33 }
 0x45e   : > { %vm1265_vm2 = vcmp.eq.s32.totalorder %v749_v18, %v6002_v38 }
 0x45f   : > { %v5344_v26 = vadd.f32 %v5343_v23, %v4833_v25  ;;  %v4147_v27 = vpop.permute.xlu1 %4146  ;;  %v4142_v28 = vpop.permute.xlu0 %4141  ;;  %vm1266_vm3 = vcmp.eq.s32.totalorder %v750_v21, %v6002_v38 }
 0x460   : > { %v4835_v34 = vsel %vm1251_vm4, %v4142_v28, 0.0  ;;  %v4836_v40 = vsel %vm1252_vm5, %v4147_v27, 0.0  ;;  %v751_v27 = vadd.s32 3856, %v5993_v33 }
 0x461   : > { %v5345_v31 = vadd.f32 %v5344_v26, %v4834_v30  ;;  %v752_v30 = vadd.s32 3864, %v5993_v33 }
 0x462   : > { %vm1267_vm4 = vcmp.eq.s32.totalorder %v751_v27, %v6002_v38 }
 0x463   : > { %v5346_v35 = vadd.f32 %v5345_v31, %v4835_v34  ;;  %v4157_v36 = vpop.permute.xlu1 %4156  ;;  %v4152_v37 = vpop.permute.xlu0 %4151  ;;  %vm1268_vm5 = vcmp.eq.s32.totalorder %v752_v30, %v6002_v38 }
 0x464   : > { %v4837_v43 = vsel %vm1253_vm6, %v4152_v37, 0.0  ;;  %v4838_v48 = vsel %vm1254_vm7, %v4157_v36, 0.0  ;;  %v753_v36 = vadd.s32 3872, %v5993_v33 }
 0x465   : > { %v5347_v41 = vadd.f32 %v5346_v35, %v4836_v40  ;;  %v754_v40 = vadd.s32 3880, %v5993_v33 }
 0x466   : > { %vm1269_vm6 = vcmp.eq.s32.totalorder %v753_v36, %v6002_v38 }
 0x467   : > { %v5348_v44 = vadd.f32 %v5347_v41, %v4837_v43  ;;  %v4167_v45 = vpop.permute.xlu1 %4166  ;;  %v4162_v46 = vpop.permute.xlu0 %4161  ;;  %vm1270_vm7 = vcmp.eq.s32.totalorder %v754_v40, %v6002_v38 }
 0x468   : > { %v4839_v51 = vsel %vm1255_vm8, %v4162_v46, 0.0  ;;  %v4840_v56 = vsel %vm1256_vm9, %v4167_v45, 0.0  ;;  %v755_v45 = vadd.s32 3888, %v5993_v33 }
 0x469   : > { %v5349_v49 = vadd.f32 %v5348_v44, %v4838_v48  ;;  %v756_v48 = vadd.s32 3896, %v5993_v33 }
 0x46a   : > { %vm1271_vm8 = vcmp.eq.s32.totalorder %v755_v45, %v6002_v38 }
 0x46b   : > { %v5350_v52 = vadd.f32 %v5349_v49, %v4839_v51  ;;  %v4177_v53 = vpop.permute.xlu1 %4176  ;;  %v4172_v54 = vpop.permute.xlu0 %4171  ;;  %vm1272_vm9 = vcmp.eq.s32.totalorder %v756_v48, %v6002_v38 }
 0x46c   : > { %v4841_v59 = vsel %vm1257_vm10, %v4172_v54, 0.0  ;;  %v4842_v0 = vsel %vm1258_vm11, %v4177_v53, 0.0  ;;  %v757_v53 = vadd.s32 3904, %v5993_v33 }
 0x46d   : > { %v5351_v57 = vadd.f32 %v5350_v52, %v4840_v56  ;;  %v758_v56 = vadd.s32 3912, %v5993_v33 }
 0x46e   : > { %vm1273_vm10 = vcmp.eq.s32.totalorder %v757_v53, %v6002_v38 }
 0x46f   : > { %v5352_v60 = vadd.f32 %v5351_v57, %v4841_v59  ;;  %v4187_v61 = vpop.permute.xlu1 %4186  ;;  %v4182_v62 = vpop.permute.xlu0 %4181  ;;  %vm1274_vm11 = vcmp.eq.s32.totalorder %v758_v56, %v6002_v38 }
 0x470   : > { %v4843_v4 = vsel %vm1259_vm12, %v4182_v62, 0.0  ;;  %v4844_v9 = vsel %vm1260_vm13, %v4187_v61, 0.0  ;;  %v759_v61 = vadd.s32 3920, %v5993_v33 }
 0x471   : > { %v5353_v1 = vadd.f32 %v5352_v60, %v4842_v0  ;;  %v760_v0 = vadd.s32 3928, %v5993_v33 }
 0x472   : > { %vm1275_vm12 = vcmp.eq.s32.totalorder %v759_v61, %v6002_v38 }
 0x473   : > { %v5354_v5 = vadd.f32 %v5353_v1, %v4843_v4  ;;  %v4197_v6 = vpop.permute.xlu1 %4196  ;;  %v4192_v7 = vpop.permute.xlu0 %4191  ;;  %vm1276_vm13 = vcmp.eq.s32.totalorder %v760_v0, %v6002_v38 }
 0x474   : > { %v4845_v14 = vsel %vm1261_vm14, %v4192_v7, 0.0  ;;  %v4846_v19 = vsel %vm1262_vm15, %v4197_v6, 0.0  ;;  %v761_v6 = vadd.s32 3936, %v5993_v33 }
 0x475   : > { %v5355_v10 = vadd.f32 %v5354_v5, %v4844_v9  ;;  %v762_v9 = vadd.s32 3944, %v5993_v33 }
 0x476   : > { %vm1277_vm14 = vcmp.eq.s32.totalorder %v761_v6, %v6002_v38 }
 0x477   : > { %v5356_v15 = vadd.f32 %v5355_v10, %v4845_v14  ;;  %v4207_v16 = vpop.permute.xlu1 %4206  ;;  %v4202_v17 = vpop.permute.xlu0 %4201  ;;  %vm1278_vm15 = vcmp.eq.s32.totalorder %v762_v9, %v6002_v38 }
 0x478   : > { %v4847_v23 = vsel %vm1263_vm0, %v4202_v17, 0.0  ;;  %v4848_v28 = vsel %vm1264_vm1, %v4207_v16, 0.0  ;;  %v763_v16 = vadd.s32 3952, %v5993_v33 }
 0x479   : > { %v5357_v20 = vadd.f32 %v5356_v15, %v4846_v19  ;;  %v764_v19 = vadd.s32 3960, %v5993_v33 }
 0x47a   : > { %vm1279_vm0 = vcmp.eq.s32.totalorder %v763_v16, %v6002_v38 }
 0x47b   : > { %v5358_v24 = vadd.f32 %v5357_v20, %v4847_v23  ;;  %v4217_v25 = vpop.permute.xlu1 %4216  ;;  %v4212_v26 = vpop.permute.xlu0 %4211  ;;  %vm1280_vm1 = vcmp.eq.s32.totalorder %v764_v19, %v6002_v38 }
 0x47c   : > { %v4849_v31 = vsel %vm1265_vm2, %v4212_v26, 0.0  ;;  %v4850_v37 = vsel %vm1266_vm3, %v4217_v25, 0.0  ;;  %v765_v25 = vadd.s32 3968, %v5993_v33 }
 0x47d   : > { %v5359_v29 = vadd.f32 %v5358_v24, %v4848_v28  ;;  %v766_v28 = vadd.s32 3976, %v5993_v33 }
 0x47e   : > { %vm1281_vm2 = vcmp.eq.s32.totalorder %v765_v25, %v6002_v38 }
 0x47f   : > { %v5360_v32 = vadd.f32 %v5359_v29, %v4849_v31  ;;  %v4227_v34 = vpop.permute.xlu1 %4226  ;;  %v4222_v35 = vpop.permute.xlu0 %4221  ;;  %vm1282_vm3 = vcmp.eq.s32.totalorder %v766_v28, %v6002_v38 }
 0x480   : > { %v4851_v41 = vsel %vm1267_vm4, %v4222_v35, 0.0  ;;  %v4852_v46 = vsel %vm1268_vm5, %v4227_v34, 0.0  ;;  %v767_v34 = vadd.s32 3984, %v5993_v33 }
 0x481   : > { %v5361_v39 = vadd.f32 %v5360_v32, %v4850_v37  ;;  %v768_v37 = vadd.s32 3992, %v5993_v33 }
 0x482   : > { %vm1283_vm4 = vcmp.eq.s32.totalorder %v767_v34, %v6002_v38 }
 0x483   : > { %v5362_v42 = vadd.f32 %v5361_v39, %v4851_v41  ;;  %v4237_v43 = vpop.permute.xlu1 %4236  ;;  %v4232_v44 = vpop.permute.xlu0 %4231  ;;  %vm1284_vm5 = vcmp.eq.s32.totalorder %v768_v37, %v6002_v38 }
 0x484   : > { %v4853_v49 = vsel %vm1269_vm6, %v4232_v44, 0.0  ;;  %v4854_v54 = vsel %vm1270_vm7, %v4237_v43, 0.0  ;;  %v769_v43 = vadd.s32 4000, %v5993_v33 }
 0x485   : > { %v5363_v47 = vadd.f32 %v5362_v42, %v4852_v46  ;;  %v770_v46 = vadd.s32 4008, %v5993_v33 }
 0x486   : > { %vm1285_vm6 = vcmp.eq.s32.totalorder %v769_v43, %v6002_v38 }
 0x487   : > { %v5364_v50 = vadd.f32 %v5363_v47, %v4853_v49  ;;  %v4247_v51 = vpop.permute.xlu1 %4246  ;;  %v4242_v52 = vpop.permute.xlu0 %4241  ;;  %vm1286_vm7 = vcmp.eq.s32.totalorder %v770_v46, %v6002_v38 }
 0x488   : > { %v4855_v57 = vsel %vm1271_vm8, %v4242_v52, 0.0  ;;  %v4856_v62 = vsel %vm1272_vm9, %v4247_v51, 0.0  ;;  %v771_v51 = vadd.s32 4016, %v5993_v33 }
 0x489   : > { %v5365_v55 = vadd.f32 %v5364_v50, %v4854_v54  ;;  %v772_v54 = vadd.s32 4024, %v5993_v33 }
 0x48a   : > { %vm1287_vm8 = vcmp.eq.s32.totalorder %v771_v51, %v6002_v38 }
 0x48b   : > { %v5366_v58 = vadd.f32 %v5365_v55, %v4855_v57  ;;  %v4257_v59 = vpop.permute.xlu1 %4256  ;;  %v4252_v60 = vpop.permute.xlu0 %4251  ;;  %vm1288_vm9 = vcmp.eq.s32.totalorder %v772_v54, %v6002_v38 }
 0x48c   : > { %v4857_v1 = vsel %vm1273_vm10, %v4252_v60, 0.0  ;;  %v4858_v7 = vsel %vm1274_vm11, %v4257_v59, 0.0  ;;  %v773_v59 = vadd.s32 4032, %v5993_v33 }
 0x48d   : > { %v5367_v63 = vadd.f32 %v5366_v58, %v4856_v62  ;;  %v774_v62 = vadd.s32 4040, %v5993_v33 }
 0x48e   : > { %vm1289_vm10 = vcmp.eq.s32.totalorder %v773_v59, %v6002_v38 }
 0x48f   : > { %v5368_v3 = vadd.f32 %v5367_v63, %v4857_v1  ;;  %v4267_v4 = vpop.permute.xlu1 %4266  ;;  %v4262_v5 = vpop.permute.xlu0 %4261  ;;  %vm1290_vm11 = vcmp.eq.s32.totalorder %v774_v62, %v6002_v38 }
 0x490   : > { %v4859_v10 = vsel %vm1275_vm12, %v4262_v5, 0.0  ;;  %v4860_v17 = vsel %vm1276_vm13, %v4267_v4, 0.0  ;;  %v775_v4 = vadd.s32 4048, %v5993_v33 }
 0x491   : > { %v5369_v8 = vadd.f32 %v5368_v3, %v4858_v7  ;;  %v776_v7 = vadd.s32 4056, %v5993_v33 }
 0x492   : > { %vm1291_vm12 = vcmp.eq.s32.totalorder %v775_v4, %v6002_v38 }
 0x493   : > { %v5370_v11 = vadd.f32 %v5369_v8, %v4859_v10  ;;  %v4277_v14 = vpop.permute.xlu1 %4276  ;;  %v4272_v15 = vpop.permute.xlu0 %4271  ;;  %vm1292_vm13 = vcmp.eq.s32.totalorder %v776_v7, %v6002_v38 }
 0x494   : > { %v4861_v20 = vsel %vm1277_vm14, %v4272_v15, 0.0  ;;  %v4862_v26 = vsel %vm1278_vm15, %v4277_v14, 0.0  ;;  %v777_v14 = vadd.s32 4064, %v5993_v33 }
 0x495   : > { %v5371_v18 = vadd.f32 %v5370_v11, %v4860_v17  ;;  %v778_v17 = vadd.s32 4072, %v5993_v33 }
 0x496   : > { %vm1293_vm14 = vcmp.eq.s32.totalorder %v777_v14, %v6002_v38 }
 0x497   : > { %v5372_v21 = vadd.f32 %v5371_v18, %v4861_v20  ;;  %v4287_v23 = vpop.permute.xlu1 %4286  ;;  %v4282_v24 = vpop.permute.xlu0 %4281  ;;  %vm1294_vm15 = vcmp.eq.s32.totalorder %v778_v17, %v6002_v38 }
 0x498   : > { %v4863_v29 = vsel %vm1279_vm0, %v4282_v24, 0.0  ;;  %v4864_v35 = vsel %vm1280_vm1, %v4287_v23, 0.0  ;;  %v779_v23 = vadd.s32 4080, %v5993_v33 }
 0x499   : > { %v5373_v27 = vadd.f32 %v5372_v21, %v4862_v26  ;;  %v780_v26 = vadd.s32 4088, %v5993_v33 }
 0x49a   : > { %vm1295_vm0 = vcmp.eq.s32.totalorder %v779_v23, %v6002_v38 }
 0x49b   : > { %v5374_v30 = vadd.f32 %v5373_v27, %v4863_v29  ;;  %v4297_v31 = vpop.permute.xlu1 %4296  ;;  %v4292_v32 = vpop.permute.xlu0 %4291  ;;  %vm1296_vm1 = vcmp.eq.s32.totalorder %v780_v26, %v6002_v38 }
 0x49c   : > { %v4865_v39 = vsel %vm1281_vm2, %v4292_v32, 0.0  ;;  %v4866_v44 = vsel %vm1282_vm3, %v4297_v31, 0.0  ;;  %vm249_vm2 = vcmp.ge.s32.totalorder %v5954_v12, 0  ;;  %vm250_vm3 = vcmp.lt.s32.totalorder %v5954_v12, 16 }
 0x49d   : > { %v5375_v36 = vadd.f32 %v5374_v30, %v4864_v35 }
 0x49f   : > { %v5376_v40 = vadd.f32 %v5375_v36, %v4865_v39  ;;  %v4307_v41 = vpop.permute.xlu1 %4306  ;;  %v4302_v42 = vpop.permute.xlu0 %4301 }
 0x4a0   : > { %v4867_v47 = vsel %vm1283_vm4, %v4302_v42, 0.0  ;;  %v4868_v52 = vsel %vm1284_vm5, %v4307_v41, 0.0  ;;  %vm251_vm4 = vmand %vm249_vm2, %vm250_vm3  ;;  %vm252_vm5 = vcmp.ge.s32.totalorder %v5956_v13, 0 }
 0x4a1   : > { %v5377_v45 = vadd.f32 %v5376_v40, %v4866_v44 }
 0x4a3   : > { %v5378_v48 = vadd.f32 %v5377_v45, %v4867_v47  ;;  %v4317_v49 = vpop.permute.xlu1 %4316  ;;  %v4312_v50 = vpop.permute.xlu0 %4311 }
 0x4a4   : > { %v4869_v55 = vsel %vm1285_vm6, %v4312_v50, 0.0  ;;  %v4870_v60 = vsel %vm1286_vm7, %v4317_v49, 0.0  ;;  %vm253_vm6 = vmand %vm251_vm4, %vm252_vm5  ;;  %vm254_vm7 = vcmp.lt.s32.totalorder %v5956_v13, 16 }
 0x4a5   : > { %v5379_v53 = vadd.f32 %v5378_v48, %v4868_v52 }
 0x4a7   : > { %v5380_v56 = vadd.f32 %v5379_v53, %v4869_v55  ;;  %v4327_v57 = vpop.permute.xlu1 %4326  ;;  %v4322_v58 = vpop.permute.xlu0 %4321 }
 0x4a8   : > { %v4871_v63 = vsel %vm1287_vm8, %v4322_v58, 0.0  ;;  %v4872_v5 = vsel %vm1288_vm9, %v4327_v57, 0.0  ;;  %vm255_vm8 = vmand %vm253_vm6, %vm254_vm7  ;;  %vm256_vm9 = vcmp.ge.s32.totalorder %v5972_v22, 0 }
 0x4a9   : > { %v5381_v61 = vadd.f32 %v5380_v56, %v4870_v60 }
 0x4ab   : > { %v5382_v0 = vadd.f32 %v5381_v61, %v4871_v63  ;;  %v4337_v1 = vpop.permute.xlu1 %4336  ;;  %v4332_v3 = vpop.permute.xlu0 %4331 }
 0x4ac   : > { %v4873_v8 = vsel %vm1289_vm10, %v4332_v3, 0.0  ;;  %v4874_v15 = vsel %vm1290_vm11, %v4337_v1, 0.0  ;;  %vm257_vm10 = vmand %vm255_vm8, %vm256_vm9  ;;  %vm258_vm11 = vcmp.lt.s32.totalorder %v5972_v22, 16 }
 0x4ad   : > { %v5383_v6 = vadd.f32 %v5382_v0, %v4872_v5 }
 0x4af   : > { %v5384_v9 = vadd.f32 %v5383_v6, %v4873_v8  ;;  %v4347_v10 = vpop.permute.xlu1 %4346  ;;  %v4342_v11 = vpop.permute.xlu0 %4341 }
 0x4b0   : > { %v4875_v18 = vsel %vm1291_vm12, %v4342_v11, 0.0  ;;  %v4876_v24 = vsel %vm1292_vm13, %v4347_v10, 0.0  ;;  %vm259_vm12 = vmand %vm257_vm10, %vm258_vm11 }
 0x4b1   : > { %v5385_v16 = vadd.f32 %v5384_v9, %v4874_v15 }
 0x4b3   : > { %v5386_v19 = vadd.f32 %v5385_v16, %v4875_v18  ;;  %v4357_v20 = vpop.permute.xlu1 %4356  ;;  %v4352_v21 = vpop.permute.xlu0 %4351 }
 0x4b4   : > { %v4877_v27 = vsel %vm1293_vm14, %v4352_v21, 0.0  ;;  %v4878_v30 = vsel %vm1294_vm15, %v4357_v20, 0.0 }
 0x4b5   : > { %v5387_v25 = vadd.f32 %v5386_v19, %v4876_v24 }
 0x4b7   : > { %v5388_v28 = vadd.f32 %v5387_v25, %v4877_v27  ;;  %v4362_v29 = vpop.permute.xlu0 %4361  ;;  %v4367_v31 = vpop.permute.xlu1 %4366 }
 0x4b8   : > { %v4879_v34 = vsel %vm1295_vm0, %v4362_v29, 0.0  ;;  %v4880_v36 = vsel %vm1296_vm1, %v4367_v31, 0.0 }
 0x4b9   : > { %v5389_v32 = vadd.f32 %v5388_v28, %v4878_v30 }
 0x4bb   : > { %v5390_v35 = vadd.f32 %v5389_v32, %v4879_v34 }
 0x4bd   : > { %v5391_v37 = vadd.f32 %v5390_v35, %v4880_v36 }
 0x4bf   : > { %v5392_v33 = vrot.slane %v5391_v37, 4 }
 0x4c1   : > { %v5393_v39 = vadd.f32 %v5392_v33, %v5391_v37 }
 0x4c3   : > { %v5394_v40 = vrot.slane %v5393_v39, 2 }
 0x4c5   : > { %v5395_v38 = vadd.f32 %v5394_v40, %v5393_v39 }
 0x4c7   : > { %v5396_v12 = vrot.slane %v5395_v38, 1 }
 0x4c9   : > { %v5397_v41 = vadd.f32 %v5396_v12, %v5395_v38 }
 0x4cb   : > { %vm5398_vm13 = vcmp.gt.f32.partialorder %v5397_v41, 0.5 }
 0x4cc   : > { %vm5399_vm14 = vmand %vm259_vm12, %vm5398_vm13 }
 0x4cd   : > { %v5400_v13 = vsel %vm5399_vm14, 1, %v5681_v2 }
 0x4ce   : > { %5401 = vst [vmem:[%s214_s9] sm:$0x1] %v5400_v13 }
 0x4cf   : > { %5620 = shalt.err (!%p5617_p1)
}
 0x4d0   : > { %s5621_s7 = scalar_lea.hbm %s8383_s23, 16  ;;  %s5625_s28 = scalar_lea.hbm %s8430_s4, 32 }
 0x4d1   : > { %p5622_p2 = scmp.ne.s32.totalorder %s8383_s23, %s5621_s7  ;;  %p5626_p9 = scmp.lt.u32.totalorder %s8383_s23, %s8430_s4 }
 0x4d2   : > { %p5627_p5 = scmp.lt.u32.totalorder %s5625_s28, %s5621_s7  ;;  %p5629_p10 = scmp.lt.u32.totalorder %s5621_s7, %s8383_s23 }
 0x4d3   : > { %p5623_p3 = pnand %p5622_p2, %p8443_p12 }
 0x4d4   : > { %p5628_p6 = por %p5627_p5, %p5626_p9 }
 0x4d5   : > { %p5624_p4 = pneg %p5623_p3 }
 0x4d6   : > { %p5630_p0 = por %p5629_p10, %p5628_p6 }
 0x4d8   : > { %p5631_p7 = pnand %p5630_p0, %p5624_p4 }
 0x4da   : > { %5634 = shalt.err (!%p5631_p7)
}
 0x4db   : > { %5522 = dma.vmem_to_hbm [thread:$0]  (%p8443_p12), %s8385_s13, 16, %s8383_s23, %s5403_s30  }
 0x4dc PF: > { %p5539_p8 = scmp.ge.s32.totalorder %s5677_s18, 2  ;;  %s5427_s20 = sand.u32 1, %s5665_s15  }
 0x4dd   : > { %p8444_p11 = scmp.ne.s32.totalorder %s8435_s26, 0  ;;  %s5428_s8 = scalar_lea.sflag [#allocation3], %s5427_s20 }
 0x4df   : > { %p5532_p13 = pnand %p5539_p8, %p8444_p11 }
 0x4e1   : > { %5660 = dma.done.wait (!%p5532_p13), %s5428_s8, 16  }
 0x4e2   : > { %5662 = vsyncadd (!%p5532_p13), %s5428_s8, 4294967280  ;;  %p16_p1 = scmp.ge.s32.totalorder %s5733_s21, 4   ;;  %s8445_s15 = smov %s5669_s16 }
 0x4e3   : > { %s8446_s16 = smov %s5673_s17  ;;  %s8447_s17 = smov %s5744_s24 }
 0x4e4   : > { %s8448_s18 = smov %s5733_s21  ;;  %18 = sbr.rel (!%p16_p1) target bundleno = 5 (0x5), region = 80 }
 0x4eb   :  { %5432 = vsyncpa [#allocation3], 1 }
 0x4ec   :  { %5434 = vsyncpa [#allocation3 + $0x1], 1 }
 0x4ed   :  { %5435 = vsyncpa [#allocation4], 1 }
 0x4ee   :  { %5437 = vsyncpa [#allocation4 + $0x1], 1 }
 0x4ef   :  { %5438 = vsyncpa [#allocation6], 1 }

</bundles_post_ra>
